<compile_context>
chip_gen: v5e
topology: v5e:2x2
jax: 0.10.0
libtpu: 0.0.40
codegen_flags: <defaults>
</compile_context>

<pallas_src>
import functools

import jax
import jax.numpy as jnp
from jax.experimental import pallas as pl
from jax.experimental.pallas import tpu as pltpu


def _round_up(x, m):
    return ((x + m - 1) // m) * m


def _vmem_limit_bytes():
    """Generation-aware scoped-VMEM limit: ~3/4 of physical capacity
    (~48 MiB on v7x's 64 MiB, ~96 MiB on v5e/v6e's 128 MiB)."""
    cap = 64 * 1024 * 1024  # conservative fallback, valid on every generation
    try:
        info_cap = int(pltpu.get_tpu_info().vmem_capacity_bytes)
        if info_cap > 0:
            cap = info_cap
    except Exception:
        pass
    return (cap * 3) // 4


def _choose_row_tile(ho, wo, bytes_per_row, budget):
    """Largest row tile TH (TH | Ho) whose flattened (TH*Wo, Cp) block keeps
    packed-bf16 sublane alignment (TH*Wo % 16 == 0, or the full extent) and
    whose per-grid-step VMEM working set fits `budget` bytes."""
    legal = [th for th in range(1, ho + 1)
             if ho % th == 0 and ((th * wo) % 16 == 0 or th == ho)]
    for th in sorted(legal, reverse=True):
        if th * bytes_per_row <= budget:
            return th
    return min(legal)   # correctness over budget (extreme sizes only)


# ------------------------------ Pallas kernels -------------------------------

def _matmul_stats_kernel(x_ref, w_ref, o_ref, stats_ref):
    """Layer-1 conv as a single MXU matmul over pre-concatenated K*K taps,
    plus per-tile BN statistics taken from the f32 accumulator.

    x_ref:     (1, TM, KCp)   bf16 im2col patches (contraction lane-padded)
    w_ref:     (KCp, Cp)      bf16 flattened conv1 weights
    o_ref:     (1, TM, Cp)    bf16 raw conv1 output tile
    stats_ref: (1, 1, 2, Cp)  f32 per-tile [sum, sum_sq]
    """
    acc = jnp.dot(x_ref[0], w_ref[...], preferred_element_type=jnp.float32)
    o_ref[0] = acc.astype(o_ref.dtype)           # bf16 intermediate (HBM /2)
    stats_ref[0, 0, 0:1, :] = jnp.sum(acc, axis=0, keepdims=True)
    stats_ref[0, 0, 1:2, :] = jnp.sum(acc * acc, axis=0, keepdims=True)


def _act_conv_stats_kernel(x_ref, scale_ref, shift_ref, mask_ref, w_ref,
                           o_ref, stats_ref, *, ksize, th, wo):
    """Fused  relu(x*scale + shift) * mask  ->  KxK stride-1 conv (per-tap
    bf16 MXU matmuls, f32 accumulation)  ->  per-tile BN statistics.

    x_ref:       (1, Hp, Wp, Cp) bf16 raw conv1 output, spatially zero-padded
    scale/shift: (1, 1, Cp)      f32 layer-1 BN affine (from batch stats)
    mask_ref:    (1, Hp, Wp, 1)  f32 1 inside the image, 0 on the zero border
                                 (relu(0*scale + shift) != 0, so mask it back)
    w_ref:       (K, K, Cp, Cp)  bf16 conv2 weights
    o_ref:       (1, TH*Wo, Cp)  bf16 raw conv2 output tile
    stats_ref:   (1, 1, 2, Cp)   f32 per-tile [sum, sum_sq]
    """
    t = pl.program_id(1)
    row0 = pl.multiple_of(t * th, th)
    cp = x_ref.shape[-1]
    scale = scale_ref[...]                       # (1, 1, Cp)
    shift = shift_ref[...]

    acc = None
    for kh in range(ksize):
        for kw in range(ksize):
            xt = x_ref[0, pl.ds(row0 + kh, th), pl.ds(kw, wo), :]
            mt = mask_ref[0, pl.ds(row0 + kh, th), pl.ds(kw, wo), :]
            a = jnp.maximum(xt.astype(jnp.float32) * scale + shift, 0.0) * mt
            # wo is kept a sublane multiple at these shapes so this reshape is
            # layout-free (no per-tap VMEM relayout copy).
            a = a.reshape(th * wo, cp).astype(jnp.bfloat16)
            contrib = jnp.dot(a, w_ref[kh, kw],
                              preferred_element_type=jnp.float32)
            acc = contrib if acc is None else acc + contrib

    o_ref[0] = acc.astype(o_ref.dtype)           # bf16 intermediate (HBM /2)
    stats_ref[0, 0, 0:1, :] = jnp.sum(acc, axis=0, keepdims=True)
    stats_ref[0, 0, 1:2, :] = jnp.sum(acc * acc, axis=0, keepdims=True)


def _bn_relu_kernel(x_ref, scale_ref, shift_ref, o_ref):
    """Final tiled normalise + ReLU: y = relu(x*scale + shift), lane-dense."""
    y = x_ref[0].astype(jnp.float32) * scale_ref[0] + shift_ref[0]
    o_ref[0] = jnp.maximum(y, 0.0).astype(o_ref.dtype)


# ------------------------------ small JAX epilogue ----------------------------

def _bn_affine(stats, gamma, beta, cout, cp, m_total):
    """Per-channel BN scale/shift from per-tile [sum, sum_sq] partials.
    Padded channels stay finite ONLY because gamma/beta are zero-padded
    (var = 0 -> rsqrt(eps) ~ 316, but it is multiplied by gamma_pad == 0)."""
    total = jnp.sum(stats, axis=(0, 1))                      # (2, Cp)
    mean = total[0] / m_total
    # NOTE: E[x^2] - mean^2 in f32 — fine for typical conv outputs; use a
    # centered second pass if inputs can be strongly offset.
    var = total[1] / m_total - mean * mean
    inv = jax.lax.rsqrt(var + 1e-5)
    gp = jnp.pad(gamma, (0, cp - cout))
    bp = jnp.pad(beta, (0, cp - cout))
    scale = (gp * inv).reshape(1, 1, cp).astype(jnp.float32)
    shift = (bp - mean * gp * inv).reshape(1, 1, cp).astype(jnp.float32)
    return scale, shift


# ------------------------------- forward wrapper ------------------------------

def down_block_forward(x_nchw, params, ksize):
    """DownBlock forward.  External layout is NCHW (PyTorch); internally NHWC
    with the channel axis padded to 128 lanes (sliced off at the end)."""
    N, cin, H, W = x_nchw.shape
    cout = params["w1"].shape[0]
    K = ksize
    pad = (K - 1) // 2
    cp = _round_up(cout, 128)
    vmem_limit = _vmem_limit_bytes()

    ho1 = (H + 2 * pad - K) // 2 + 1
    wo1 = (W + 2 * pad - K) // 2 + 1
    ho2, wo2 = ho1, wo1                                     # stride-1 'same'

    # ---------------- layer 1: stride-2 conv + BN stats ----------------------
    # The layer-1 input is tiny (Cin ~ 3-4): concatenate the K*K taps along
    # the channel axis in JAX (cheap, K^2 x a small tensor) so the kernel runs
    # one deep, lane-dense MXU contraction instead of K*K depth-Cin matmuls.
    x = jnp.transpose(x_nchw, (0, 2, 3, 1))                 # NCHW -> NHWC once
    xp = jnp.pad(x, ((0, 0), (pad, pad), (pad, pad), (0, 0)))
    taps = [xp[:, kh:kh + 2 * ho1:2, kw:kw + 2 * wo1:2, :]
            for kh in range(K) for kw in range(K)]
    patches = jnp.concatenate(taps, axis=-1)                # (N, Ho, Wo, K*K*Cin)
    kc = K * K * cin
    kcp = _round_up(kc, 128)
    patches = jnp.pad(patches, ((0, 0), (0, 0), (0, 0), (0, kcp - kc)))
    patches = patches.reshape(N, ho1 * wo1, kcp).astype(jnp.bfloat16)

    # conv bias intentionally omitted — it cancels in training-mode BN.
    w1 = jnp.transpose(params["w1"], (2, 3, 1, 0)).reshape(kc, cout)
    w1 = jnp.pad(w1, ((0, kcp - kc), (0, cp - cout))).astype(jnp.bfloat16)

    budget1 = max(vmem_limit - 2 * (kcp * cp * 2) - (2 << 20), 1 << 20)
    th1 = _choose_row_tile(ho1, wo1, (4 * kcp + 12 * cp) * wo1, budget1)
    n_t1, m_tile1 = ho1 // th1, th1 * wo1

    conv1_raw, stats1 = pl.pallas_call(
        _matmul_stats_kernel,
        out_shape=(jax.ShapeDtypeStruct((N, ho1 * wo1, cp), jnp.bfloat16),
                   jax.ShapeDtypeStruct((N, n_t1, 2, cp), jnp.float32)),
        grid=(N, n_t1),
        in_specs=[
            pl.BlockSpec((1, m_tile1, kcp), lambda n, t: (n, t, 0)),
            pl.BlockSpec((kcp, cp), lambda n, t: (0, 0)),
        ],
        out_specs=(
            pl.BlockSpec((1, m_tile1, cp), lambda n, t: (n, t, 0)),
            pl.BlockSpec((1, 1, 2, cp), lambda n, t: (n, t, 0, 0)),
        ),
        compiler_params=pltpu.CompilerParams(
            dimension_semantics=("parallel", "parallel"),
            vmem_limit_bytes=vmem_limit),
    )(patches, w1)

    scale1, shift1 = _bn_affine(stats1, params["gamma1"], params["beta1"],
                                cout, cp, N * ho1 * wo1)

    # ------- layer 2: fused BN1+ReLU -> stride-1 conv + BN stats (one pass) --
    # conv1's raw bf16 output is only spatially zero-padded here (no stride-
    # phase decomposition for stride 1); BN1+ReLU is applied to the conv2 tap
    # operands inside the kernel, with a 0/1 mask restoring the zero border.
    x2 = conv1_raw.reshape(N, ho1, wo1, cp)
    x2 = jnp.pad(x2, ((0, 0), (pad, pad), (pad, pad), (0, 0)))
    hp2, wp2 = ho1 + 2 * pad, wo1 + 2 * pad
    mask = jnp.pad(jnp.ones((1, ho1, wo1, 1), jnp.float32),
                   ((0, 0), (pad, pad), (pad, pad), (0, 0)))

    w2 = jnp.transpose(params["w2"], (2, 3, 1, 0))          # (K, K, Cin, Cout)
    w2 = jnp.pad(w2, ((0, 0), (0, 0), (0, cp - cout), (0, cp - cout)))
    w2 = w2.astype(jnp.bfloat16)

    fixed2 = 2 * (hp2 * wp2 * cp * 2 + K * K * cp * cp * 2)
    budget2 = max(vmem_limit - fixed2 - (2 << 20), 1 << 20)
    th2 = _choose_row_tile(ho2, wo2, 16 * cp * wo2, budget2)
    n_t2, m_tile2 = ho2 // th2, th2 * wo2
    # TODO(synk): for very large spatial extents, halo-row-tile this image via
    # manual make_async_copy (memory_space=pl.ANY) and single-buffer the grid-
    # invariant blocks (pl.Buffered(1)) so the resident block also fits v7x's
    # 64 MiB VMEM; at the sizes used here the whole image fits comfortably.

    kern2 = functools.partial(_act_conv_stats_kernel, ksize=K, th=th2, wo=wo2)
    conv2_raw, stats2 = pl.pallas_call(
        kern2,
        out_shape=(jax.ShapeDtypeStruct((N, ho2 * wo2, cp), jnp.bfloat16),
                   jax.ShapeDtypeStruct((N, n_t2, 2, cp), jnp.float32)),
        grid=(N, n_t2),
        in_specs=[
            pl.BlockSpec((1, hp2, wp2, cp), lambda n, t: (n, 0, 0, 0)),
            pl.BlockSpec((1, 1, cp), lambda n, t: (0, 0, 0)),
            pl.BlockSpec((1, 1, cp), lambda n, t: (0, 0, 0)),
            pl.BlockSpec((1, hp2, wp2, 1), lambda n, t: (0, 0, 0, 0)),
            pl.BlockSpec((K, K, cp, cp), lambda n, t: (0, 0, 0, 0)),
        ],
        out_specs=(
            pl.BlockSpec((1, m_tile2, cp), lambda n, t: (n, t, 0)),
            pl.BlockSpec((1, 1, 2, cp), lambda n, t: (n, t, 0, 0)),
        ),
        compiler_params=pltpu.CompilerParams(
            dimension_semantics=("parallel", "parallel"),
            vmem_limit_bytes=vmem_limit),
    )(x2, scale1, shift1, mask, w2)

    scale2, shift2 = _bn_affine(stats2, params["gamma2"], params["beta2"],
                                cout, cp, N * ho2 * wo2)

    # ------------------ final BN + ReLU (lane-dense elementwise) -------------
    out = pl.pallas_call(
        _bn_relu_kernel,
        out_shape=jax.ShapeDtypeStruct((N, ho2 * wo2, cp), jnp.float32),
        grid=(N, n_t2),
        in_specs=[
            pl.BlockSpec((1, m_tile2, cp), lambda n, t: (n, t, 0)),
            pl.BlockSpec((1, 1, cp), lambda n, t: (0, 0, 0)),
            pl.BlockSpec((1, 1, cp), lambda n, t: (0, 0, 0)),
        ],
        out_specs=pl.BlockSpec((1, m_tile2, cp), lambda n, t: (n, t, 0)),
        compiler_params=pltpu.CompilerParams(
            dimension_semantics=("parallel", "parallel"),
            vmem_limit_bytes=vmem_limit),
    )(conv2_raw, scale2, shift2)

    # PyTorch-faithful epilogue (f32, NCHW).  If the downstream consumer can
    # take padded-channel NHWC (or bf16), these two XLA passes can be dropped.
    out = out.reshape(N, ho2, wo2, cp)[..., :cout]
    return jnp.transpose(out, (0, 3, 1, 2))


# ----------------------------- pure-JAX reference -----------------------------

def _reference(x_nchw, params, ksize, conv_dtype):
    """PyTorch-faithful reference (includes the conv bias).  `conv_dtype`
    selects the precision of the conv inputs (f32, or bf16 to mirror the
    kernel's bf16-MXU-operand / f32-accumulate path)."""
    pad = (ksize - 1) // 2

    def conv(x, w, b, stride):
        y = jax.lax.conv_general_dilated(
            x.astype(conv_dtype), w.astype(conv_dtype),
            window_strides=(stride, stride), padding=((pad, pad), (pad, pad)),
            dimension_numbers=("NCHW", "OIHW", "NCHW"),
            preferred_element_type=jnp.float32)
        return y + b.reshape(1, -1, 1, 1)

    def bn_relu(x, gamma, beta):
        mean = jnp.mean(x, axis=(0, 2, 3), keepdims=True)
        var = jnp.mean((x - mean) ** 2, axis=(0, 2, 3), keepdims=True)
        y = (x - mean) * jax.lax.rsqrt(var + 1e-5)
        y = y * gamma.reshape(1, -1, 1, 1) + beta.reshape(1, -1, 1, 1)
        return jnp.maximum(y, 0.0)

    out = bn_relu(conv(x_nchw, params["w1"], params["b1"], 2),
                  params["gamma1"], params["beta1"])
    out = bn_relu(conv(out, params["w2"], params["b2"], 1),
                  params["gamma2"], params["beta2"])
    return out


# ------------------------------------ main -------------------------------------

if __name__ == "__main__":
    key = jax.random.PRNGKey(0)
    N, Cin, H, W = 2, 4, 16, 16
    Cout, K = 8, 3

    ks = jax.random.split(key, 6)
    x = jax.random.normal(ks[0], (N, Cin, H, W), jnp.float32)
    params = {
        "w1": 0.1 * jax.random.normal(ks[1], (Cout, Cin, K, K), jnp.float32),
        "b1": 0.05 * jax.random.normal(ks[2], (Cout,), jnp.float32),
        "gamma1": jnp.ones((Cout,), jnp.float32) * 1.2,
        "beta1": jnp.full((Cout,), 0.1, jnp.float32),
        "w2": 0.1 * jax.random.normal(ks[3], (Cout, Cout, K, K), jnp.float32),
        "b2": 0.05 * jax.random.normal(ks[4], (Cout,), jnp.float32),
        "gamma2": jnp.ones((Cout,), jnp.float32) * 0.9,
        "beta2": jnp.full((Cout,), -0.05, jnp.float32),
    }

    fwd = jax.jit(lambda xx: down_block_forward(xx, params, K))
    out = jax.block_until_ready(fwd(x))
    assert out.shape == (N, Cout, H // 2, W // 2), out.shape

    # (1) implementation check vs a reference matched to the kernel's
    #     bf16-MXU-input / f32-accumulate precision (kernel additionally keeps
    #     bf16 intermediates in HBM, hence the slightly looser tolerance).
    ref_bf16 = _reference(x, params, K, jnp.bfloat16)
    err = float(jnp.max(jnp.abs(out - ref_bf16)))
    assert jnp.allclose(out, ref_bf16, atol=3e-2, rtol=3e-2), err

    # (2) semantic sanity check vs the full-f32 PyTorch-faithful reference.
    ref_f32 = _reference(x, params, K, jnp.float32)
    err32 = float(jnp.max(jnp.abs(out - ref_f32)))
    assert jnp.allclose(out, ref_f32, atol=8e-2, rtol=8e-2), err32

    print("KERNEL_OK")
</pallas_src>

<mosaic_0001>
module attributes {stable_mosaic.version = 11 : i64} {
  func.func @_matmul_stats_kernel(%arg0: i32, %arg1: i32, %arg2: memref<1x64x128xbf16, #tpu.memory_space<vmem>>, %arg3: memref<128x128xbf16, #tpu.memory_space<vmem>>, %arg4: memref<1x64x128xbf16, #tpu.memory_space<vmem>>, %arg5: memref<1x1x2x128xf32, #tpu.memory_space<vmem>>) attributes {dimension_semantics = [#tpu.dimension_semantics<parallel>, #tpu.dimension_semantics<parallel>], iteration_bounds = array<i64: 2, 1>, scalar_prefetch = 0 : i64, scratch_operands = 0 : i64, tpu.core_type = #tpu.core_type<tc>, window_params = [{transform_indices = @transform_0, window_bounds = array<i64: 1, 64, 128>}, {pipeline_mode = #tpu.pipeline_mode<synchronous>, transform_indices = @transform_1, window_bounds = array<i64: 128, 128>}, {transform_indices = @transform_2, window_bounds = array<i64: 1, 64, 128>}, {transform_indices = @transform_3, window_bounds = array<i64: 1, 1, 2, 128>}]} {
    %c0 = arith.constant 0 : index
    %c0_0 = arith.constant 0 : index
    %c0_1 = arith.constant 0 : index
    %0 = vector.load %arg2[%c0, %c0_0, %c0_1] : memref<1x64x128xbf16, #tpu.memory_space<vmem>>, vector<1x64x128xbf16>
    %1 = vector.shape_cast %0 : vector<1x64x128xbf16> to vector<64x128xbf16>
    %c0_2 = arith.constant 0 : index
    %c0_3 = arith.constant 0 : index
    %2 = vector.load %arg3[%c0_2, %c0_3] : memref<128x128xbf16, #tpu.memory_space<vmem>>, vector<128x128xbf16>
    %cst = arith.constant dense<0.000000e+00> : vector<64x128xf32>
    %3 = tpu.matmul %1, %2, %cst {dimension_numbers = #tpu.dot_dimension_numbers<[1], [0], [0], [1], [0, 0, 1, 1], [], []>} : vector<64x128xbf16>, vector<128x128xbf16>, vector<64x128xf32> -> vector<64x128xf32>
    %4 = arith.truncf %3 : vector<64x128xf32> to vector<64x128xbf16>
    %c0_4 = arith.constant 0 : index
    %c0_5 = arith.constant 0 : index
    %c0_6 = arith.constant 0 : index
    %5 = vector.load %arg4[%c0_4, %c0_5, %c0_6] : memref<1x64x128xbf16, #tpu.memory_space<vmem>>, vector<1x64x128xbf16>
    %6 = vector.shape_cast %5 : vector<1x64x128xbf16> to vector<64x128xbf16>
    %7 = vector.shape_cast %4 : vector<64x128xbf16> to vector<1x64x128xbf16>
    tpu.vector_store %arg4[%c0_4, %c0_5, %c0_6], %7 {strides = array<i32>} : memref<1x64x128xbf16, #tpu.memory_space<vmem>>, vector<1x64x128xbf16>,
    %cst_7 = arith.constant dense<0.000000e+00> : vector<128xf32>
    %8 = vector.multi_reduction <add>, %3, %cst_7 [0] : vector<64x128xf32> to vector<128xf32>
    %9 = vector.shape_cast %8 : vector<128xf32> to vector<1x128xf32>
    %c0_8 = arith.constant 0 : index
    %c0_9 = arith.constant 0 : index
    %c0_10 = arith.constant 0 : index
    %c0_11 = arith.constant 0 : index
    %10 = vector.load %arg5[%c0_8, %c0_9, %c0_10, %c0_11] : memref<1x1x2x128xf32, #tpu.memory_space<vmem>>, vector<1x1x1x128xf32>
    %11 = vector.shape_cast %10 : vector<1x1x1x128xf32> to vector<1x128xf32>
    %12 = vector.shape_cast %9 : vector<1x128xf32> to vector<1x1x1x128xf32>
    tpu.vector_store %arg5[%c0_8, %c0_9, %c0_10, %c0_11], %12 {strides = array<i32>} : memref<1x1x2x128xf32, #tpu.memory_space<vmem>>, vector<1x1x1x128xf32>,
    %13 = arith.mulf %3, %3 : vector<64x128xf32>
    %cst_12 = arith.constant dense<0.000000e+00> : vector<128xf32>
    %14 = vector.multi_reduction <add>, %13, %cst_12 [0] : vector<64x128xf32> to vector<128xf32>
    %15 = vector.shape_cast %14 : vector<128xf32> to vector<1x128xf32>
    %c0_13 = arith.constant 0 : index
    %c0_14 = arith.constant 0 : index
    %c1 = arith.constant 1 : index
    %c0_15 = arith.constant 0 : index
    %16 = vector.load %arg5[%c0_13, %c0_14, %c1, %c0_15] : memref<1x1x2x128xf32, #tpu.memory_space<vmem>>, vector<1x1x1x128xf32>
    %17 = vector.shape_cast %16 : vector<1x1x1x128xf32> to vector<1x128xf32>
    %18 = vector.shape_cast %15 : vector<1x128xf32> to vector<1x1x1x128xf32>
    tpu.vector_store %arg5[%c0_13, %c0_14, %c1, %c0_15], %18 {strides = array<i32>} : memref<1x1x2x128xf32, #tpu.memory_space<vmem>>, vector<1x1x1x128xf32>,
    return
  }
  func.func @transform_0(%arg0: i32, %arg1: i32) -> (i32, i32, i32) {
    %c0_i32 = arith.constant 0 : i32
    %c0_i32_0 = arith.constant 0 : i32
    return %arg0, %arg1, %c0_i32 : i32, i32, i32
  }
  func.func @transform_1(%arg0: i32, %arg1: i32) -> (i32, i32) {
    %c0_i32 = arith.constant 0 : i32
    %c0_i32_0 = arith.constant 0 : i32
    %c0_i32_1 = arith.constant 0 : i32
    return %c0_i32, %c0_i32_0 : i32, i32
  }
  func.func @transform_2(%arg0: i32, %arg1: i32) -> (i32, i32, i32) {
    %c0_i32 = arith.constant 0 : i32
    %c0_i32_0 = arith.constant 0 : i32
    return %arg0, %arg1, %c0_i32 : i32, i32, i32
  }
  func.func @transform_3(%arg0: i32, %arg1: i32) -> (i32, i32, i32, i32) {
    %c0_i32 = arith.constant 0 : i32
    %c0_i32_0 = arith.constant 0 : i32
    %c0_i32_1 = arith.constant 0 : i32
    return %arg0, %arg1, %c0_i32, %c0_i32_0 : i32, i32, i32, i32
  }
}

module attributes {stable_mosaic.version = 11 : i64} {
  func.func @_act_conv_stats_kernel(%arg0: i32, %arg1: i32, %arg2: memref<1x10x10x128xbf16, #tpu.memory_space<vmem>>, %arg3: memref<1x1x128xf32, #tpu.memory_space<vmem>>, %arg4: memref<1x1x128xf32, #tpu.memory_space<vmem>>, %arg5: memref<1x10x10x1xf32, #tpu.memory_space<vmem>>, %arg6: memref<3x3x128x128xbf16, #tpu.memory_space<vmem>>, %arg7: memref<1x64x128xbf16, #tpu.memory_space<vmem>>, %arg8: memref<1x1x2x128xf32, #tpu.memory_space<vmem>>) attributes {dimension_semantics = [#tpu.dimension_semantics<parallel>, #tpu.dimension_semantics<parallel>], iteration_bounds = array<i64: 2, 1>, scalar_prefetch = 0 : i64, scratch_operands = 0 : i64, tpu.core_type = #tpu.core_type<tc>, window_params = [{transform_indices = @transform_0, window_bounds = array<i64: 1, 10, 10, 128>}, {pipeline_mode = #tpu.pipeline_mode<synchronous>, transform_indices = @transform_1, window_bounds = array<i64: 1, 1, 128>}, {pipeline_mode = #tpu.pipeline_mode<synchronous>, transform_indices = @transform_2, window_bounds = array<i64: 1, 1, 128>}, {pipeline_mode = #tpu.pipeline_mode<synchronous>, transform_indices = @transform_3, window_bounds = array<i64: 1, 10, 10, 1>}, {pipeline_mode = #tpu.pipeline_mode<synchronous>, transform_indices = @transform_4, window_bounds = array<i64: 3, 3, 128, 128>}, {transform_indices = @transform_5, window_bounds = array<i64: 1, 64, 128>}, {transform_indices = @transform_6, window_bounds = array<i64: 1, 1, 2, 128>}]} {
    %c8_i32 = arith.constant 8 : i32
    %0 = arith.muli %arg1, %c8_i32 : i32
    %1 = tpu.assume_multiple %0, 8 : i32
    %c0 = arith.constant 0 : index
    %c0_0 = arith.constant 0 : index
    %c0_1 = arith.constant 0 : index
    %2 = vector.load %arg3[%c0, %c0_0, %c0_1] : memref<1x1x128xf32, #tpu.memory_space<vmem>>, vector<1x1x128xf32>
    %c0_2 = arith.constant 0 : index
    %c0_3 = arith.constant 0 : index
    %c0_4 = arith.constant 0 : index
    %3 = vector.load %arg4[%c0_2, %c0_3, %c0_4] : memref<1x1x128xf32, #tpu.memory_space<vmem>>, vector<1x1x128xf32>
    %c0_i32 = arith.constant 0 : i32
    %4 = arith.addi %1, %c0_i32 : i32
    %c0_5 = arith.constant 0 : index
    %5 = arith.index_cast %4 : i32 to index
    %c0_6 = arith.constant 0 : index
    %c0_7 = arith.constant 0 : index
    %6 = vector.load %arg2[%c0_5, %5, %c0_6, %c0_7] : memref<1x10x10x128xbf16, #tpu.memory_space<vmem>>, vector<1x8x8x128xbf16>
    %7 = vector.shape_cast %6 : vector<1x8x8x128xbf16> to vector<8x8x128xbf16>
    %c0_i32_8 = arith.constant 0 : i32
    %8 = arith.addi %1, %c0_i32_8 : i32
    %c0_9 = arith.constant 0 : index
    %9 = arith.index_cast %8 : i32 to index
    %c0_10 = arith.constant 0 : index
    %c0_11 = arith.constant 0 : index
    %10 = vector.load %arg5[%c0_9, %9, %c0_10, %c0_11] : memref<1x10x10x1xf32, #tpu.memory_space<vmem>>, vector<1x8x8x1xf32>
    %11 = vector.shape_cast %10 : vector<1x8x8x1xf32> to vector<8x8x1xf32>
    %12 = arith.extf %7 : vector<8x8x128xbf16> to vector<8x8x128xf32>
    %13 = vector.broadcast %2 : vector<1x1x128xf32> to vector<8x8x128xf32>
    %14 = arith.mulf %12, %13 : vector<8x8x128xf32>
    %15 = vector.broadcast %3 : vector<1x1x128xf32> to vector<8x8x128xf32>
    %16 = arith.addf %14, %15 : vector<8x8x128xf32>
    %cst = arith.constant 0.000000e+00 : f32
    %17 = vector.broadcast %cst : f32 to vector<8x8x128xf32>
    %18 = arith.maximumf %16, %17 : vector<8x8x128xf32>
    %19 = vector.broadcast %11 : vector<8x8x1xf32> to vector<8x8x128xf32>
    %20 = arith.mulf %18, %19 : vector<8x8x128xf32>
    %21 = vector.shape_cast %20 : vector<8x8x128xf32> to vector<64x128xf32>
    %22 = arith.truncf %21 : vector<64x128xf32> to vector<64x128xbf16>
    %c0_12 = arith.constant 0 : index
    %c0_13 = arith.constant 0 : index
    %c0_14 = arith.constant 0 : index
    %c0_15 = arith.constant 0 : index
    %23 = vector.load %arg6[%c0_12, %c0_13, %c0_14, %c0_15] : memref<3x3x128x128xbf16, #tpu.memory_space<vmem>>, vector<1x1x128x128xbf16>
    %24 = vector.shape_cast %23 : vector<1x1x128x128xbf16> to vector<128x128xbf16>
    %cst_16 = arith.constant dense<0.000000e+00> : vector<64x128xf32>
    %25 = tpu.matmul %22, %24, %cst_16 {dimension_numbers = #tpu.dot_dimension_numbers<[1], [0], [0], [1], [0, 0, 1, 1], [], []>} : vector<64x128xbf16>, vector<128x128xbf16>, vector<64x128xf32> -> vector<64x128xf32>
    %c0_i32_17 = arith.constant 0 : i32
    %26 = arith.addi %1, %c0_i32_17 : i32
    %c0_18 = arith.constant 0 : index
    %27 = arith.index_cast %26 : i32 to index
    %c1 = arith.constant 1 : index
    %c0_19 = arith.constant 0 : index
    %28 = vector.load %arg2[%c0_18, %27, %c1, %c0_19] : memref<1x10x10x128xbf16, #tpu.memory_space<vmem>>, vector<1x8x8x128xbf16>
    %29 = vector.shape_cast %28 : vector<1x8x8x128xbf16> to vector<8x8x128xbf16>
    %c0_i32_20 = arith.constant 0 : i32
    %30 = arith.addi %1, %c0_i32_20 : i32
    %c0_21 = arith.constant 0 : index
    %31 = arith.index_cast %30 : i32 to index
    %c1_22 = arith.constant 1 : index
    %c0_23 = arith.constant 0 : index
    %32 = vector.load %arg5[%c0_21, %31, %c1_22, %c0_23] : memref<1x10x10x1xf32, #tpu.memory_space<vmem>>, vector<1x8x8x1xf32>
    %33 = vector.shape_cast %32 : vector<1x8x8x1xf32> to vector<8x8x1xf32>
    %34 = arith.extf %29 : vector<8x8x128xbf16> to vector<8x8x128xf32>
    %35 = vector.broadcast %2 : vector<1x1x128xf32> to vector<8x8x128xf32>
    %36 = arith.mulf %34, %35 : vector<8x8x128xf32>
    %37 = vector.broadcast %3 : vector<1x1x128xf32> to vector<8x8x128xf32>
    %38 = arith.addf %36, %37 : vector<8x8x128xf32>
    %cst_24 = arith.constant 0.000000e+00 : f32
    %39 = vector.broadcast %cst_24 : f32 to vector<8x8x128xf32>
    %40 = arith.maximumf %38, %39 : vector<8x8x128xf32>
    %41 = vector.broadcast %33 : vector<8x8x1xf32> to vector<8x8x128xf32>
    %42 = arith.mulf %40, %41 : vector<8x8x128xf32>
    %43 = vector.shape_cast %42 : vector<8x8x128xf32> to vector<64x128xf32>
    %44 = arith.truncf %43 : vector<64x128xf32> to vector<64x128xbf16>
    %c0_25 = arith.constant 0 : index
    %c1_26 = arith.constant 1 : index
    %c0_27 = arith.constant 0 : index
    %c0_28 = arith.constant 0 : index
    %45 = vector.load %arg6[%c0_25, %c1_26, %c0_27, %c0_28] : memref<3x3x128x128xbf16, #tpu.memory_space<vmem>>, vector<1x1x128x128xbf16>
    %46 = vector.shape_cast %45 : vector<1x1x128x128xbf16> to vector<128x128xbf16>
    %cst_29 = arith.constant dense<0.000000e+00> : vector<64x128xf32>
    %47 = tpu.matmul %44, %46, %cst_29 {dimension_numbers = #tpu.dot_dimension_numbers<[1], [0], [0], [1], [0, 0, 1, 1], [], []>} : vector<64x128xbf16>, vector<128x128xbf16>, vector<64x128xf32> -> vector<64x128xf32>
    %48 = arith.addf %25, %47 : vector<64x128xf32>
    %c0_i32_30 = arith.constant 0 : i32
    %49 = arith.addi %1, %c0_i32_30 : i32
    %c0_31 = arith.constant 0 : index
    %50 = arith.index_cast %49 : i32 to index
    %c2 = arith.constant 2 : index
    %c0_32 = arith.constant 0 : index
    %51 = vector.load %arg2[%c0_31, %50, %c2, %c0_32] : memref<1x10x10x128xbf16, #tpu.memory_space<vmem>>, vector<1x8x8x128xbf16>
    %52 = vector.shape_cast %51 : vector<1x8x8x128xbf16> to vector<8x8x128xbf16>
    %c0_i32_33 = arith.constant 0 : i32
    %53 = arith.addi %1, %c0_i32_33 : i32
    %c0_34 = arith.constant 0 : index
    %54 = arith.index_cast %53 : i32 to index
    %c2_35 = arith.constant 2 : index
    %c0_36 = arith.constant 0 : index
    %55 = vector.load %arg5[%c0_34, %54, %c2_35, %c0_36] : memref<1x10x10x1xf32, #tpu.memory_space<vmem>>, vector<1x8x8x1xf32>
    %56 = vector.shape_cast %55 : vector<1x8x8x1xf32> to vector<8x8x1xf32>
    %57 = arith.extf %52 : vector<8x8x128xbf16> to vector<8x8x128xf32>
    %58 = vector.broadcast %2 : vector<1x1x128xf32> to vector<8x8x128xf32>
    %59 = arith.mulf %57, %58 : vector<8x8x128xf32>
    %60 = vector.broadcast %3 : vector<1x1x128xf32> to vector<8x8x128xf32>
    %61 = arith.addf %59, %60 : vector<8x8x128xf32>
    %cst_37 = arith.constant 0.000000e+00 : f32
    %62 = vector.broadcast %cst_37 : f32 to vector<8x8x128xf32>
    %63 = arith.maximumf %61, %62 : vector<8x8x128xf32>
    %64 = vector.broadcast %56 : vector<8x8x1xf32> to vector<8x8x128xf32>
    %65 = arith.mulf %63, %64 : vector<8x8x128xf32>
    %66 = vector.shape_cast %65 : vector<8x8x128xf32> to vector<64x128xf32>
    %67 = arith.truncf %66 : vector<64x128xf32> to vector<64x128xbf16>
    %c0_38 = arith.constant 0 : index
    %c2_39 = arith.constant 2 : index
    %c0_40 = arith.constant 0 : index
    %c0_41 = arith.constant 0 : index
    %68 = vector.load %arg6[%c0_38, %c2_39, %c0_40, %c0_41] : memref<3x3x128x128xbf16, #tpu.memory_space<vmem>>, vector<1x1x128x128xbf16>
    %69 = vector.shape_cast %68 : vector<1x1x128x128xbf16> to vector<128x128xbf16>
    %cst_42 = arith.constant dense<0.000000e+00> : vector<64x128xf32>
    %70 = tpu.matmul %67, %69, %cst_42 {dimension_numbers = #tpu.dot_dimension_numbers<[1], [0], [0], [1], [0, 0, 1, 1], [], []>} : vector<64x128xbf16>, vector<128x128xbf16>, vector<64x128xf32> -> vector<64x128xf32>
    %71 = arith.addf %48, %70 : vector<64x128xf32>
    %c1_i32 = arith.constant 1 : i32
    %72 = arith.addi %1, %c1_i32 : i32
    %c0_43 = arith.constant 0 : index
    %73 = arith.index_cast %72 : i32 to index
    %c0_44 = arith.constant 0 : index
    %c0_45 = arith.constant 0 : index
    %74 = vector.load %arg2[%c0_43, %73, %c0_44, %c0_45] : memref<1x10x10x128xbf16, #tpu.memory_space<vmem>>, vector<1x8x8x128xbf16>
    %75 = vector.shape_cast %74 : vector<1x8x8x128xbf16> to vector<8x8x128xbf16>
    %c1_i32_46 = arith.constant 1 : i32
    %76 = arith.addi %1, %c1_i32_46 : i32
    %c0_47 = arith.constant 0 : index
    %77 = arith.index_cast %76 : i32 to index
    %c0_48 = arith.constant 0 : index
    %c0_49 = arith.constant 0 : index
    %78 = vector.load %arg5[%c0_47, %77, %c0_48, %c0_49] : memref<1x10x10x1xf32, #tpu.memory_space<vmem>>, vector<1x8x8x1xf32>
    %79 = vector.shape_cast %78 : vector<1x8x8x1xf32> to vector<8x8x1xf32>
    %80 = arith.extf %75 : vector<8x8x128xbf16> to vector<8x8x128xf32>
    %81 = vector.broadcast %2 : vector<1x1x128xf32> to vector<8x8x128xf32>
    %82 = arith.mulf %80, %81 : vector<8x8x128xf32>
    %83 = vector.broadcast %3 : vector<1x1x128xf32> to vector<8x8x128xf32>
    %84 = arith.addf %82, %83 : vector<8x8x128xf32>
    %cst_50 = arith.constant 0.000000e+00 : f32
    %85 = vector.broadcast %cst_50 : f32 to vector<8x8x128xf32>
    %86 = arith.maximumf %84, %85 : vector<8x8x128xf32>
    %87 = vector.broadcast %79 : vector<8x8x1xf32> to vector<8x8x128xf32>
    %88 = arith.mulf %86, %87 : vector<8x8x128xf32>
    %89 = vector.shape_cast %88 : vector<8x8x128xf32> to vector<64x128xf32>
    %90 = arith.truncf %89 : vector<64x128xf32> to vector<64x128xbf16>
    %c1_51 = arith.constant 1 : index
    %c0_52 = arith.constant 0 : index
    %c0_53 = arith.constant 0 : index
    %c0_54 = arith.constant 0 : index
    %91 = vector.load %arg6[%c1_51, %c0_52, %c0_53, %c0_54] : memref<3x3x128x128xbf16, #tpu.memory_space<vmem>>, vector<1x1x128x128xbf16>
    %92 = vector.shape_cast %91 : vector<1x1x128x128xbf16> to vector<128x128xbf16>
    %cst_55 = arith.constant dense<0.000000e+00> : vector<64x128xf32>
    %93 = tpu.matmul %90, %92, %cst_55 {dimension_numbers = #tpu.dot_dimension_numbers<[1], [0], [0], [1], [0, 0, 1, 1], [], []>} : vector<64x128xbf16>, vector<128x128xbf16>, vector<64x128xf32> -> vector<64x128xf32>
    %94 = arith.addf %71, %93 : vector<64x128xf32>
    %c1_i32_56 = arith.constant 1 : i32
    %95 = arith.addi %1, %c1_i32_56 : i32
    %c0_57 = arith.constant 0 : index
    %96 = arith.index_cast %95 : i32 to index
    %c1_58 = arith.constant 1 : index
    %c0_59 = arith.constant 0 : index
    %97 = vector.load %arg2[%c0_57, %96, %c1_58, %c0_59] : memref<1x10x10x128xbf16, #tpu.memory_space<vmem>>, vector<1x8x8x128xbf16>
    %98 = vector.shape_cast %97 : vector<1x8x8x128xbf16> to vector<8x8x128xbf16>
    %c1_i32_60 = arith.constant 1 : i32
    %99 = arith.addi %1, %c1_i32_60 : i32
    %c0_61 = arith.constant 0 : index
    %100 = arith.index_cast %99 : i32 to index
    %c1_62 = arith.constant 1 : index
    %c0_63 = arith.constant 0 : index
    %101 = vector.load %arg5[%c0_61, %100, %c1_62, %c0_63] : memref<1x10x10x1xf32, #tpu.memory_space<vmem>>, vector<1x8x8x1xf32>
    %102 = vector.shape_cast %101 : vector<1x8x8x1xf32> to vector<8x8x1xf32>
    %103 = arith.extf %98 : vector<8x8x128xbf16> to vector<8x8x128xf32>
    %104 = vector.broadcast %2 : vector<1x1x128xf32> to vector<8x8x128xf32>
    %105 = arith.mulf %103, %104 : vector<8x8x128xf32>
    %106 = vector.broadcast %3 : vector<1x1x128xf32> to vector<8x8x128xf32>
    %107 = arith.addf %105, %106 : vector<8x8x128xf32>
    %cst_64 = arith.constant 0.000000e+00 : f32
    %108 = vector.broadcast %cst_64 : f32 to vector<8x8x128xf32>
    %109 = arith.maximumf %107, %108 : vector<8x8x128xf32>
    %110 = vector.broadcast %102 : vector<8x8x1xf32> to vector<8x8x128xf32>
    %111 = arith.mulf %109, %110 : vector<8x8x128xf32>
    %112 = vector.shape_cast %111 : vector<8x8x128xf32> to vector<64x128xf32>
    %113 = arith.truncf %112 : vector<64x128xf32> to vector<64x128xbf16>
    %c1_65 = arith.constant 1 : index
    %c1_66 = arith.constant 1 : index
    %c0_67 = arith.constant 0 : index
    %c0_68 = arith.constant 0 : index
    %114 = vector.load %arg6[%c1_65, %c1_66, %c0_67, %c0_68] : memref<3x3x128x128xbf16, #tpu.memory_space<vmem>>, vector<1x1x128x128xbf16>
    %115 = vector.shape_cast %114 : vector<1x1x128x128xbf16> to vector<128x128xbf16>
    %cst_69 = arith.constant dense<0.000000e+00> : vector<64x128xf32>
    %116 = tpu.matmul %113, %115, %cst_69 {dimension_numbers = #tpu.dot_dimension_numbers<[1], [0], [0], [1], [0, 0, 1, 1], [], []>} : vector<64x128xbf16>, vector<128x128xbf16>, vector<64x128xf32> -> vector<64x128xf32>
    %117 = arith.addf %94, %116 : vector<64x128xf32>
    %c1_i32_70 = arith.constant 1 : i32
    %118 = arith.addi %1, %c1_i32_70 : i32
    %c0_71 = arith.constant 0 : index
    %119 = arith.index_cast %118 : i32 to index
    %c2_72 = arith.constant 2 : index
    %c0_73 = arith.constant 0 : index
    %120 = vector.load %arg2[%c0_71, %119, %c2_72, %c0_73] : memref<1x10x10x128xbf16, #tpu.memory_space<vmem>>, vector<1x8x8x128xbf16>
    %121 = vector.shape_cast %120 : vector<1x8x8x128xbf16> to vector<8x8x128xbf16>
    %c1_i32_74 = arith.constant 1 : i32
    %122 = arith.addi %1, %c1_i32_74 : i32
    %c0_75 = arith.constant 0 : index
    %123 = arith.index_cast %122 : i32 to index
    %c2_76 = arith.constant 2 : index
    %c0_77 = arith.constant 0 : index
    %124 = vector.load %arg5[%c0_75, %123, %c2_76, %c0_77] : memref<1x10x10x1xf32, #tpu.memory_space<vmem>>, vector<1x8x8x1xf32>
    %125 = vector.shape_cast %124 : vector<1x8x8x1xf32> to vector<8x8x1xf32>
    %126 = arith.extf %121 : vector<8x8x128xbf16> to vector<8x8x128xf32>
    %127 = vector.broadcast %2 : vector<1x1x128xf32> to vector<8x8x128xf32>
    %128 = arith.mulf %126, %127 : vector<8x8x128xf32>
    %129 = vector.broadcast %3 : vector<1x1x128xf32> to vector<8x8x128xf32>
    %130 = arith.addf %128, %129 : vector<8x8x128xf32>
    %cst_78 = arith.constant 0.000000e+00 : f32
    %131 = vector.broadcast %cst_78 : f32 to vector<8x8x128xf32>
    %132 = arith.maximumf %130, %131 : vector<8x8x128xf32>
    %133 = vector.broadcast %125 : vector<8x8x1xf32> to vector<8x8x128xf32>
    %134 = arith.mulf %132, %133 : vector<8x8x128xf32>
    %135 = vector.shape_cast %134 : vector<8x8x128xf32> to vector<64x128xf32>
    %136 = arith.truncf %135 : vector<64x128xf32> to vector<64x128xbf16>
    %c1_79 = arith.constant 1 : index
    %c2_80 = arith.constant 2 : index
    %c0_81 = arith.constant 0 : index
    %c0_82 = arith.constant 0 : index
    %137 = vector.load %arg6[%c1_79, %c2_80, %c0_81, %c0_82] : memref<3x3x128x128xbf16, #tpu.memory_space<vmem>>, vector<1x1x128x128xbf16>
    %138 = vector.shape_cast %137 : vector<1x1x128x128xbf16> to vector<128x128xbf16>
    %cst_83 = arith.constant dense<0.000000e+00> : vector<64x128xf32>
    %139 = tpu.matmul %136, %138, %cst_83 {dimension_numbers = #tpu.dot_dimension_numbers<[1], [0], [0], [1], [0, 0, 1, 1], [], []>} : vector<64x128xbf16>, vector<128x128xbf16>, vector<64x128xf32> -> vector<64x128xf32>
    %140 = arith.addf %117, %139 : vector<64x128xf32>
    %c2_i32 = arith.constant 2 : i32
    %141 = arith.addi %1, %c2_i32 : i32
    %c0_84 = arith.constant 0 : index
    %142 = arith.index_cast %141 : i32 to index
    %c0_85 = arith.constant 0 : index
    %c0_86 = arith.constant 0 : index
    %143 = vector.load %arg2[%c0_84, %142, %c0_85, %c0_86] : memref<1x10x10x128xbf16, #tpu.memory_space<vmem>>, vector<1x8x8x128xbf16>
    %144 = vector.shape_cast %143 : vector<1x8x8x128xbf16> to vector<8x8x128xbf16>
    %c2_i32_87 = arith.constant 2 : i32
    %145 = arith.addi %1, %c2_i32_87 : i32
    %c0_88 = arith.constant 0 : index
    %146 = arith.index_cast %145 : i32 to index
    %c0_89 = arith.constant 0 : index
    %c0_90 = arith.constant 0 : index
    %147 = vector.load %arg5[%c0_88, %146, %c0_89, %c0_90] : memref<1x10x10x1xf32, #tpu.memory_space<vmem>>, vector<1x8x8x1xf32>
    %148 = vector.shape_cast %147 : vector<1x8x8x1xf32> to vector<8x8x1xf32>
    %149 = arith.extf %144 : vector<8x8x128xbf16> to vector<8x8x128xf32>
    %150 = vector.broadcast %2 : vector<1x1x128xf32> to vector<8x8x128xf32>
    %151 = arith.mulf %149, %150 : vector<8x8x128xf32>
    %152 = vector.broadcast %3 : vector<1x1x128xf32> to vector<8x8x128xf32>
    %153 = arith.addf %151, %152 : vector<8x8x128xf32>
    %cst_91 = arith.constant 0.000000e+00 : f32
    %154 = vector.broadcast %cst_91 : f32 to vector<8x8x128xf32>
    %155 = arith.maximumf %153, %154 : vector<8x8x128xf32>
    %156 = vector.broadcast %148 : vector<8x8x1xf32> to vector<8x8x128xf32>
    %157 = arith.mulf %155, %156 : vector<8x8x128xf32>
    %158 = vector.shape_cast %157 : vector<8x8x128xf32> to vector<64x128xf32>
    %159 = arith.truncf %158 : vector<64x128xf32> to vector<64x128xbf16>
    %c2_92 = arith.constant 2 : index
    %c0_93 = arith.constant 0 : index
    %c0_94 = arith.constant 0 : index
    %c0_95 = arith.constant 0 : index
    %160 = vector.load %arg6[%c2_92, %c0_93, %c0_94, %c0_95] : memref<3x3x128x128xbf16, #tpu.memory_space<vmem>>, vector<1x1x128x128xbf16>
    %161 = vector.shape_cast %160 : vector<1x1x128x128xbf16> to vector<128x128xbf16>
    %cst_96 = arith.constant dense<0.000000e+00> : vector<64x128xf32>
    %162 = tpu.matmul %159, %161, %cst_96 {dimension_numbers = #tpu.dot_dimension_numbers<[1], [0], [0], [1], [0, 0, 1, 1], [], []>} : vector<64x128xbf16>, vector<128x128xbf16>, vector<64x128xf32> -> vector<64x128xf32>
    %163 = arith.addf %140, %162 : vector<64x128xf32>
    %c2_i32_97 = arith.constant 2 : i32
    %164 = arith.addi %1, %c2_i32_97 : i32
    %c0_98 = arith.constant 0 : index
    %165 = arith.index_cast %164 : i32 to index
    %c1_99 = arith.constant 1 : index
    %c0_100 = arith.constant 0 : index
    %166 = vector.load %arg2[%c0_98, %165, %c1_99, %c0_100] : memref<1x10x10x128xbf16, #tpu.memory_space<vmem>>, vector<1x8x8x128xbf16>
    %167 = vector.shape_cast %166 : vector<1x8x8x128xbf16> to vector<8x8x128xbf16>
    %c2_i32_101 = arith.constant 2 : i32
    %168 = arith.addi %1, %c2_i32_101 : i32
    %c0_102 = arith.constant 0 : index
    %169 = arith.index_cast %168 : i32 to index
    %c1_103 = arith.constant 1 : index
    %c0_104 = arith.constant 0 : index
    %170 = vector.load %arg5[%c0_102, %169, %c1_103, %c0_104] : memref<1x10x10x1xf32, #tpu.memory_space<vmem>>, vector<1x8x8x1xf32>
    %171 = vector.shape_cast %170 : vector<1x8x8x1xf32> to vector<8x8x1xf32>
    %172 = arith.extf %167 : vector<8x8x128xbf16> to vector<8x8x128xf32>
    %173 = vector.broadcast %2 : vector<1x1x128xf32> to vector<8x8x128xf32>
    %174 = arith.mulf %172, %173 : vector<8x8x128xf32>
    %175 = vector.broadcast %3 : vector<1x1x128xf32> to vector<8x8x128xf32>
    %176 = arith.addf %174, %175 : vector<8x8x128xf32>
    %cst_105 = arith.constant 0.000000e+00 : f32
    %177 = vector.broadcast %cst_105 : f32 to vector<8x8x128xf32>
    %178 = arith.maximumf %176, %177 : vector<8x8x128xf32>
    %179 = vector.broadcast %171 : vector<8x8x1xf32> to vector<8x8x128xf32>
    %180 = arith.mulf %178, %179 : vector<8x8x128xf32>
    %181 = vector.shape_cast %180 : vector<8x8x128xf32> to vector<64x128xf32>
    %182 = arith.truncf %181 : vector<64x128xf32> to vector<64x128xbf16>
    %c2_106 = arith.constant 2 : index
    %c1_107 = arith.constant 1 : index
    %c0_108 = arith.constant 0 : index
    %c0_109 = arith.constant 0 : index
    %183 = vector.load %arg6[%c2_106, %c1_107, %c0_108, %c0_109] : memref<3x3x128x128xbf16, #tpu.memory_space<vmem>>, vector<1x1x128x128xbf16>
    %184 = vector.shape_cast %183 : vector<1x1x128x128xbf16> to vector<128x128xbf16>
    %cst_110 = arith.constant dense<0.000000e+00> : vector<64x128xf32>
    %185 = tpu.matmul %182, %184, %cst_110 {dimension_numbers = #tpu.dot_dimension_numbers<[1], [0], [0], [1], [0, 0, 1, 1], [], []>} : vector<64x128xbf16>, vector<128x128xbf16>, vector<64x128xf32> -> vector<64x128xf32>
    %186 = arith.addf %163, %185 : vector<64x128xf32>
    %c2_i32_111 = arith.constant 2 : i32
    %187 = arith.addi %1, %c2_i32_111 : i32
    %c0_112 = arith.constant 0 : index
    %188 = arith.index_cast %187 : i32 to index
    %c2_113 = arith.constant 2 : index
    %c0_114 = arith.constant 0 : index
    %189 = vector.load %arg2[%c0_112, %188, %c2_113, %c0_114] : memref<1x10x10x128xbf16, #tpu.memory_space<vmem>>, vector<1x8x8x128xbf16>
    %190 = vector.shape_cast %189 : vector<1x8x8x128xbf16> to vector<8x8x128xbf16>
    %c2_i32_115 = arith.constant 2 : i32
    %191 = arith.addi %1, %c2_i32_115 : i32
    %c0_116 = arith.constant 0 : index
    %192 = arith.index_cast %191 : i32 to index
    %c2_117 = arith.constant 2 : index
    %c0_118 = arith.constant 0 : index
    %193 = vector.load %arg5[%c0_116, %192, %c2_117, %c0_118] : memref<1x10x10x1xf32, #tpu.memory_space<vmem>>, vector<1x8x8x1xf32>
    %194 = vector.shape_cast %193 : vector<1x8x8x1xf32> to vector<8x8x1xf32>
    %195 = arith.extf %190 : vector<8x8x128xbf16> to vector<8x8x128xf32>
    %196 = vector.broadcast %2 : vector<1x1x128xf32> to vector<8x8x128xf32>
    %197 = arith.mulf %195, %196 : vector<8x8x128xf32>
    %198 = vector.broadcast %3 : vector<1x1x128xf32> to vector<8x8x128xf32>
    %199 = arith.addf %197, %198 : vector<8x8x128xf32>
    %cst_119 = arith.constant 0.000000e+00 : f32
    %200 = vector.broadcast %cst_119 : f32 to vector<8x8x128xf32>
    %201 = arith.maximumf %199, %200 : vector<8x8x128xf32>
    %202 = vector.broadcast %194 : vector<8x8x1xf32> to vector<8x8x128xf32>
    %203 = arith.mulf %201, %202 : vector<8x8x128xf32>
    %204 = vector.shape_cast %203 : vector<8x8x128xf32> to vector<64x128xf32>
    %205 = arith.truncf %204 : vector<64x128xf32> to vector<64x128xbf16>
    %c2_120 = arith.constant 2 : index
    %c2_121 = arith.constant 2 : index
    %c0_122 = arith.constant 0 : index
    %c0_123 = arith.constant 0 : index
    %206 = vector.load %arg6[%c2_120, %c2_121, %c0_122, %c0_123] : memref<3x3x128x128xbf16, #tpu.memory_space<vmem>>, vector<1x1x128x128xbf16>
    %207 = vector.shape_cast %206 : vector<1x1x128x128xbf16> to vector<128x128xbf16>
    %cst_124 = arith.constant dense<0.000000e+00> : vector<64x128xf32>
    %208 = tpu.matmul %205, %207, %cst_124 {dimension_numbers = #tpu.dot_dimension_numbers<[1], [0], [0], [1], [0, 0, 1, 1], [], []>} : vector<64x128xbf16>, vector<128x128xbf16>, vector<64x128xf32> -> vector<64x128xf32>
    %209 = arith.addf %186, %208 : vector<64x128xf32>
    %210 = arith.truncf %209 : vector<64x128xf32> to vector<64x128xbf16>
    %c0_125 = arith.constant 0 : index
    %c0_126 = arith.constant 0 : index
    %c0_127 = arith.constant 0 : index
    %211 = vector.load %arg7[%c0_125, %c0_126, %c0_127] : memref<1x64x128xbf16, #tpu.memory_space<vmem>>, vector<1x64x128xbf16>
    %212 = vector.shape_cast %211 : vector<1x64x128xbf16> to vector<64x128xbf16>
    %213 = vector.shape_cast %210 : vector<64x128xbf16> to vector<1x64x128xbf16>
    tpu.vector_store %arg7[%c0_125, %c0_126, %c0_127], %213 {strides = array<i32>} : memref<1x64x128xbf16, #tpu.memory_space<vmem>>, vector<1x64x128xbf16>,
    %cst_128 = arith.constant dense<0.000000e+00> : vector<128xf32>
    %214 = vector.multi_reduction <add>, %209, %cst_128 [0] : vector<64x128xf32> to vector<128xf32>
    %215 = vector.shape_cast %214 : vector<128xf32> to vector<1x128xf32>
    %c0_129 = arith.constant 0 : index
    %c0_130 = arith.constant 0 : index
    %c0_131 = arith.constant 0 : index
    %c0_132 = arith.constant 0 : index
    %216 = vector.load %arg8[%c0_129, %c0_130, %c0_131, %c0_132] : memref<1x1x2x128xf32, #tpu.memory_space<vmem>>, vector<1x1x1x128xf32>
    %217 = vector.shape_cast %216 : vector<1x1x1x128xf32> to vector<1x128xf32>
    %218 = vector.shape_cast %215 : vector<1x128xf32> to vector<1x1x1x128xf32>
    tpu.vector_store %arg8[%c0_129, %c0_130, %c0_131, %c0_132], %218 {strides = array<i32>} : memref<1x1x2x128xf32, #tpu.memory_space<vmem>>, vector<1x1x1x128xf32>,
    %219 = arith.mulf %209, %209 : vector<64x128xf32>
    %cst_133 = arith.constant dense<0.000000e+00> : vector<128xf32>
    %220 = vector.multi_reduction <add>, %219, %cst_133 [0] : vector<64x128xf32> to vector<128xf32>
    %221 = vector.shape_cast %220 : vector<128xf32> to vector<1x128xf32>
    %c0_134 = arith.constant 0 : index
    %c0_135 = arith.constant 0 : index
    %c1_136 = arith.constant 1 : index
    %c0_137 = arith.constant 0 : index
    %222 = vector.load %arg8[%c0_134, %c0_135, %c1_136, %c0_137] : memref<1x1x2x128xf32, #tpu.memory_space<vmem>>, vector<1x1x1x128xf32>
    %223 = vector.shape_cast %222 : vector<1x1x1x128xf32> to vector<1x128xf32>
    %224 = vector.shape_cast %221 : vector<1x128xf32> to vector<1x1x1x128xf32>
    tpu.vector_store %arg8[%c0_134, %c0_135, %c1_136, %c0_137], %224 {strides = array<i32>} : memref<1x1x2x128xf32, #tpu.memory_space<vmem>>, vector<1x1x1x128xf32>,
    return
  }
  func.func @transform_0(%arg0: i32, %arg1: i32) -> (i32, i32, i32, i32) {
    %c0_i32 = arith.constant 0 : i32
    %c0_i32_0 = arith.constant 0 : i32
    %c0_i32_1 = arith.constant 0 : i32
    %c0_i32_2 = arith.constant 0 : i32
    return %arg0, %c0_i32, %c0_i32_0, %c0_i32_1 : i32, i32, i32, i32
  }
  func.func @transform_1(%arg0: i32, %arg1: i32) -> (i32, i32, i32) {
    %c0_i32 = arith.constant 0 : i32
    %c0_i32_0 = arith.constant 0 : i32
    %c0_i32_1 = arith.constant 0 : i32
    %c0_i32_2 = arith.constant 0 : i32
    return %c0_i32, %c0_i32_0, %c0_i32_1 : i32, i32, i32
  }
  func.func @transform_2(%arg0: i32, %arg1: i32) -> (i32, i32, i32) {
    %c0_i32 = arith.constant 0 : i32
    %c0_i32_0 = arith.constant 0 : i32
    %c0_i32_1 = arith.constant 0 : i32
    %c0_i32_2 = arith.constant 0 : i32
    return %c0_i32, %c0_i32_0, %c0_i32_1 : i32, i32, i32
  }
  func.func @transform_3(%arg0: i32, %arg1: i32) -> (i32, i32, i32, i32) {
    %c0_i32 = arith.constant 0 : i32
    %c0_i32_0 = arith.constant 0 : i32
    %c0_i32_1 = arith.constant 0 : i32
    %c0_i32_2 = arith.constant 0 : i32
    %c0_i32_3 = arith.constant 0 : i32
    return %c0_i32, %c0_i32_0, %c0_i32_1, %c0_i32_2 : i32, i32, i32, i32
  }
  func.func @transform_4(%arg0: i32, %arg1: i32) -> (i32, i32, i32, i32) {
    %c0_i32 = arith.constant 0 : i32
    %c0_i32_0 = arith.constant 0 : i32
    %c0_i32_1 = arith.constant 0 : i32
    %c0_i32_2 = arith.constant 0 : i32
    %c0_i32_3 = arith.constant 0 : i32
    return %c0_i32, %c0_i32_0, %c0_i32_1, %c0_i32_2 : i32, i32, i32, i32
  }
  func.func @transform_5(%arg0: i32, %arg1: i32) -> (i32, i32, i32) {
    %c0_i32 = arith.constant 0 : i32
    %c0_i32_0 = arith.constant 0 : i32
    return %arg0, %arg1, %c0_i32 : i32, i32, i32
  }
  func.func @transform_6(%arg0: i32, %arg1: i32) -> (i32, i32, i32, i32) {
    %c0_i32 = arith.constant 0 : i32
    %c0_i32_0 = arith.constant 0 : i32
    %c0_i32_1 = arith.constant 0 : i32
    return %arg0, %arg1, %c0_i32, %c0_i32_0 : i32, i32, i32, i32
  }
}

module attributes {stable_mosaic.version = 11 : i64} {
  func.func @_bn_relu_kernel(%arg0: i32, %arg1: i32, %arg2: memref<1x64x128xbf16, #tpu.memory_space<vmem>>, %arg3: memref<1x1x128xf32, #tpu.memory_space<vmem>>, %arg4: memref<1x1x128xf32, #tpu.memory_space<vmem>>, %arg5: memref<1x64x128xf32, #tpu.memory_space<vmem>>) attributes {dimension_semantics = [#tpu.dimension_semantics<parallel>, #tpu.dimension_semantics<parallel>], iteration_bounds = array<i64: 2, 1>, scalar_prefetch = 0 : i64, scratch_operands = 0 : i64, tpu.core_type = #tpu.core_type<tc>, window_params = [{transform_indices = @transform_0, window_bounds = array<i64: 1, 64, 128>}, {pipeline_mode = #tpu.pipeline_mode<synchronous>, transform_indices = @transform_1, window_bounds = array<i64: 1, 1, 128>}, {pipeline_mode = #tpu.pipeline_mode<synchronous>, transform_indices = @transform_2, window_bounds = array<i64: 1, 1, 128>}, {transform_indices = @transform_3, window_bounds = array<i64: 1, 64, 128>}]} {
    %c0 = arith.constant 0 : index
    %c0_0 = arith.constant 0 : index
    %c0_1 = arith.constant 0 : index
    %0 = vector.load %arg2[%c0, %c0_0, %c0_1] : memref<1x64x128xbf16, #tpu.memory_space<vmem>>, vector<1x64x128xbf16>
    %1 = vector.shape_cast %0 : vector<1x64x128xbf16> to vector<64x128xbf16>
    %2 = arith.extf %1 : vector<64x128xbf16> to vector<64x128xf32>
    %c0_2 = arith.constant 0 : index
    %c0_3 = arith.constant 0 : index
    %c0_4 = arith.constant 0 : index
    %3 = vector.load %arg3[%c0_2, %c0_3, %c0_4] : memref<1x1x128xf32, #tpu.memory_space<vmem>>, vector<1x1x128xf32>
    %4 = vector.shape_cast %3 : vector<1x1x128xf32> to vector<1x128xf32>
    %5 = vector.broadcast %4 : vector<1x128xf32> to vector<64x128xf32>
    %6 = arith.mulf %2, %5 : vector<64x128xf32>
    %c0_5 = arith.constant 0 : index
    %c0_6 = arith.constant 0 : index
    %c0_7 = arith.constant 0 : index
    %7 = vector.load %arg4[%c0_5, %c0_6, %c0_7] : memref<1x1x128xf32, #tpu.memory_space<vmem>>, vector<1x1x128xf32>
    %8 = vector.shape_cast %7 : vector<1x1x128xf32> to vector<1x128xf32>
    %9 = vector.broadcast %8 : vector<1x128xf32> to vector<64x128xf32>
    %10 = arith.addf %6, %9 : vector<64x128xf32>
    %cst = arith.constant 0.000000e+00 : f32
    %11 = vector.broadcast %cst : f32 to vector<64x128xf32>
    %12 = arith.maximumf %10, %11 : vector<64x128xf32>
    %c0_8 = arith.constant 0 : index
    %c0_9 = arith.constant 0 : index
    %c0_10 = arith.constant 0 : index
    %13 = vector.load %arg5[%c0_8, %c0_9, %c0_10] : memref<1x64x128xf32, #tpu.memory_space<vmem>>, vector<1x64x128xf32>
    %14 = vector.shape_cast %13 : vector<1x64x128xf32> to vector<64x128xf32>
    %15 = vector.shape_cast %12 : vector<64x128xf32> to vector<1x64x128xf32>
    tpu.vector_store %arg5[%c0_8, %c0_9, %c0_10], %15 {strides = array<i32>} : memref<1x64x128xf32, #tpu.memory_space<vmem>>, vector<1x64x128xf32>,
    return
  }
  func.func @transform_0(%arg0: i32, %arg1: i32) -> (i32, i32, i32) {
    %c0_i32 = arith.constant 0 : i32
    %c0_i32_0 = arith.constant 0 : i32
    return %arg0, %arg1, %c0_i32 : i32, i32, i32
  }
  func.func @transform_1(%arg0: i32, %arg1: i32) -> (i32, i32, i32) {
    %c0_i32 = arith.constant 0 : i32
    %c0_i32_0 = arith.constant 0 : i32
    %c0_i32_1 = arith.constant 0 : i32
    %c0_i32_2 = arith.constant 0 : i32
    return %c0_i32, %c0_i32_0, %c0_i32_1 : i32, i32, i32
  }
  func.func @transform_2(%arg0: i32, %arg1: i32) -> (i32, i32, i32) {
    %c0_i32 = arith.constant 0 : i32
    %c0_i32_0 = arith.constant 0 : i32
    %c0_i32_1 = arith.constant 0 : i32
    %c0_i32_2 = arith.constant 0 : i32
    return %c0_i32, %c0_i32_0, %c0_i32_1 : i32, i32, i32
  }
  func.func @transform_3(%arg0: i32, %arg1: i32) -> (i32, i32, i32) {
    %c0_i32 = arith.constant 0 : i32
    %c0_i32_0 = arith.constant 0 : i32
    return %arg0, %arg1, %c0_i32 : i32, i32, i32
  }
}

</mosaic_0001>

<bundles_post_ra>
// kernel: _lambda_.5
= control target key start
LH: loop header
LB: loop body
LE: loop exit
PB: predicated region body
PF: predicated region fallthrough
CT: control target
= control target key end

     0   :  { %s455_s12 = smov 0   ;;  %s457_s13 = smov 0   ;;  %s498_s0 = inlined_call_operand.vmem [shape: bf16[2,64,128], index: 0, kind: input, shape index: {}]   ;;  %s499_s1 = inlined_call_operand.vmem [shape: f32[1,1,128], index: 1, kind: input, shape index: {}]   ;;  %s500_s2 = inlined_call_operand.vmem [shape: f32[1,1,128], index: 2, kind: input, shape index: {}]   ;;  %s501_s3 = inlined_call_operand.vmem [shape: f32[2,64,128], index: 3, kind: output, shape index: {}]  }
   0x1   :  { %s459_s14 = smov 0  }
   0x2 LB: > { %s25_s15 = sadd.s32 1, %s429_s13  ;;  %p357_p0 = scmp.ge.s32.totalorder %s433_s14, 1  ;;  %s433_s14 = sphi %s459_s14, %s13_s14   ;;  %s429_s13 = sphi %s457_s13, %s503_s13   ;;  %s425_s12 = sphi %s455_s12, %s502_s12  }
   0x3   : > { %p27_p1 = scmp.ge.s32.totalorder %s25_s15, 2  ;;  %p158_p2 = scmp.lt.s32.totalorder %s433_s14, 3 }
   0x5   : > { %s505_s15 = smov (%p27_p1, %s25_s15), 0  ;;  %p159_p3 = pnand %p357_p0, %p158_p2 }
   0x6   : > { %p191_p4 = scmp.lt.s32.totalorder (!%p159_p3), %s425_s12, 1 }
   0x7   : > { %162 = sbr.rel (%p159_p3) target bundleno = 32 (0x20), region = 32 }
   0xc   : > { %s507_s12 = smov (!%p191_p4, %s425_s12), 1  ;;  %v409_v0 = vld [vmem:[%s499_s1] ss:$0 sm:$0xff] }
   0xd   : > { %s364_s16 = sshll.u32 %s507_s12, 5  ;;  %v410_v5 = vld [vmem:[%s500_s2] ss:$0 sm:$0xff]  ;;  %s365_s24 = sshll.u32 %s507_s12, 6 }
   0xe   : > { %s198_s19 = scalar_lea.vmem %s498_s0, %s364_s16  ;;  %s208_s27 = scalar_lea.vmem %s501_s3, %s365_s24 }
   0xf   : > { %v367_v1 = vld [vmem:[%s198_s19] sm:$0xff]   ;;  %v382_v2 = vld [vmem:[%s198_s19 + $0x8] sm:$0xff]   ;;  %v383_v3 = vld [vmem:[%s198_s19 + $0x10] sm:$0xff]  }
  0x10   : > { %v368_v4 = vunpack.c.l.bf16 %v367_v1  ;;  %v369_v6 = vunpack.c.h.bf16 %v367_v1  ;;  %v372_v7 = vunpack.c.l.bf16 %v382_v2  ;;  %v373_v8 = vunpack.c.h.bf16 %v382_v2  ;;  %v384_v9 = vld [vmem:[%s198_s19 + $0x18] sm:$0xff]  }
  0x11   : > { %v376_v10 = vunpack.c.l.bf16 %v383_v3  ;;  %v377_v11 = vunpack.c.h.bf16 %v383_v3  ;;  %v380_v12 = vunpack.c.l.bf16 %v384_v9  ;;  %v381_v13 = vunpack.c.h.bf16 %v384_v9 }
  0x12   : > { %v230_v14 = vmul.f32 %v409_v0, %v368_v4  ;;  %v231_v15 = vmul.f32 %v409_v0, %v369_v6  ;;  %v232_v16 = vmul.f32 %v409_v0, %v372_v7  ;;  %v233_v17 = vmul.f32 %v409_v0, %v373_v8 }
  0x13   : > { %v234_v18 = vmul.f32 %v409_v0, %v376_v10  ;;  %v235_v19 = vmul.f32 %v409_v0, %v377_v11  ;;  %v236_v20 = vmul.f32 %v409_v0, %v380_v12  ;;  %v237_v21 = vmul.f32 %v409_v0, %v381_v13 }
  0x14   : > { %v242_v22 = vadd.f32 %v410_v5, %v230_v14  ;;  %v243_v23 = vadd.f32 %v410_v5, %v231_v15  ;;  %v244_v24 = vadd.f32 %v410_v5, %v232_v16  ;;  %v245_v25 = vadd.f32 %v410_v5, %v233_v17 }
  0x15   : > { %v246_v26 = vadd.f32 %v410_v5, %v234_v18  ;;  %v247_v27 = vadd.f32 %v410_v5, %v235_v19  ;;  %v248_v31 = vadd.f32 %v410_v5, %v236_v20  ;;  %v249_v33 = vadd.f32 %v410_v5, %v237_v21 }
  0x16   : > { %v250_v28 = vmax.f32 %v242_v22, 0.0  ;;  %v251_v29 = vmax.f32 %v243_v23, 0.0  ;;  %v252_v30 = vmax.f32 %v244_v24, 0.0  ;;  %v253_v32 = vmax.f32 %v245_v25, 0.0 }
  0x17   : > { %v254_v34 = vmax.f32 %v246_v26, 0.0  ;;  %v255_v35 = vmax.f32 %v247_v27, 0.0  ;;  %v256_v36 = vmax.f32 %v248_v31, 0.0  ;;  %v257_v37 = vmax.f32 %v249_v33, 0.0 }
  0x18   : > { %258 = vst [vmem:[%s208_s27] sm:$0xff] %v250_v28 }
  0x19   : > { %259 = vst [vmem:[%s208_s27 + $0x8] sm:$0xff] %v251_v29 }
  0x1a   : > { %260 = vst [vmem:[%s208_s27 + $0x10] sm:$0xff] %v252_v30 }
  0x1b   : > { %261 = vst [vmem:[%s208_s27 + $0x18] sm:$0xff] %v253_v32 }
  0x1c   : > { %262 = vst [vmem:[%s208_s27 + $0x20] sm:$0xff] %v254_v34 }
  0x1d   : > { %263 = vst [vmem:[%s208_s27 + $0x28] sm:$0xff] %v255_v35 }
  0x1e   : > { %264 = vst [vmem:[%s208_s27 + $0x30] sm:$0xff] %v256_v36 }
  0x1f   : > { %265 = vst [vmem:[%s208_s27 + $0x38] sm:$0xff] %v257_v37 }
  0x20 PF: > { %s13_s14 = sadd.s32 1, %s433_s14   ;;  %s502_s12 = smov %s429_s13 }
  0x21   : > { %p10_p5 = scmp.ge.s32.totalorder %s13_s14, 4   ;;  %s503_s13 = smov %s505_s15 }
  0x23   :  { %12 = sbr.rel (!%p10_p5) target bundleno = 2 (0x2), region = 62 }

// kernel: _lambda_.3
= control target key start
LH: loop header
LB: loop body
LE: loop exit
PB: predicated region body
PF: predicated region fallthrough
CT: control target
= control target key end

     0   :  { %s723_s12 = smov 0   ;;  %s725_s13 = smov 0   ;;  %s791_s0 = inlined_call_operand.vmem [shape: bf16[2,64,128], index: 0, kind: input, shape index: {}]   ;;  %s792_s1 = inlined_call_operand.vmem [shape: bf16[128,128], index: 1, kind: input, shape index: {}]   ;;  %s793_s2 = inlined_call_operand.vmem [shape: bf16[2,64,128], index: 2, kind: output, shape index: {0}]   ;;  %s794_s3 = inlined_call_operand.vmem [shape: f32[2,1,2,128], index: 3, kind: output, shape index: {1}]  }
   0x1   :  { %s727_s14 = smov 0  }
   0x2 LB: > { %s26_s15 = sadd.s32 1, %s697_s13  ;;  %p538_p0 = scmp.ge.s32.totalorder %s701_s14, 1  ;;  %s701_s14 = sphi %s727_s14, %s14_s14   ;;  %s697_s13 = sphi %s725_s13, %s796_s13   ;;  %s693_s12 = sphi %s723_s12, %s795_s12  }
   0x3   : > { %p28_p1 = scmp.ge.s32.totalorder %s26_s15, 2  ;;  %p163_p2 = scmp.lt.s32.totalorder %s701_s14, 3 }
   0x5   : > { %s798_s15 = smov (%p28_p1, %s26_s15), 0  ;;  %p164_p3 = pnand %p538_p0, %p163_p2 }
   0x6   : > { %p203_p4 = scmp.lt.s32.totalorder (!%p164_p3), %s693_s12, 1 }
   0x7   : > { %167 = sbr.rel (%p164_p3) target bundleno = 207 (0xcf), region = 28 }
   0xc   : > { %v607_v0 = vld [vmem:[%s792_s1 + $0x38] sm:$0xff]  ;;  %v606_v1 = vld [vmem:[%s792_s1 + $0x30] sm:$0xff]  ;;  %v605_v2 = vld [vmem:[%s792_s1 + $0x28] sm:$0xff]  ;;  %s800_s12 = smov (!%p203_p4, %s693_s12), 1 }
   0xd   : > { %325 = vmatpush.bf16.msra.mxu0 %v607_v0  ;;  %631 = vmatpush.bf16.msra.mxu1 %v607_v0  ;;  %v604_v3 = vld [vmem:[%s792_s1 + $0x20] sm:$0xff]  ;;  %v603_v4 = vld [vmem:[%s792_s1 + $0x18] sm:$0xff]  ;;  %v602_v5 = vld [vmem:[%s792_s1 + $0x10] sm:$0xff]  ;;  %s594_s30 = sshll.u32 %s800_s12, 5  ;;  %s543_s16 = sshll.u32 %s800_s12, 1 }
   0xe   : > { %632 = vmatpush.bf16.msra.mxu2 %v607_v0  ;;  %633 = vmatpush.bf16.msra.mxu3 %v607_v0  ;;  %v601_v6 = vld [vmem:[%s792_s1 + $0x8] sm:$0xff]  ;;  %v600_v7 = vld [vmem:[%s792_s1] sm:$0xff]  ;;  %s210_s8 = scalar_lea.vmem %s791_s0, %s594_s30  ;;  %s220_s11 = scalar_lea.vmem %s793_s2, %s594_s30 }
   0xf   : > { %v596_v8 = vld [vmem:[%s210_s8] sm:$0xff]  ;;  %v597_v9 = vld [vmem:[%s210_s8 + $0x8] sm:$0xff]  ;;  %v598_v10 = vld [vmem:[%s210_s8 + $0x10] sm:$0xff]  ;;  %s228_s19 = scalar_lea.vmem %s794_s3, %s543_s16 }
  0x10   : > { %v599_v11 = vld [vmem:[%s210_s8 + $0x18] sm:$0xff] }
  0x11   : > { %326 = vmatpush.bf16.msra.mxu0 %v606_v1  ;;  %634 = vmatpush.bf16.msra.mxu1 %v606_v1 }
  0x12   : > { %635 = vmatpush.bf16.msra.mxu2 %v606_v1  ;;  %636 = vmatpush.bf16.msra.mxu3 %v606_v1 }
  0x15   : > { %327 = vmatpush.bf16.msra.mxu0 %v605_v2  ;;  %637 = vmatpush.bf16.msra.mxu1 %v605_v2 }
  0x16   : > { %638 = vmatpush.bf16.msra.mxu2 %v605_v2  ;;  %639 = vmatpush.bf16.msra.mxu3 %v605_v2 }
  0x19   : > { %328 = vmatpush.bf16.msra.mxu0 %v604_v3  ;;  %640 = vmatpush.bf16.msra.mxu1 %v604_v3 }
  0x1a   : > { %641 = vmatpush.bf16.msra.mxu2 %v604_v3  ;;  %642 = vmatpush.bf16.msra.mxu3 %v604_v3 }
  0x1d   : > { %329 = vmatpush.bf16.msra.mxu0 %v603_v4  ;;  %643 = vmatpush.bf16.msra.mxu1 %v603_v4 }
  0x1e   : > { %644 = vmatpush.bf16.msra.mxu2 %v603_v4  ;;  %645 = vmatpush.bf16.msra.mxu3 %v603_v4 }
  0x21   : > { %330 = vmatpush.bf16.msra.mxu0 %v602_v5  ;;  %646 = vmatpush.bf16.msra.mxu1 %v602_v5 }
  0x22   : > { %647 = vmatpush.bf16.msra.mxu2 %v602_v5  ;;  %648 = vmatpush.bf16.msra.mxu3 %v602_v5 }
  0x25   : > { %331 = vmatpush.bf16.msra.mxu0 %v601_v6  ;;  %649 = vmatpush.bf16.msra.mxu1 %v601_v6 }
  0x26   : > { %650 = vmatpush.bf16.msra.mxu2 %v601_v6  ;;  %651 = vmatpush.bf16.msra.mxu3 %v601_v6 }
  0x29   : > { %332 = vmatpush.bf16.msra.mxu0 %v600_v7  ;;  %652 = vmatpush.bf16.msra.mxu1 %v600_v7 }
  0x2a   : > { %653 = vmatpush.bf16.msra.mxu2 %v600_v7  ;;  %654 = vmatpush.bf16.msra.mxu3 %v600_v7 }
  0x2c   : > { %333 = vmatmul.bf16.vlgmr.msra.gmra.mxu0 %v596_v8  ;;  %338 = vmatmul.bf16.vlgmr.msra.gmra.mxu1 %v597_v9 }
  0x2d   : > { %343 = vmatmul.bf16.vlgmr.msra.gmra.mxu2 %v598_v10  ;;  %348 = vmatmul.bf16.vlgmr.msra.gmra.mxu3 %v599_v11 }
  0xa9   : > { %v334_v12 = vpop.f32.mrf.mxu0  ;;  %v339_v13 = vpop.f32.mrf.mxu1 }
  0xaa   : > { %v384_v16 = vmul.f32 %v334_v12, %v334_v12  ;;  %v386_v23 = vmul.f32 %v339_v13, %v339_v13 }
  0xb0   : > { %v344_v14 = vpop.f32.mrf.mxu2  ;;  %v349_v15 = vpop.f32.mrf.mxu3 }
  0xb1   : > { %v336_v17 = vpop.f32.mrf.mxu0  ;;  %v341_v18 = vpop.f32.mrf.mxu1  ;;  %v388_v29 = vmul.f32 %v344_v14, %v344_v14  ;;  %v390_v39 = vmul.f32 %v349_v15, %v349_v15 }
  0xb2   : > { %v611_v19 = vpack.c.bf16 %v336_v17, %v334_v12  ;;  %v370_v20 = vadd.f32 %v336_v17, %v334_v12  ;;  %v385_v21 = vmul.f32 %v336_v17, %v336_v17  ;;  %v616_v22 = vpack.c.bf16 %v341_v18, %v339_v13 }
  0xb3   : > { %v387_v27 = vmul.f32 %v341_v18, %v341_v18 }
  0xb4   : > { %612 = vst [vmem:[%s220_s11] sm:$0xff] %v611_v19   ;;  %v392_v24 = vadd.f32 %v385_v21, %v384_v16  ;;  %v371_v25 = vadd.f32 %v370_v20, %v339_v13 }
  0xb5   : > { %628 = vst [vmem:[%s220_s11 + $0x8] sm:$0xff] %v616_v22  }
  0xb6   : > { %v372_v26 = vadd.f32 %v371_v25, %v341_v18  ;;  %v393_v28 = vadd.f32 %v392_v24, %v386_v23 }
  0xb8   : > { %v394_v30 = vadd.f32 %v393_v28, %v387_v27  ;;  %v346_v31 = vpop.f32.mrf.mxu2  ;;  %v373_v32 = vadd.f32 %v372_v26, %v344_v14  ;;  %v351_v33 = vpop.f32.mrf.mxu3 }
  0xb9   : > { %v621_v34 = vpack.c.bf16 %v346_v31, %v344_v14  ;;  %v626_v35 = vpack.c.bf16 %v351_v33, %v349_v15  ;;  %v389_v37 = vmul.f32 %v346_v31, %v346_v31  ;;  %v391_v43 = vmul.f32 %v351_v33, %v351_v33 }
  0xba   : > { %v374_v36 = vadd.f32 %v373_v32, %v346_v31  ;;  %v395_v38 = vadd.f32 %v394_v30, %v388_v29 }
  0xbb   : > { %629 = vst [vmem:[%s220_s11 + $0x10] sm:$0xff] %v621_v34  }
  0xbc   : > { %v396_v40 = vadd.f32 %v395_v38, %v389_v37  ;;  %630 = vst [vmem:[%s220_s11 + $0x18] sm:$0xff] %v626_v35   ;;  %v375_v41 = vadd.f32 %v374_v36, %v349_v15 }
  0xbe   : > { %v376_v42 = vadd.f32 %v375_v41, %v351_v33  ;;  %v397_v44 = vadd.f32 %v396_v40, %v390_v39 }
  0xc0   : > { %v377_v45 = vrot.slane %v376_v42, 4  ;;  %v398_v46 = vadd.f32 %v397_v44, %v391_v43 }
  0xc2   : > { %v378_v47 = vadd.f32 %v377_v45, %v376_v42  ;;  %v399_v48 = vrot.slane %v398_v46, 4 }
  0xc4   : > { %v379_v49 = vrot.slane %v378_v47, 2  ;;  %v400_v50 = vadd.f32 %v399_v48, %v398_v46 }
  0xc6   : > { %v380_v51 = vadd.f32 %v379_v49, %v378_v47  ;;  %v401_v52 = vrot.slane %v400_v50, 2 }
  0xc8   : > { %v381_v53 = vrot.slane %v380_v51, 1  ;;  %v402_v54 = vadd.f32 %v401_v52, %v400_v50 }
  0xca   : > { %v382_v55 = vadd.f32 %v381_v53, %v380_v51  ;;  %v403_v56 = vrot.slane %v402_v54, 1 }
  0xcc   : > { %383 = vst [vmem:[%s228_s19] sm:$0x1] %v382_v55  ;;  %v404_v57 = vadd.f32 %v403_v56, %v402_v54 }
  0xce   : > { %405 = vst [vmem:[%s228_s19 + $0x1] sm:$0x1] %v404_v57 }
  0xcf PF: > { %s14_s14 = sadd.s32 1, %s701_s14   ;;  %s795_s12 = smov %s697_s13 }
  0xd0   : > { %p11_p5 = scmp.ge.s32.totalorder %s14_s14, 4   ;;  %s796_s13 = smov %s798_s15 }
  0xd2   :  { %13 = sbr.rel (!%p11_p5) target bundleno = 2 (0x2), region = 70 }

// kernel: _lambda_.4
= control target key start
LH: loop header
LB: loop body
LE: loop exit
PB: predicated region body
PF: predicated region fallthrough
CT: control target
= control target key end

     0   :  { %s3567_s21 = smov 0   ;;  %s3569_s22 = smov 0   ;;  %s4867_s0 = inlined_call_operand.vmem [shape: bf16[2,10,10,128], index: 0, kind: input, shape index: {}]   ;;  %s4868_s1 = inlined_call_operand.vmem [shape: f32[1,1,128], index: 1, kind: input, shape index: {}]   ;;  %s4869_s2 = inlined_call_operand.vmem [shape: f32[1,1,128], index: 2, kind: input, shape index: {}]   ;;  %s4870_s3 = inlined_call_operand.vmem [shape: f32[1,10,10,1], index: 3, kind: input, shape index: {}]   ;;  %s4871_s4 = inlined_call_operand.vmem [shape: bf16[3,3,128,128], index: 4, kind: input, shape index: {}]   ;;  %s4872_s5 = inlined_call_operand.vmem [shape: bf16[2,64,128], index: 5, kind: output, shape index: {0}]   ;;  %s4873_s6 = inlined_call_operand.vmem [shape: f32[2,1,2,128], index: 6, kind: output, shape index: {1}]  }
   0x1   :  { %s3571_s23 = smov 0  }
   0x2 LB: > { %s29_s24 = sadd.s32 1, %s3525_s22  ;;  %p2825_p0 = scmp.ge.s32.totalorder %s3529_s23, 1  ;;  %s3529_s23 = sphi %s3571_s23, %s17_s23   ;;  %s3525_s22 = sphi %s3569_s22, %s4893_s22   ;;  %s3521_s21 = sphi %s3567_s21, %s4892_s21  }
   0x3   : > { %p31_p1 = scmp.ge.s32.totalorder %s29_s24, 2  ;;  %p231_p2 = scmp.lt.s32.totalorder %s3529_s23, 3 }
   0x5   : > { %s4895_s24 = smov (%p31_p1, %s29_s24), 0  ;;  %p232_p3 = pnand %p2825_p0, %p231_p2 }
   0x6   : > { %p272_p4 = scmp.lt.s32.totalorder (!%p232_p3), %s3521_s21, 1 }
   0x7   : > { %235 = sbr.rel (%p232_p3) target bundleno = 482 (0x1e2), region = 40 }
   0xc   : > { %v3590_v0 = vld [vmem:[%s4870_s3 + $0x40] sm:$0xff]  ;;  %v3531_v3 = vmov 0   ;;  %v3605_v4 = vld [vmem:[%s4870_s3 + $0x50] sm:$0xff]  ;;  %s4897_s21 = smov (!%p272_p4, %s3521_s21), 1  ;;  %v3376_v29 = vld [vmem:[%s4871_s4 + $0x78] sm:$0xff]  ;;  %vm592_vm0 = vcmask 1046528  }
   0xd   : > { %v3595_v1 = vld [vmem:[%s4870_s3 + $0x20] sm:$0xff]  ;;  %3500 = vset.pattern.permute.xlu2 %v3531_v3  ;;  %3499 = vset.pattern.permute.xlu1 %v3531_v3  ;;  %v3610_v5 = vld [vmem:[%s4870_s3 + $0x30] sm:$0xff]  ;;  %s3472_s9 = smul.u32 80, %s4897_s21  ;;  %v3374_v38 = vld [vmem:[%s4871_s4 + $0x68] sm:$0xff]  ;;  %vm928_vm1 = vcmask 1045504   ;;  %s2829_s17 = sshll.u32 %s4897_s21, 1 }
   0xe   : > { %v310_v2 = vld [vmem:[%s4870_s3] sm:$0xff]  ;;  %3498 = vset.pattern.permute.xlu0 %v3531_v3  ;;  %378 = vperm.xlu2 %3500, %v3590_v0   ;;  %v311_v6 = vld [vmem:[%s4870_s3 + $0x10] sm:$0xff]  ;;  %v3372_v46 = vld [vmem:[%s4871_s4 + $0x58] sm:$0xff]  ;;  %s293_s20 = scalar_lea.vmem %s4873_s6, %s2829_s17 }
   0xf   : > { %368 = vperm.xlu1 %3499, %v3595_v1   ;;  %358 = vperm.xlu0 %3498, %v310_v2   ;;  %v440_v7 = vld [vmem:[%s4870_s3 + $0x1] sm:$0xff]  ;;  %v3623_v8 = vld [vmem:[%s4870_s3 + $0x70] sm:$0xff]  ;;  %s3725_s12 = scalar_lea.vmem %s4867_s0, %s3472_s9  ;;  %v3738_v30 = vld [vmem:[%s4868_s1] ss:$0 sm:$0xff] }
  0x10   : > { %v3628_v9 = vld [vmem:[%s4870_s3 + $0x60] sm:$0xff]  ;;  %v3635_v10 = vld [vmem:[%s4870_s3 + $0x31] sm:$0xff]  ;;  %v305_v26 = vld [vmem:[%s3725_s12 + $0x28] sm:$0xf]  ;;  %694 = vmatpush.bf16.msra.mxu0 %v3376_v29  ;;  %3456 = vmatpush.bf16.msra.mxu1 %v3376_v29 }
  0x11   : > { %v3640_v11 = vld [vmem:[%s4870_s3 + $0x21] sm:$0xff]  ;;  %v441_v12 = vld [vmem:[%s4870_s3 + $0x11] sm:$0xff]  ;;  %v323_v28 = vunpack.c.l.bf16 %v305_v26  ;;  %v3751_v34 = vld [vmem:[%s4869_s2] ss:$0 sm:$0xff] }
  0x12   : > { %v3650_v13 = vld [vmem:[%s4870_s3 + $0x61] sm:$0xff]  ;;  %v3655_v14 = vld [vmem:[%s4870_s3 + $0x51] sm:$0xff] }
  0x13   : > { %v3660_v15 = vld [vmem:[%s4870_s3 + $0x41] sm:$0xff]  ;;  %v3668_v16 = vld [vmem:[%s4870_s3 + $0x12] sm:$0xff]  ;;  %v334_v32 = vmul.f32 %v3738_v30, %v323_v28 }
  0x14   : > { %v808_v17 = vld [vmem:[%s4870_s3 + $0x2] sm:$0xff]  ;;  %v3676_v18 = vld [vmem:[%s4870_s3 + $0x71] sm:$0xff] }
  0x15   : > { %v3683_v19 = vld [vmem:[%s4870_s3 + $0x32] sm:$0xff]  ;;  %v3688_v20 = vld [vmem:[%s4870_s3 + $0x22] sm:$0xff]  ;;  %v345_v37 = vadd.f32 %v3751_v34, %v334_v32 }
  0x16   : > { %383 = vperm.xlu2 %3500, %v3605_v4   ;;  %v3695_v21 = vld [vmem:[%s4870_s3 + $0x52] sm:$0xff]  ;;  %v3700_v22 = vld [vmem:[%s4870_s3 + $0x42] sm:$0xff] }
  0x17   : > { %373 = vperm.xlu1 %3499, %v3610_v5   ;;  %363 = vperm.xlu0 %3498, %v311_v6   ;;  %v815_v23 = vld [vmem:[%s4870_s3 + $0x72] sm:$0xff]  ;;  %v3714_v24 = vld [vmem:[%s4870_s3 + $0x62] sm:$0xff]  ;;  %v353_v41 = vmax.f32 %v345_v37, 0.0 }
  0x18   : > { %v304_v25 = vld [vmem:[%s3725_s12 + $0x20] sm:$0xf]  ;;  %v3375_v33 = vld [vmem:[%s4871_s4 + $0x70] sm:$0xff]  ;;  %v3384_v47 = vld [vmem:[%s4871_s4 + $0xb8] sm:$0xff] }
  0x19   : > { %v322_v27 = vunpack.c.l.bf16 %v304_v25  ;;  %695 = vmatpush.bf16.msra.mxu0 %v3375_v33  ;;  %3457 = vmatpush.bf16.msra.mxu1 %v3375_v33  ;;  %v3761_v39 = vld [vmem:[%s4870_s3 + $0x80] sm:$0xff]  ;;  %v3371_v49 = vld [vmem:[%s4871_s4 + $0x50] sm:$0xff]  ;;  %v303_v52 = vld [vmem:[%s3725_s12 + $0x18] sm:$0xf] }
  0x1a   : > { %v3373_v42 = vld [vmem:[%s4871_s4 + $0x60] sm:$0xff]  ;;  %1030 = vmatpush.bf16.msra.mxu2 %v3384_v47  ;;  %v3383_v50 = vld [vmem:[%s4871_s4 + $0xb0] sm:$0xff]  ;;  %v321_v55 = vunpack.c.l.bf16 %v303_v52  ;;  %v3370_v56 = vld [vmem:[%s4871_s4 + $0x48] sm:$0xff] }
  0x1b   : > { %v333_v31 = vmul.f32 %v3738_v30, %v322_v27  ;;  %v302_v51 = vld [vmem:[%s3725_s12 + $0x10] sm:$0xf]  ;;  %v3382_v57 = vld [vmem:[%s4871_s4 + $0xa8] sm:$0xff]  ;;  %v424_v58 = vld [vmem:[%s3725_s12] sm:$0xf] }
  0x1c   : > { %v320_v54 = vunpack.c.l.bf16 %v302_v51  ;;  %v3392_v59 = vld [vmem:[%s4871_s4 + $0xf8] sm:$0xff]  ;;  %v425_v60 = vld [vmem:[%s3725_s12 + $0x4] sm:$0x1]  ;;  %v332_v62 = vmul.f32 %v3738_v30, %v321_v55  ;;  %v306_v3 = vld [vmem:[%s3725_s12 + $0x30] sm:$0xf] }
  0x1d   : > { %v344_v36 = vadd.f32 %v3751_v34, %v333_v31  ;;  %696 = vmatpush.bf16.msra.mxu0 %v3374_v38  ;;  %3458 = vmatpush.bf16.msra.mxu1 %v3374_v38  ;;  %v3369_v63 = vld [vmem:[%s4871_s4 + $0x40] sm:$0xff]  ;;  %v307_v2 = vld [vmem:[%s3725_s12 + $0x38] sm:$0xf]  ;;  %v324_v28 = vunpack.c.l.bf16 %v306_v3 }
  0x1e   : > { %514 = vperm.xlu2 %3500, %v440_v7   ;;  %1031 = vmatpush.bf16.msra.mxu2 %v3383_v50  ;;  %v331_v61 = vmul.f32 %v3738_v30, %v320_v54  ;;  %v300_v7 = vld [vmem:[%s3725_s12] sm:$0xf]  ;;  %v343_v26 = vadd.f32 %v3751_v34, %v332_v62  ;;  %v325_v27 = vunpack.c.l.bf16 %v307_v2  ;;  %v3380_v29 = vld [vmem:[%s4871_s4 + $0x98] sm:$0xff]  ;;  %v3379_v50 = vld [vmem:[%s4871_s4 + $0x90] sm:$0xff] }
  0x1f   : > { %393 = vperm.xlu1 %3499, %v3623_v8   ;;  %388 = vperm.xlu0 %3498, %v3628_v9   ;;  %v352_v40 = vmax.f32 %v344_v36, 0.0  ;;  %v318_v32 = vunpack.c.l.bf16 %v300_v7  ;;  %v301_v36 = vld [vmem:[%s3725_s12 + $0x8] sm:$0xf] }
  0x20   : > { %1238 = vmatpush.bf16.msra.mxu3 %v3392_v59  ;;  %v342_v25 = vadd.f32 %v3751_v34, %v331_v61  ;;  %v336_v47 = vmul.f32 %v3738_v30, %v325_v27 }
  0x21   : > { %697 = vmatpush.bf16.msra.mxu0 %v3373_v42  ;;  %3459 = vmatpush.bf16.msra.mxu1 %v3373_v42  ;;  %v329_v52 = vmul.f32 %v3738_v30, %v318_v32 }
  0x22   : > { %1032 = vmatpush.bf16.msra.mxu2 %v3382_v57  ;;  %v350_v42 = vmax.f32 %v342_v25, 0.0  ;;  %v427_v57 = vld [vmem:[%s3725_s12 + $0xc] sm:$0x1] }
  0x25   : > { %698 = vmatpush.bf16.msra.mxu0 %v3372_v46  ;;  %3460 = vmatpush.bf16.msra.mxu1 %v3372_v46  ;;  %v351_v46 = vmax.f32 %v343_v26, 0.0  ;;  %v451_v26 = vunpack.c.l.bf16 %v427_v57 }
  0x26   : > { %526 = vperm.xlu2 %3500, %v3635_v10  }
  0x27   : > { %522 = vperm.xlu1 %3499, %v3640_v11   ;;  %518 = vperm.xlu0 %3498, %v441_v12  }
  0x29   : > { %699 = vmatpush.bf16.msra.mxu0 %v3371_v49  ;;  %3461 = vmatpush.bf16.msra.mxu1 %v3371_v49  ;;  %v335_v49 = vmul.f32 %v3738_v30, %v324_v28 }
  0x2b   : > { %v346_v7 = vadd.f32 %v3751_v34, %v335_v49 }
  0x2d   : > { %700 = vmatpush.bf16.msra.mxu0 %v3370_v56  ;;  %3462 = vmatpush.bf16.msra.mxu1 %v3370_v56 }
  0x2e   : > { %538 = vperm.xlu2 %3500, %v3650_v13  }
  0x2f   : > { %534 = vperm.xlu1 %3499, %v3655_v14   ;;  %530 = vperm.xlu0 %3498, %v3660_v15  }
  0x31   : > { %701 = vmatpush.bf16.msra.mxu0 %v3369_v63  ;;  %3463 = vmatpush.bf16.msra.mxu1 %v3369_v63  ;;  %v426_v63 = vld [vmem:[%s3725_s12 + $0x8] sm:$0xf] }
  0x36   : > { %854 = vperm.xlu2 %3500, %v3668_v16  }
  0x37   : > { %850 = vperm.xlu1 %3499, %v808_v17   ;;  %542 = vperm.xlu0 %3498, %v3676_v18  }
  0x3e   : > { %1123 = vperm.xlu2 %3500, %v311_v6   ;;  %v430_v6 = vld [vmem:[%s3725_s12 + $0x18] sm:$0xf] }
  0x3f   : > { %862 = vperm.xlu1 %3499, %v3683_v19   ;;  %858 = vperm.xlu0 %3498, %v3688_v20   ;;  %v454_v31 = vunpack.c.l.bf16 %v430_v6  ;;  %v347_v6 = vadd.f32 %v3751_v34, %v336_v47  ;;  %v3399_v47 = vld [vmem:[%s4871_s4 + $0x130] sm:$0xff] }
  0x41   : > { %v470_v51 = vmul.f32 %v3738_v30, %v454_v31 }
  0x46   : > { %870 = vperm.xlu2 %3500, %v3695_v21  }
  0x47   : > { %866 = vperm.xlu1 %3499, %v3700_v22   ;;  %1128 = vperm.xlu0 %3498, %v3595_v1  }
  0x4e   : > { %1133 = vperm.xlu2 %3500, %v3610_v5  }
  0x4f   : > { %1369 = vperm.xlu1 %3499, %v3640_v11   ;;  %1365 = vperm.xlu0 %3498, %v441_v12   ;;  %v431_v12 = vld [vmem:[%s3725_s12 + $0x1c] sm:$0x1] }
  0x50   : > { %v455_v33 = vunpack.c.l.bf16 %v431_v12  ;;  %v3400_v12 = vld [vmem:[%s4871_s4 + $0x138] sm:$0xff] }
  0x51   : > { %1544 = vmatpush.bf16.msrb.mxu0 %v3400_v12  ;;  %v3387_v12 = vld [vmem:[%s4871_s4 + $0xd0] sm:$0xff] }
  0x52   : > { %v471_v54 = vmul.f32 %v3738_v30, %v455_v33  ;;  %v2958_v33 = vld [vmem:[%s3725_s12 + $0x8] sm:$0xf] }
  0x54   : > { %v3896_v27 = vadd.f32 %v3751_v34, %v471_v54 }
  0x55   : > { %1545 = vmatpush.bf16.msrb.mxu0 %v3399_v47 }
  0x56   : > { %878 = vperm.xlu2 %3500, %v815_v23  }
  0x57   : > { %874 = vperm.xlu1 %3499, %v3714_v24   ;;  %1138 = vperm.xlu0 %3498, %v3590_v0  }
  0x5e   : > { %1143 = vperm.xlu2 %3500, %v3605_v4  }
  0x5f   : > { %1377 = vperm.xlu1 %3499, %v3660_v15   ;;  %1373 = vperm.xlu0 %3498, %v3635_v10  }
  0x66   : > { %1385 = vperm.xlu2 %3500, %v3650_v13  }
  0x67   : > { %1381 = vperm.xlu1 %3499, %v3655_v14   ;;  %1148 = vperm.xlu0 %3498, %v3628_v9  }
  0x68   : > { %v379_v35 = vpop.permute.xlu2 %378 }
  0x69   : > { %v3769_v44 = vmul.f32 %v379_v35, %v352_v40  ;;  %v3836_v35 = vld [vmem:[%s4870_s3 + $0x81] sm:$0xff]  ;;  %v436_v40 = vld [vmem:[%s3725_s12 + $0x30] sm:$0xf] }
  0x6a   : > { %v460_v56 = vunpack.c.l.bf16 %v436_v40 }
  0x6c   : > { %v476_v28 = vmul.f32 %v3738_v30, %v460_v56  ;;  %v4875_v56 = vmax.f32 %v3896_v27, 0.0 }
  0x6e   : > { %1903 = vperm.xlu2 %3500, %v3595_v1   ;;  %v3381_v1 = vld [vmem:[%s4871_s4 + $0xa0] sm:$0xff]  ;;  %v3930_v57 = vadd.f32 %v3751_v34, %v476_v28 }
  0x6f   : > { %1158 = vperm.xlu1 %3499, %v3761_v39   ;;  %1153 = vperm.xlu0 %3498, %v3623_v8  }
  0x70   : > { %v384_v43 = vpop.permute.xlu2 %383  ;;  %1033 = vmatpush.bf16.msra.mxu2 %v3381_v1  ;;  %v3389_v1 = vld [vmem:[%s4871_s4 + $0xe0] sm:$0xff] }
  0x71   : > { %v3771_v45 = vmul.f32 %v384_v43, %v353_v41  ;;  %v3390_v41 = vld [vmem:[%s4871_s4 + $0xe8] sm:$0xff]  ;;  %v437_v43 = vld [vmem:[%s3725_s12 + $0x34] sm:$0x1] }
  0x74   : > { %1034 = vmatpush.bf16.msra.mxu2 %v3380_v29  ;;  %v450_v29 = vunpack.c.l.bf16 %v426_v63 }
  0x76   : > { %2149 = vperm.xlu2 %3500, %v3635_v10   ;;  %v448_v10 = vunpack.c.l.bf16 %v424_v58 }
  0x77   : > { %2145 = vperm.xlu1 %3499, %v3640_v11   ;;  %1908 = vperm.xlu0 %3498, %v3610_v5   ;;  %v449_v11 = vunpack.c.l.bf16 %v425_v60  ;;  %v461_v60 = vunpack.c.l.bf16 %v437_v43  ;;  %v3367_v43 = vld [vmem:[%s4871_s4 + $0x30] sm:$0xff] }
  0x78   : > { %v3792_v53 = vpop.permute.xlu2 %514  ;;  %v464_v37 = vmul.f32 %v3738_v30, %v448_v10  ;;  %1035 = vmatpush.bf16.msra.mxu2 %v3379_v50  ;;  %v3368_v10 = vld [vmem:[%s4871_s4 + $0x38] sm:$0xff] }
  0x79   : > { %v465_v38 = vmul.f32 %v3738_v30, %v449_v11  ;;  %v3378_v11 = vld [vmem:[%s4871_s4 + $0x88] sm:$0xff]  ;;  %771 = vmatpush.bf16.msrb.mxu1 %v3368_v10  ;;  %v477_v40 = vmul.f32 %v3738_v30, %v461_v60  ;;  %v466_v60 = vmul.f32 %v3738_v30, %v450_v29  ;;  %v432_v10 = vld [vmem:[%s3725_s12 + $0x20] sm:$0xf] }
  0x7a   : > { %v3861_v58 = vadd.f32 %v3751_v34, %v464_v37  ;;  %v3388_v37 = vld [vmem:[%s4871_s4 + $0xd8] sm:$0xff]  ;;  %v3366_v29 = vld [vmem:[%s4871_s4 + $0x28] sm:$0xff] }
  0x7b   : > { %v3864_v59 = vadd.f32 %v3751_v34, %v465_v38 }
  0x7c   : > { %1036 = vmatpush.bf16.msra.mxu2 %v3378_v11  ;;  %v496_v38 = vmax.f32 %v3861_v58, 0.0  ;;  %v433_v11 = vld [vmem:[%s3725_s12 + $0x24] sm:$0x1] }
  0x7d   : > { %v4874_v49 = vmax.f32 %v3864_v59, 0.0  ;;  %772 = vmatpush.bf16.msrb.mxu1 %v3367_v43  ;;  %v456_v43 = vunpack.c.l.bf16 %v432_v10 }
  0x7e   : > { %1389 = vperm.xlu2 %3500, %v3676_v18  }
  0x7f   : > { %1635 = vperm.xlu1 %3499, %v3688_v20   ;;  %1631 = vperm.xlu0 %3498, %v3668_v16   ;;  %v3391_v16 = vld [vmem:[%s4871_s4 + $0xf0] sm:$0xff] }
  0x80   : > { %v3818_v5 = vpop.permute.xlu2 %526  ;;  %1239 = vmatpush.bf16.msra.mxu3 %v3391_v16  ;;  %v3892_v16 = vadd.f32 %v3751_v34, %v329_v52  ;;  %v467_v52 = vmul.f32 %v3738_v30, %v451_v26 }
  0x81   : > { %v369_v17 = vpop.permute.xlu1 %368  ;;  %v3823_v23 = vpop.permute.xlu0 %358  ;;  %773 = vmatpush.bf16.msrb.mxu1 %v3366_v29 }
  0x82   : > { %v3873_v2 = vmul.f32 %v369_v17, %v350_v42  ;;  %v3889_v17 = vadd.f32 %v3751_v34, %v470_v51  ;;  %v354_v42 = vmax.f32 %v346_v7, 0.0 }
  0x84   : > { %1240 = vmatpush.bf16.msra.mxu3 %v3390_v41  ;;  %v355_v41 = vmax.f32 %v347_v6, 0.0  ;;  %v502_v54 = vmax.f32 %v3889_v17, 0.0  ;;  %v1089_v6 = vunpack.c.l.bf16 %v2958_v33  ;;  %v3364_v33 = vld [vmem:[%s4871_s4 + $0x18] sm:$0xff] }
  0x86   : > { %1918 = vperm.xlu2 %3500, %v3605_v4   ;;  %v319_v4 = vunpack.c.l.bf16 %v301_v36  ;;  %v428_v36 = vld [vmem:[%s3725_s12 + $0x10] sm:$0xf] }
  0x87   : > { %1913 = vperm.xlu1 %3499, %v3590_v0   ;;  %1393 = vperm.xlu0 %3498, %v3836_v35   ;;  %v801_v0 = vld [vmem:[%s3725_s12 + $0x8] sm:$0xe]  ;;  %v452_v7 = vunpack.c.l.bf16 %v428_v36  ;;  %v3959_v36 = vadd.f32 %v3751_v34, %v467_v52  ;;  %v1097_v52 = vmul.f32 %v3738_v30, %v1089_v6  ;;  %v3365_v6 = vld [vmem:[%s4871_s4 + $0x20] sm:$0xff] }
  0x88   : > { %v3857_v55 = vpop.permute.xlu2 %538  ;;  %v330_v25 = vmul.f32 %v3738_v30, %v319_v4  ;;  %1241 = vmatpush.bf16.msra.mxu3 %v3389_v1  ;;  %v817_v32 = vunpack.c.l.bf16 %v801_v0  ;;  %v429_v4 = vld [vmem:[%s3725_s12 + $0x14] sm:$0x1]  ;;  %774 = vmatpush.bf16.msrb.mxu1 %v3365_v6 }
  0x89   : > { %v374_v61 = vpop.permute.xlu1 %373  ;;  %v3866_v62 = vpop.permute.xlu0 %363  ;;  %v453_v28 = vunpack.c.l.bf16 %v429_v4  ;;  %v4003_v47 = vadd.f32 %v3751_v34, %v1097_v52  ;;  %v439_v52 = vld [vmem:[%s3725_s12 + $0x3c] sm:$0x1] }
  0x8a   : > { %v3875_v3 = vmul.f32 %v374_v61, %v351_v46  ;;  %v3377_v46 = vld [vmem:[%s4871_s4 + $0x80] sm:$0xff]  ;;  %v3921_v51 = vadd.f32 %v3751_v34, %v330_v25  ;;  %v435_v61 = vld [vmem:[%s3725_s12 + $0x2c] sm:$0x1]  ;;  %v825_v0 = vmul.f32 %v3738_v30, %v817_v32  ;;  %v3945_v25 = vadd.f32 %v3751_v34, %v477_v40 }
  0x8b   : > { %1037 = vmatpush.bf16.msra.mxu2 %v3377_v46  ;;  %v3398_v32 = vld [vmem:[%s4871_s4 + $0x128] sm:$0xff]  ;;  %v457_v46 = vunpack.c.l.bf16 %v433_v11  ;;  %v800_v11 = vld [vmem:[%s3725_s12] sm:$0xe] }
  0x8c   : > { %1242 = vmatpush.bf16.msra.mxu3 %v3388_v37  ;;  %v459_v37 = vunpack.c.l.bf16 %v435_v61  ;;  %v468_v61 = vmul.f32 %v3738_v30, %v452_v7  ;;  %1546 = vmatpush.bf16.msrb.mxu0 %v3398_v32  ;;  %v816_v6 = vunpack.c.l.bf16 %v800_v11 }
  0x8d   : > { %v473_v32 = vmul.f32 %v3738_v30, %v457_v46  ;;  %775 = vmatpush.bf16.msrb.mxu1 %v3364_v33 }
  0x8e   : > { %1639 = vperm.xlu2 %3500, %v3683_v19   ;;  %v4008_v31 = vadd.f32 %v3751_v34, %v468_v61  ;;  %v3396_v61 = vld [vmem:[%s4871_s4 + $0x118] sm:$0xff] }
  0x8f   : > { %2157 = vperm.xlu1 %3499, %v3655_v14   ;;  %2153 = vperm.xlu0 %3498, %v3660_v15   ;;  %v434_v14 = vld [vmem:[%s3725_s12 + $0x28] sm:$0xf]  ;;  %v544_v15 = vrot.slane %v3792_v53, 7  ;;  %v4033_v50 = vadd.f32 %v3751_v34, %v473_v32 }
  0x90   : > { %v3932_v58 = vpop.permute.xlu2 %854  ;;  %v458_v40 = vunpack.c.l.bf16 %v434_v14  ;;  %1243 = vmatpush.bf16.msra.mxu3 %v3387_v12  ;;  %v499_v12 = vmax.f32 %v3959_v36, 0.0 }
  0x91   : > { %v394_v63 = vpop.permute.xlu1 %393  ;;  %v389_v1 = vpop.permute.xlu0 %388  ;;  %v3965_v4 = vmul.f32 %v544_v15, %v496_v38  ;;  %v3977_v14 = vmul.f32 %v544_v15, %v4874_v49  ;;  %v475_v15 = vmul.f32 %v3738_v30, %v459_v37  ;;  %v438_v37 = vld [vmem:[%s3725_s12 + $0x38] sm:$0xf]  ;;  %v547_v49 = vrot.slane %v3818_v5, 7 }
  0x92   : > { %v3947_v26 = vmul.f32 %v394_v63, %v355_v41  ;;  %v3949_v53 = vmul.f32 %v389_v1, %v354_v42  ;;  %v482_v41 = vadd.f32 %v3751_v34, %v466_v60  ;;  %v805_v42 = vld [vmem:[%s3725_s12 + $0x28] sm:$0xe]  ;;  %v3968_v63 = vadd.f32 %v3751_v34, %v825_v0 }
  0x93   : > { %v3386_v60 = vld [vmem:[%s4871_s4 + $0xc8] sm:$0xff]  ;;  %v469_v0 = vmul.f32 %v3738_v30, %v453_v28  ;;  %v821_v7 = vunpack.c.l.bf16 %v805_v42  ;;  %v474_v10 = vmul.f32 %v3738_v30, %v458_v40  ;;  %v593_v40 = vrot.slane %v3965_v4, 1 }
  0x94   : > { %v498_v29 = vmax.f32 %v482_v41, 0.0  ;;  %1244 = vmatpush.bf16.msra.mxu3 %v3386_v60  ;;  %v594_v46 = vrot.slane %v3977_v14, 1  ;;  %v500_v42 = vmax.f32 %v4008_v31, 0.0 }
  0x95   : > { %v4015_v4 = vadd.f32 %v3751_v34, %v469_v0  ;;  %v829_v1 = vmul.f32 %v3738_v30, %v821_v7  ;;  %v490_v14 = vadd.f32 %v3751_v34, %v474_v10  ;;  %v462_v0 = vunpack.c.l.bf16 %v438_v37 }
  0x96   : > { %2415 = vperm.xlu2 %3500, %v3683_v19   ;;  %v3397_v19 = vld [vmem:[%s4871_s4 + $0x120] sm:$0xff]  ;;  %v463_v7 = vunpack.c.l.bf16 %v439_v52  ;;  %v595_v33 = vsel %vm592_vm0, %v593_v40, %v594_v46  ;;  %v803_v46 = vld [vmem:[%s3725_s12 + $0x18] sm:$0xe]  ;;  %v4063_v52 = vmul.f32 %v547_v49, %v502_v54  ;;  %v3394_v54 = vld [vmem:[%s4871_s4 + $0x108] sm:$0xff] }
  0x97   : > { %2411 = vperm.xlu1 %3499, %v3688_v20   ;;  %1643 = vperm.xlu0 %3498, %v3700_v22   ;;  %v472_v20 = vmul.f32 %v3738_v30, %v456_v43  ;;  %v3385_v43 = vld [vmem:[%s4871_s4 + $0xc0] sm:$0xff]  ;;  %v501_v10 = vmax.f32 %v4015_v4, 0.0  ;;  %v506_v31 = vmax.f32 %v490_v14, 0.0  ;;  %v478_v32 = vmul.f32 %v3738_v30, %v462_v0 }
  0x98   : > { %v3995_v28 = vpop.permute.xlu2 %1123  ;;  %1547 = vmatpush.bf16.msrb.mxu0 %v3397_v19  ;;  %v4025_v19 = vadd.f32 %v3751_v34, %v475_v15  ;;  %1245 = vmatpush.bf16.msra.mxu3 %v3385_v43  ;;  %v4072_v15 = vld [vmem:[%s3725_s12 + $0x18] sm:$0xf] }
  0x99   : > { %v4005_v48 = vpop.permute.xlu1 %522  ;;  %v519_v41 = vpop.permute.xlu0 %518 }
  0x9a   : > { %v545_v60 = vrot.slane %v519_v41, 7  ;;  %v488_v41 = vadd.f32 %v3751_v34, %v472_v20  ;;  %v824_v20 = vmul.f32 %v3738_v30, %v816_v6  ;;  %v4877_v5 = vmax.f32 %v4025_v19, 0.0  ;;  %v802_v6 = vld [vmem:[%s3725_s12 + $0x10] sm:$0xe] }
  0x9c   : > { %v562_v38 = vmul.f32 %v545_v60, %v498_v29  ;;  %v563_v11 = vmul.f32 %v545_v60, %v499_v12  ;;  %1548 = vmatpush.bf16.msrb.mxu0 %v3396_v61  ;;  %v4876_v60 = vmax.f32 %v4033_v50, 0.0  ;;  %v546_v61 = vrot.slane %v4005_v48, 7  ;;  %v3362_v48 = vld [vmem:[%s4871_s4 + $0x8] sm:$0xff] }
  0x9d   : > { %v832_v17 = vadd.f32 %v3751_v34, %v824_v20 }
  0x9e   : > { %v596_v29 = vrot.slane %v562_v38, 1  ;;  %v597_v37 = vrot.slane %v563_v11, 1  ;;  %2161 = vperm.xlu2 %3500, %v3650_v13   ;;  %v3363_v38 = vld [vmem:[%s4871_s4 + $0x10] sm:$0xff] }
  0x9f   : > { %1928 = vperm.xlu1 %3499, %v3623_v8   ;;  %1923 = vperm.xlu0 %3498, %v3628_v9   ;;  %v3395_v13 = vld [vmem:[%s4871_s4 + $0x110] sm:$0xff]  ;;  %v4055_v8 = vadd.f32 %v3751_v34, %v829_v1  ;;  %v504_v9 = vmax.f32 %v488_v41, 0.0  ;;  %v479_v1 = vmul.f32 %v3738_v30, %v463_v7  ;;  %v4069_v41 = vmul.f32 %v547_v49, %v4875_v56 }
  0xa0   : > { %v4052_v43 = vpop.permute.xlu2 %870  ;;  %v598_v40 = vsel %vm592_vm0, %v596_v29, %v597_v37  ;;  %776 = vmatpush.bf16.msrb.mxu1 %v3363_v38  ;;  %1549 = vmatpush.bf16.msrb.mxu0 %v3395_v13  ;;  %v881_v7 = vrot.slane %v3932_v58, 6  ;;  %v4083_v49 = vadd.f32 %v3751_v34, %v478_v32  ;;  %v818_v38 = vunpack.c.l.bf16 %v802_v6  ;;  %v2959_v32 = vld [vmem:[%s3725_s12 + $0x10] sm:$0xf] }
  0xa1   : > { %v535_v14 = vpop.permute.xlu1 %534  ;;  %v531_v0 = vpop.permute.xlu0 %530  ;;  %v625_v11 = vpack.c.bf16 %v598_v40, %v595_v33  ;;  %v819_v33 = vunpack.c.l.bf16 %v803_v46  ;;  %v565_v56 = vmul.f32 %v546_v61, %v501_v10  ;;  %v1091_v58 = vunpack.c.l.bf16 %v4072_v15 }
  0xa2   : > { %v549_v29 = vrot.slane %v535_v14, 7  ;;  %v548_v37 = vrot.slane %v531_v0, 7  ;;  %v564_v0 = vmul.f32 %v546_v61, %v500_v42  ;;  %v3416_v42 = vld [vmem:[%s4871_s4 + $0x1b8] sm:$0xff]  ;;  %v602_v61 = vrot.slane %v4063_v52, 1 }
  0xa3   : > { %702 = vmatmul.bf16.vlgmr.msra.gmra.mxu0 %v625_v11  ;;  %v4093_v11 = vadd.f32 %v3751_v34, %v479_v1  ;;  %v840_v15 = vmax.f32 %v832_v17, 0.0  ;;  %v827_v1 = vmul.f32 %v3738_v30, %v819_v33  ;;  %2018 = vmatpush.bf16.msrb.mxu2 %v3416_v42  ;;  %v4880_v42 = vmax.f32 %v3892_v16, 0.0  ;;  %v3424_v16 = vld [vmem:[%s4871_s4 + $0x1f8] sm:$0xff] }
  0xa4   : > { %v570_v13 = vmul.f32 %v549_v29, %v506_v31  ;;  %v571_v20 = vmul.f32 %v549_v29, %v4877_v5  ;;  %v568_v40 = vmul.f32 %v548_v37, %v504_v9  ;;  %v569_v14 = vmul.f32 %v548_v37, %v4876_v60  ;;  %777 = vmatpush.bf16.msrb.mxu1 %v3362_v48  ;;  %v3361_v37 = vld [vmem:[%s4871_s4] sm:$0xff] }
  0xa5   : > { %1550 = vmatpush.bf16.msrb.mxu0 %v3394_v54  ;;  %v826_v29 = vmul.f32 %v3738_v30, %v818_v38  ;;  %v4878_v48 = vmax.f32 %v3968_v63, 0.0  ;;  %v899_v54 = vmul.f32 %v881_v7, %v499_v12  ;;  %v599_v38 = vrot.slane %v564_v0, 1  ;;  %2324 = vmatpush.bf16.msrb.mxu3 %v3424_v16 }
  0xa6   : > { %v608_v31 = vrot.slane %v570_v13, 1  ;;  %v609_v46 = vrot.slane %v571_v20, 1  ;;  %v605_v6 = vrot.slane %v568_v40, 1  ;;  %v606_v9 = vrot.slane %v569_v14, 1  ;;  %1651 = vperm.xlu2 %3500, %v3714_v24   ;;  %v3393_v24 = vld [vmem:[%s4871_s4 + $0x100] sm:$0xff] }
  0xa7   : > { %1647 = vperm.xlu1 %3499, %v3695_v21   ;;  %2165 = vperm.xlu0 %3498, %v3676_v18   ;;  %v898_v52 = vmul.f32 %v881_v7, %v4878_v48  ;;  %v600_v13 = vrot.slane %v565_v56, 1  ;;  %v1090_v60 = vunpack.c.l.bf16 %v2959_v32  ;;  %v510_v63 = vmax.f32 %v4083_v49, 0.0 }
  0xa8   : > { %v4115_v18 = vpop.permute.xlu2 %1133  ;;  %v607_v17 = vsel %vm592_vm0, %v605_v6, %v606_v9  ;;  %v610_v33 = vsel %vm592_vm0, %v608_v31, %v609_v46  ;;  %778 = vmatpush.bf16.msrb.mxu1 %v3361_v37  ;;  %v511_v36 = vmax.f32 %v4093_v11, 0.0  ;;  %v603_v7 = vrot.slane %v4069_v41, 1  ;;  %v3404_v11 = vld [vmem:[%s4871_s4 + $0x158] sm:$0xff] }
  0xa9   : > { %v851_v20 = vpop.permute.xlu1 %850  ;;  %v543_v40 = vpop.permute.xlu0 %542  ;;  %v627_v14 = vpack.c.bf16 %v610_v33, %v607_v17  ;;  %1551 = vmatpush.bf16.msrb.mxu0 %v3393_v24  ;;  %v550_v31 = vrot.slane %v3857_v55, 7  ;;  %v835_v56 = vadd.f32 %v3751_v34, %v827_v1  ;;  %v4125_v0 = vadd.f32 %v3751_v34, %v826_v29  ;;  %v804_v1 = vld [vmem:[%s3725_s12 + $0x20] sm:$0xe] }
  0xaa   : > { %v880_v5 = vrot.slane %v851_v20, 6  ;;  %v551_v12 = vrot.slane %v543_v40, 7  ;;  %v932_v32 = vrot.slane %v898_v52, 2  ;;  %v933_v46 = vrot.slane %v899_v54, 2  ;;  %v3025_v40 = vld [vmem:[%s3725_s12 + $0x14] sm:$0x1] }
  0xab   : > { %712 = vmatmul.bf16.vlgmr.msra.gmra.mxu1 %v627_v14  ;;  %v4879_v49 = vmax.f32 %v3864_v59, 0.0  ;;  %v4132_v37 = vmul.f32 %v3823_v23, %v4880_v42  ;;  %v1099_v55 = vmul.f32 %v3738_v30, %v1091_v58  ;;  %v601_v41 = vsel %vm592_vm0, %v599_v38, %v600_v13  ;;  %v3024_v59 = vld [vmem:[%s3725_s12 + $0x10] sm:$0xf]  ;;  %v3022_v14 = vld [vmem:[%s3725_s12 + $0x8] sm:$0xf] }
  0xac   : > { %v896_v6 = vmul.f32 %v880_v5, %v840_v15  ;;  %v1098_v24 = vmul.f32 %v3738_v30, %v1090_v60  ;;  %v574_v52 = vmul.f32 %v551_v12, %v510_v63  ;;  %v575_v15 = vmul.f32 %v551_v12, %v511_v36  ;;  %v3415_v23 = vld [vmem:[%s4871_s4 + $0x1b0] sm:$0xff] }
  0xad   : > { %v897_v9 = vmul.f32 %v880_v5, %v4879_v49  ;;  %v4881_v5 = vmax.f32 %v3930_v57, 0.0  ;;  %v842_v58 = vmax.f32 %v4125_v0, 0.0  ;;  %v604_v54 = vsel %vm592_vm0, %v602_v61, %v603_v7  ;;  %2019 = vmatpush.bf16.msrb.mxu2 %v3415_v23 }
  0xae   : > { %v929_v29 = vrot.slane %v896_v6, 2  ;;  %1933 = vperm.xlu2 %3500, %v3761_v39   ;;  %v843_v39 = vmax.f32 %v835_v56, 0.0  ;;  %v4882_v17 = vmax.f32 %v3945_v25, 0.0  ;;  %v934_v57 = vsel %vm928_vm1, %v932_v32, %v933_v46  ;;  %v3245_v46 = vld [vmem:[%s4870_s3 + $0x91] sm:$0xff] }
  0xaf   : > { %v930_v48 = vrot.slane %v897_v9, 2  ;;  %v4150_v60 = vmul.f32 %v550_v31, %v4881_v5  ;;  %2423 = vperm.xlu1 %3499, %v3695_v21   ;;  %2419 = vperm.xlu0 %3498, %v3700_v22   ;;  %v820_v20 = vunpack.c.l.bf16 %v804_v1  ;;  %v3023_v21 = vld [vmem:[%s3725_s12 + $0xc] sm:$0x1]  ;;  %v626_v12 = vpack.c.bf16 %v604_v54, %v601_v41  ;;  %v2962_v5 = vld [vmem:[%s3725_s12 + $0x28] sm:$0xf] }
  0xb0   : > { %v573_v33 = vmul.f32 %v550_v31, %v4882_v17  ;;  %v4158_v38 = vpop.permute.xlu2 %878  ;;  %v1106_v61 = vadd.f32 %v3751_v34, %v1098_v24  ;;  %v1301_v7 = vunpack.c.l.bf16 %v3024_v59  ;;  %v614_v31 = vrot.slane %v574_v52, 1  ;;  %v3173_v52 = vld [vmem:[%s4870_s3 + $0x90] sm:$0xff] }
  0xb1   : > { %v931_v13 = vsel %vm928_vm1, %v929_v29, %v930_v48  ;;  %v863_v22 = vpop.permute.xlu1 %862  ;;  %v859_v63 = vpop.permute.xlu0 %858  ;;  %v615_v0 = vrot.slane %v575_v15, 1  ;;  %v845_v32 = vmax.f32 %v4055_v8, 0.0  ;;  %v1302_v9 = vunpack.c.l.bf16 %v3025_v40  ;;  %v807_v48 = vld [vmem:[%s3725_s12 + $0x38] sm:$0xe]  ;;  %v3032_v54 = vld [vmem:[%s3725_s12 + $0x30] sm:$0xf] }
  0xb2   : > { %v961_v56 = vpack.c.bf16 %v934_v57, %v931_v13  ;;  %v883_v6 = vrot.slane %v863_v22, 6  ;;  %v882_v49 = vrot.slane %v859_v63, 6  ;;  %v1299_v42 = vunpack.c.l.bf16 %v3022_v14  ;;  %v4294_v8 = vld [vmem:[%s4871_s4 + $0x238] sm:$0xff] }
  0xb3   : > { %707 = vmatmul.bf16.gmra.mxu0 %v626_v12  ;;  %v1300_v41 = vunpack.c.l.bf16 %v3023_v21  ;;  %v611_v1 = vrot.slane %v4150_v60, 1  ;;  %v612_v24 = vrot.slane %v573_v33, 1  ;;  %v4172_v29 = vadd.f32 %v3751_v34, %v1099_v55 }
  0xb4   : > { %1038 = vmatmul.bf16.vlgmr.msra.gmra.mxu2 %v961_v56  ;;  %v828_v15 = vmul.f32 %v3738_v30, %v820_v20  ;;  %v4883_v59 = vmax.f32 %v3921_v51, 0.0  ;;  %v902_v16 = vmul.f32 %v883_v6, %v843_v39  ;;  %v1114_v60 = vmax.f32 %v1106_v61, 0.0  ;;  %v2961_v51 = vld [vmem:[%s3725_s12 + $0x20] sm:$0xf]  ;;  %v3414_v39 = vld [vmem:[%s4871_s4 + $0x1a8] sm:$0xff]  ;;  %2590 = vmatpush.bf16.msra.mxu0 %v4294_v8 }
  0xb5   : > { %v1317_v17 = vmul.f32 %v3738_v30, %v1301_v7  ;;  %v4884_v55 = vmax.f32 %v3896_v27, 0.0  ;;  %v900_v13 = vmul.f32 %v882_v49, %v842_v58  ;;  %v901_v57 = vmul.f32 %v882_v49, %v501_v10  ;;  %v3423_v58 = vld [vmem:[%s4871_s4 + $0x1f0] sm:$0xff]  ;;  %2020 = vmatpush.bf16.msrb.mxu2 %v3414_v39  ;;  %v3413_v39 = vld [vmem:[%s4871_s4 + $0x1a0] sm:$0xff] }
  0xb6   : > { %v4182_v23 = vmul.f32 %v3866_v62, %v4883_v59  ;;  %2173 = vperm.xlu2 %3500, %v3245_v46   ;;  %v616_v20 = vsel %vm592_vm0, %v614_v31, %v615_v0  ;;  %v3408_v62 = vld [vmem:[%s4871_s4 + $0x178] sm:$0xff]  ;;  %v823_v40 = vunpack.c.l.bf16 %v807_v48  ;;  %v1318_v27 = vmul.f32 %v3738_v30, %v1302_v9  ;;  %v3033_v0 = vld [vmem:[%s3725_s12 + $0x34] sm:$0x1]  ;;  %2325 = vmatpush.bf16.msrb.mxu3 %v3423_v58  ;;  %v3028_v58 = vld [vmem:[%s3725_s12 + $0x20] sm:$0xf] }
  0xb7   : > { %v903_v33 = vmul.f32 %v883_v6, %v4884_v55  ;;  %2169 = vperm.xlu1 %3499, %v3836_v35   ;;  %1938 = vperm.xlu0 %3498, %v3173_v52   ;;  %v1315_v4 = vmul.f32 %v3738_v30, %v1299_v42  ;;  %v1316_v10 = vmul.f32 %v3738_v30, %v1300_v41  ;;  %v4885_v14 = vmax.f32 %v4003_v47, 0.0  ;;  %v3308_v42 = vld [vmem:[%s4870_s3 + $0x82] sm:$0xff]  ;;  %v4241_v55 = vld [vmem:[%s3725_s12 + $0x30] sm:$0xe] }
  0xb8   : > { %v4209_v22 = vpop.permute.xlu2 %1143  ;;  %v1093_v63 = vunpack.c.l.bf16 %v2962_v5  ;;  %v4212_v35 = vadd.f32 %v3751_v34, %v828_v15  ;;  %v613_v12 = vsel %vm592_vm0, %v611_v1, %v612_v24  ;;  %1810 = vmatpush.bf16.msra.mxu1 %v3408_v62  ;;  %v938_v56 = vrot.slane %v902_v16, 2  ;;  %v4234_v16 = vld [vmem:[%s4870_s3 + $0x72] sm:$0xff] }
  0xb9   : > { %v1161_v21 = vmul.f32 %v3995_v28, %v4885_v14  ;;  %v4215_v61 = vpop.permute.xlu1 %866  ;;  %v1129_v7 = vpop.permute.xlu0 %1128  ;;  %v628_v31 = vpack.c.bf16 %v616_v20, %v613_v12  ;;  %v1309_v6 = vunpack.c.l.bf16 %v3032_v54  ;;  %v1092_v47 = vunpack.c.l.bf16 %v2961_v51  ;;  %v3407_v62 = vld [vmem:[%s4871_s4 + $0x170] sm:$0xff]  ;;  %v3029_v12 = vld [vmem:[%s3725_s12 + $0x24] sm:$0x1]  ;;  %2021 = vmatpush.bf16.msrb.mxu2 %v3413_v39 }
  0xba   : > { %v939_v28 = vrot.slane %v903_v33, 2  ;;  %v935_v49 = vrot.slane %v900_v13, 2  ;;  %v936_v46 = vrot.slane %v901_v57, 2  ;;  %v1162_v9 = vmul.f32 %v1129_v7, %v1114_v60  ;;  %v3027_v7 = vld [vmem:[%s3725_s12 + $0x1c] sm:$0x1] }
  0xbb   : > { %717 = vmatmul.bf16.gmra.mxu1 %v628_v31  ;;  %v1333_v41 = vadd.f32 %v3751_v34, %v1317_v17  ;;  %v4223_v1 = vadd.f32 %v3751_v34, %v1318_v27  ;;  %v1331_v24 = vadd.f32 %v3751_v34, %v1315_v4  ;;  %v4227_v48 = vadd.f32 %v3751_v34, %v1316_v10 }
  0xbc   : > { %v831_v52 = vmul.f32 %v3738_v30, %v823_v40  ;;  %v1101_v15 = vmul.f32 %v3738_v30, %v1093_v63  ;;  %v1169_v59 = vpack.c.bf16 %v1162_v9, %v1161_v21  ;;  %v1310_v5 = vunpack.c.l.bf16 %v3033_v0  ;;  %1811 = vmatpush.bf16.msra.mxu1 %v3407_v62 }
  0xbd   : > { %v404_v60 = vpack.c.bf16 %v4182_v23, %v4132_v37  ;;  %v1115_v54 = vmax.f32 %v4172_v29, 0.0  ;;  %v1325_v17 = vmul.f32 %v3738_v30, %v1309_v6  ;;  %v1100_v33 = vmul.f32 %v3738_v30, %v1092_v47 }
  0xbe   : > { %v885_v13 = vrot.slane %v4052_v43, 6  ;;  %v844_v57 = vmax.f32 %v4212_v35, 0.0  ;;  %1246 = vmatmul.bf16.vlgmr.msra.gmra.mxu3 %v1169_v59  ;;  %2435 = vperm.xlu2 %3500, %v3308_v42   ;;  %v937_v20 = vsel %vm928_vm1, %v935_v49, %v936_v46  ;;  %v940_v51 = vsel %vm928_vm1, %v938_v56, %v939_v28  ;;  %v3422_v43 = vld [vmem:[%s4871_s4 + $0x1e8] sm:$0xff]  ;;  %v3026_v56 = vld [vmem:[%s3725_s12 + $0x18] sm:$0xf] }
  0xbf   : > { %1659 = vperm.xlu1 %3499, %v3308_v42   ;;  %1655 = vperm.xlu0 %3498, %v4234_v16   ;;  %v1349_v40 = vmax.f32 %v1333_v41, 0.0  ;;  %v1350_v27 = vmax.f32 %v4223_v1, 0.0  ;;  %v1347_v4 = vmax.f32 %v1331_v24, 0.0  ;;  %v1348_v10 = vmax.f32 %v4227_v48, 0.0 }
  0xc0   : > { %v4262_v14 = vadd.f32 %v3751_v34, %v831_v52  ;;  %v4265_v21 = vadd.f32 %v3751_v34, %v1101_v15  ;;  %v4267_v63 = vpop.permute.xlu2 %1385  ;;  %v4270_v35 = vmul.f32 %v3738_v30, %v1310_v5  ;;  %v884_v31 = vrot.slane %v4215_v61, 6  ;;  %2326 = vmatpush.bf16.msrb.mxu3 %v3422_v43  ;;  %v3406_v15 = vld [vmem:[%s4871_s4 + $0x168] sm:$0xff] }
  0xc1   : > { %v4277_v0 = vadd.f32 %v3751_v34, %v1325_v17  ;;  %v1370_v6 = vpop.permute.xlu1 %1369  ;;  %v1366_v47 = vpop.permute.xlu0 %1365  ;;  %v962_v28 = vpack.c.bf16 %v940_v51, %v937_v20  ;;  %v1108_v49 = vadd.f32 %v3751_v34, %v1100_v33  ;;  %v4282_v30 = vmul.f32 %v885_v13, %v845_v32  ;;  %v3412_v34 = vld [vmem:[%s4871_s4 + $0x198] sm:$0xff]  ;;  %v3421_v20 = vld [vmem:[%s4871_s4 + $0x1e0] sm:$0xff]  ;;  %1812 = vmatpush.bf16.msra.mxu1 %v3406_v15  ;;  %v3030_v15 = vld [vmem:[%s3725_s12 + $0x28] sm:$0xf] }
  0xc2   : > { %v1396_v46 = vrot.slane %v1370_v6, 7  ;;  %v1395_v9 = vrot.slane %v1366_v47, 7  ;;  %v822_v42 = vunpack.c.l.bf16 %v4241_v55  ;;  %v1305_v41 = vunpack.c.l.bf16 %v3028_v58  ;;  %v3306_v55 = vld [vmem:[%s4870_s3 + $0x62] sm:$0xff]  ;;  %v3309_v33 = vld [vmem:[%s4870_s3 + $0x92] sm:$0xff]  ;;  %2022 = vmatpush.bf16.msrb.mxu2 %v3412_v34 }
  0xc3   : > { %v1306_v61 = vunpack.c.l.bf16 %v3029_v12  ;;  %v1303_v24 = vunpack.c.l.bf16 %v3026_v56  ;;  %v1304_v52 = vunpack.c.l.bf16 %v3027_v7  ;;  %v4886_v51 = vmax.f32 %v4025_v19, 0.0  ;;  %v3411_v12 = vld [vmem:[%s4871_s4 + $0x190] sm:$0xff] }
  0xc4   : > { %1043 = vmatmul.bf16.gmra.mxu2 %v962_v28  ;;  %v1413_v32 = vmul.f32 %v1396_v46, %v1349_v40  ;;  %v1414_v59 = vmul.f32 %v1396_v46, %v1350_v27  ;;  %v1411_v5 = vmul.f32 %v1395_v9, %v1347_v4  ;;  %v1412_v17 = vmul.f32 %v1395_v9, %v1348_v10  ;;  %v3158_v4 = vld [vmem:[%s3725_s12 + $0x10] sm:$0xf] }
  0xc5   : > { %v4311_v62 = vmul.f32 %v885_v13, %v4886_v51  ;;  %v904_v39 = vmul.f32 %v884_v31, %v844_v57  ;;  %v4887_v43 = vmax.f32 %v4033_v50, 0.0  ;;  %v1116_v58 = vmax.f32 %v1108_v49, 0.0  ;;  %v2963_v19 = vld [vmem:[%s3725_s12 + $0x30] sm:$0xf]  ;;  %v4325_v50 = vld [vmem:[%s4868_s1] ss:$0 sm:$0xff]  ;;  %2327 = vmatpush.bf16.msrb.mxu3 %v3421_v20 }
  0xc6   : > { %v1446_v56 = vrot.slane %v1413_v32, 1  ;;  %v1447_v7 = vrot.slane %v1414_v59, 1  ;;  %v1443_v6 = vrot.slane %v1411_v5, 1  ;;  %v1444_v47 = vrot.slane %v1412_v17, 1  ;;  %2431 = vperm.xlu2 %3500, %v4234_v16   ;;  %2023 = vmatpush.bf16.msrb.mxu2 %v3411_v12  ;;  %v3224_v51 = vld [vmem:[%s3725_s12 + $0x18] sm:$0xf] }
  0xc7   : > { %v905_v40 = vmul.f32 %v884_v31, %v4887_v43  ;;  %2427 = vperm.xlu1 %3499, %v3306_v55   ;;  %2439 = vperm.xlu0 %3498, %v3309_v33   ;;  %v830_v13 = vmul.f32 %v4325_v50, %v822_v42  ;;  %v1321_v57 = vmul.f32 %v4325_v50, %v1305_v41  ;;  %v944_v34 = vrot.slane %v4282_v30, 2  ;;  %v4348_v30 = vld [vmem:[%s4869_s2] ss:$0 sm:$0xff] }
  0xc8   : > { %v1322_v31 = vmul.f32 %v4325_v50, %v1306_v61  ;;  %v4330_v28 = vpop.permute.xlu2 %1903  ;;  %v1445_v16 = vsel %vm592_vm0, %v1443_v6, %v1444_v47  ;;  %v1448_v49 = vsel %vm592_vm0, %v1446_v56, %v1447_v7  ;;  %v1319_v46 = vmul.f32 %v4325_v50, %v1303_v24 }
  0xc9   : > { %v1320_v9 = vmul.f32 %v4325_v50, %v1304_v52  ;;  %v1869_v42 = vunpack.c.l.bf16 %v3158_v4  ;;  %v4338_v32 = vpop.permute.xlu1 %874  ;;  %v1139_v41 = vpop.permute.xlu0 %1138  ;;  %v1475_v61 = vpack.c.bf16 %v1448_v49, %v1445_v16  ;;  %v1094_v59 = vunpack.c.l.bf16 %v2963_v19  ;;  %v3031_v52 = vld [vmem:[%s3725_s12 + $0x2c] sm:$0x1]  ;;  %v3225_v16 = vld [vmem:[%s3725_s12 + $0x1c] sm:$0x1] }
  0xca   : > { %v1163_v5 = vmul.f32 %v4115_v18, %v1115_v54  ;;  %v941_v17 = vrot.slane %v904_v39, 2  ;;  %v942_v24 = vrot.slane %v905_v40, 2  ;;  %v1164_v55 = vmul.f32 %v1139_v41, %v1116_v58 }
  0xcb   : > { %v945_v33 = vrot.slane %v4311_v62, 2  ;;  %v838_v20 = vadd.f32 %v4348_v30, %v830_v13  ;;  %779 = vmatmul.bf16.vlgmr.msrb.gmra.mxu1 %v404_v60  ;;  %1552 = vmatmul.bf16.vlgmr.msrb.gmra.mxu0 %v1475_v61  ;;  %v1337_v18 = vadd.f32 %v4348_v30, %v1321_v57  ;;  %v1307_v29 = vunpack.c.l.bf16 %v3030_v15  ;;  %v4384_v13 = vld [vmem:[%s4871_s4 + $0x230] sm:$0xff]  ;;  %v3420_v57 = vld [vmem:[%s4871_s4 + $0x1d8] sm:$0xff] }
  0xcc   : > { %v1170_v54 = vpack.c.bf16 %v1164_v55, %v1163_v5  ;;  %v4357_v39 = vadd.f32 %v4348_v30, %v1322_v31  ;;  %v1335_v62 = vadd.f32 %v4348_v30, %v1319_v46  ;;  %v4361_v43 = vadd.f32 %v4348_v30, %v1320_v9  ;;  %2591 = vmatpush.bf16.msra.mxu0 %v4384_v13 }
  0xcd   : > { %v847_v40 = vmax.f32 %v4262_v14, 0.0  ;;  %v1117_v4 = vmax.f32 %v4265_v21, 0.0  ;;  %v1308_v37 = vunpack.c.l.bf16 %v3031_v52  ;;  %v1102_v23 = vmul.f32 %v4325_v50, %v1094_v59  ;;  %v3405_v14 = vld [vmem:[%s4871_s4 + $0x160] sm:$0xff]  ;;  %2328 = vmatpush.bf16.msrb.mxu3 %v3420_v57 }
  0xce   : > { %v4368_v60 = vadd.f32 %v4348_v30, %v4270_v35  ;;  %v1357_v58 = vmax.f32 %v4277_v0, 0.0  ;;  %v1877_v12 = vmul.f32 %v4325_v50, %v1869_v42  ;;  %1251 = vmatmul.bf16.gmra.mxu3 %v1170_v54  ;;  %v943_v56 = vsel %vm928_vm1, %v941_v17, %v942_v24  ;;  %v3410_v35 = vld [vmem:[%s4871_s4 + $0x188] sm:$0xff]  ;;  %1813 = vmatpush.bf16.msra.mxu1 %v3405_v14  ;;  %v3409_v17 = vld [vmem:[%s4871_s4 + $0x180] sm:$0xff] }
  0xcf   : > { %v846_v7 = vmax.f32 %v838_v20, 0.0  ;;  %v2081_v6 = vunpack.c.l.bf16 %v3224_v51  ;;  %v946_v47 = vsel %vm928_vm1, %v944_v34, %v945_v33  ;;  %v1323_v19 = vmul.f32 %v4325_v50, %v1307_v29  ;;  %2024 = vmatpush.bf16.msrb.mxu2 %v3410_v35 }
  0xd0   : > { %v4389_v31 = vpop.permute.xlu2 %2149  ;;  %v1353_v49 = vmax.f32 %v1337_v18, 0.0  ;;  %v1354_v46 = vmax.f32 %v4357_v39, 0.0  ;;  %v1351_v9 = vmax.f32 %v1335_v62, 0.0  ;;  %v1352_v15 = vmax.f32 %v4361_v43, 0.0 }
  0xd1   : > { %v886_v34 = vrot.slane %v4338_v32, 6  ;;  %v1378_v42 = vpop.permute.xlu1 %1377  ;;  %v1374_v41 = vpop.permute.xlu0 %1373  ;;  %v963_v61 = vpack.c.bf16 %v946_v47, %v943_v56  ;;  %v1324_v59 = vmul.f32 %v4325_v50, %v1308_v37  ;;  %v1110_v5 = vadd.f32 %v4348_v30, %v1102_v23  ;;  %v2964_v47 = vld [vmem:[%s3725_s12 + $0x38] sm:$0xf] }
  0xd2   : > { %v1358_v24 = vmax.f32 %v4368_v60, 0.0  ;;  %v4403_v55 = vadd.f32 %v4348_v30, %v1877_v12  ;;  %v1398_v32 = vrot.slane %v1378_v42, 7  ;;  %v1397_v52 = vrot.slane %v1374_v41, 7  ;;  %v3035_v41 = vld [vmem:[%s3725_s12 + $0x3c] sm:$0x1]  ;;  %1814 = vmatpush.bf16.msra.mxu1 %v3404_v11  ;;  %v3429_v11 = vld [vmem:[%s4871_s4 + $0x220] sm:$0xff] }
  0xd3   : > { %v887_v33 = vrot.slane %v4158_v38, 6  ;;  %v2082_v20 = vunpack.c.l.bf16 %v3225_v16  ;;  %v2097_v18 = vmul.f32 %v4325_v50, %v2081_v6  ;;  %v4408_v29 = vadd.f32 %v4348_v30, %v1323_v19  ;;  %v2965_v6 = vld [vmem:[%s3725_s12 + $0x40] sm:$0xf]  ;;  %2025 = vmatpush.bf16.msrb.mxu2 %v3409_v17 }
  0xd4   : > { %1048 = vmatmul.bf16.gmra.mxu2 %v963_v61  ;;  %v1417_v54 = vmul.f32 %v1398_v32, %v1353_v49  ;;  %v1418_v51 = vmul.f32 %v1398_v32, %v1354_v46  ;;  %v1415_v62 = vmul.f32 %v1397_v52, %v1351_v9  ;;  %v1416_v37 = vmul.f32 %v1397_v52, %v1352_v15 }
  0xd5   : > { %v908_v23 = vmul.f32 %v886_v34, %v846_v7  ;;  %v4888_v12 = vmax.f32 %v3945_v25, 0.0  ;;  %v4417_v56 = vadd.f32 %v4348_v30, %v1324_v59  ;;  %v1118_v14 = vmax.f32 %v1110_v5, 0.0 }
  0xd6   : > { %v1452_v19 = vrot.slane %v1417_v54, 1  ;;  %v1453_v35 = vrot.slane %v1418_v51, 1  ;;  %v1449_v57 = vrot.slane %v1415_v62, 1  ;;  %v1450_v16 = vrot.slane %v1416_v37, 1 }
  0xd7   : > { %v909_v38 = vmul.f32 %v886_v34, %v4888_v12  ;;  %3464 = vmatpush.bf16.msra.mxu2 %v4294_v8  ;;  %v4422_v49 = vmul.f32 %v887_v33, %v847_v40  ;;  %v4426_v25 = vmul.f32 %v887_v33, %v511_v36  ;;  %v2098_v7 = vmul.f32 %v4325_v50, %v2082_v20  ;;  %v3034_v34 = vld [vmem:[%s3725_s12 + $0x38] sm:$0xf]  ;;  %v3419_v36 = vld [vmem:[%s4871_s4 + $0x1d0] sm:$0xff] }
  0xd8   : > { %v4430_v9 = vadd.f32 %v4348_v30, %v2097_v18  ;;  %v4433_v42 = vpop.permute.xlu2 %1389  ;;  %v1451_v61 = vsel %vm592_vm0, %v1449_v57, %v1450_v16  ;;  %v1454_v59 = vsel %vm592_vm0, %v1452_v19, %v1453_v35  ;;  %v1096_v8 = vunpack.c.l.bf16 %v2965_v6  ;;  %v3430_v18 = vld [vmem:[%s4871_s4 + $0x228] sm:$0xff]  ;;  %v3159_v12 = vld [vmem:[%s3725_s12 + $0x18] sm:$0xf]  ;;  %2329 = vmatpush.bf16.msrb.mxu3 %v3419_v36 }
  0xd9   : > { %v1095_v40 = vunpack.c.l.bf16 %v2964_v47  ;;  %v1165_v5 = vmul.f32 %v4209_v22, %v1117_v4  ;;  %v1382_v17 = vpop.permute.xlu1 %1381  ;;  %v1355_v32 = vmax.f32 %v4408_v29, 0.0  ;;  %v1356_v52 = vmax.f32 %v4417_v56, 0.0  ;;  %v1149_v33 = vpop.permute.xlu0 %1148  ;;  %v3161_v47 = vld [vmem:[%s3725_s12 + $0x28] sm:$0xf]  ;;  %2592 = vmatpush.bf16.msra.mxu0 %v3430_v18 }
  0xda   : > { %v1476_v20 = vpack.c.bf16 %v1454_v59, %v1451_v61  ;;  %v947_v54 = vrot.slane %v908_v23, 2  ;;  %v948_v51 = vrot.slane %v909_v38, 2  ;;  %v1399_v62 = vrot.slane %v1382_v17, 7  ;;  %v3418_v23 = vld [vmem:[%s4871_s4 + $0x1c8] sm:$0xff] }
  0xdb   : > { %v1166_v37 = vmul.f32 %v1149_v33, %v1118_v14  ;;  %v950_v22 = vrot.slane %v4422_v49, 2  ;;  %v1400_v21 = vrot.slane %v4267_v63, 7  ;;  %v1311_v4 = vunpack.c.l.bf16 %v3034_v34  ;;  %3465 = vmatpush.bf16.msra.mxu2 %v4384_v13  ;;  %v3222_v34 = vld [vmem:[%s3725_s12 + $0x10] sm:$0xf] }
  0xdc   : > { %v1312_v29 = vunpack.c.l.bf16 %v3035_v41  ;;  %v4889_v6 = vpack.c.bf16 %v3875_v3, %v3873_v2  ;;  %1557 = vmatmul.bf16.gmra.mxu0 %v1476_v20  ;;  %v951_v38 = vrot.slane %v4426_v25, 2  ;;  %v1104_v19 = vmul.f32 %v4325_v50, %v1096_v8  ;;  %v3223_v41 = vld [vmem:[%s3725_s12 + $0x14] sm:$0x1]  ;;  %v3096_v8 = vld [vmem:[%s3725_s12 + $0x18] sm:$0xe]  ;;  %2330 = vmatpush.bf16.msrb.mxu3 %v3418_v23 }
  0xdd   : > { %v1171_v14 = vpack.c.bf16 %v1166_v37, %v1165_v5  ;;  %v1103_v63 = vmul.f32 %v4325_v50, %v1095_v40  ;;  %v1893_v35 = vmax.f32 %v4403_v55, 0.0  ;;  %v4467_v2 = vadd.f32 %v4348_v30, %v2098_v7  ;;  %v3403_v7 = vld [vmem:[%s4871_s4 + $0x150] sm:$0xff]  ;;  %v3417_v40 = vld [vmem:[%s4871_s4 + $0x1c0] sm:$0xff]  ;;  %2593 = vmatpush.bf16.msra.mxu0 %v3429_v11  ;;  %v3229_v55 = vld [vmem:[%s3725_s12 + $0x2c] sm:$0x1] }
  0xde   : > { %784 = vmatmul.bf16.gmra.mxu1 %v4889_v6  ;;  %v1870_v3 = vunpack.c.l.bf16 %v3159_v12  ;;  %v2129_v57 = vmax.f32 %v4430_v9, 0.0  ;;  %v1419_v16 = vmul.f32 %v1399_v62, %v1355_v32  ;;  %v1420_v49 = vmul.f32 %v1399_v62, %v1356_v52  ;;  %v3095_v32 = vld [vmem:[%s3725_s12 + $0x10] sm:$0xe]  ;;  %v3094_v12 = vld [vmem:[%s3725_s12 + $0x8] sm:$0xe] }
  0xdf   : > { %1256 = vmatmul.bf16.gmra.mxu3 %v1171_v14  ;;  %v949_v25 = vsel %vm928_vm1, %v947_v54, %v948_v51  ;;  %v1421_v61 = vmul.f32 %v1400_v21, %v1357_v58  ;;  %v1327_v13 = vmul.f32 %v4325_v50, %v1311_v4  ;;  %v1328_v9 = vmul.f32 %v4325_v50, %v1312_v29 }
  0xe0   : > { %v1872_v59 = vunpack.c.l.bf16 %v3161_v47  ;;  %v1422_v0 = vmul.f32 %v1400_v21, %v1358_v24  ;;  %v4492_v58 = vpop.permute.xlu2 %1918  ;;  %v1112_v36 = vadd.f32 %v4348_v30, %v1104_v19  ;;  %v1111_v5 = vadd.f32 %v4348_v30, %v1103_v63  ;;  %1815 = vmatpush.bf16.msra.mxu1 %v3403_v7  ;;  %3466 = vmatpush.bf16.msra.mxu2 %v3430_v18 }
  0xe1   : > { %v952_v17 = vsel %vm928_vm1, %v950_v22, %v951_v38  ;;  %v1159_v33 = vpop.permute.xlu1 %1158  ;;  %v1154_v20 = vpop.permute.xlu0 %1153  ;;  %v2079_v51 = vunpack.c.l.bf16 %v3222_v34  ;;  %v2080_v62 = vunpack.c.l.bf16 %v3223_v41  ;;  %v1878_v37 = vmul.f32 %v4325_v50, %v1870_v3  ;;  %2331 = vmatpush.bf16.msrb.mxu3 %v3417_v40  ;;  %v3295_v3 = vld [vmem:[%s3725_s12 + $0x18] sm:$0xe] }
  0xe2   : > { %v964_v54 = vpack.c.bf16 %v952_v17, %v949_v25  ;;  %v2176_v21 = vrot.slane %v4389_v31, 7  ;;  %v1455_v4 = vrot.slane %v1419_v16, 1  ;;  %v1456_v29 = vrot.slane %v1420_v49, 1 }
  0xe3   : > { %v1599_v6 = vunpack.c.l.bf16 %v3096_v8  ;;  %v1458_v23 = vrot.slane %v1421_v61, 1  ;;  %v2130_v22 = vmax.f32 %v4467_v2, 0.0  ;;  %v4503_v38 = vadd.f32 %v4348_v30, %v1327_v13  ;;  %v3402_v13 = vld [vmem:[%s4871_s4 + $0x148] sm:$0xff] }
  0xe4   : > { %1053 = vmatmul.bf16.gmra.mxu2 %v964_v54  ;;  %v1598_v14 = vunpack.c.l.bf16 %v3095_v32  ;;  %v1459_v47 = vrot.slane %v1422_v0, 1  ;;  %v1120_v19 = vmax.f32 %v1112_v36, 0.0  ;;  %v1119_v63 = vmax.f32 %v1111_v5, 0.0  ;;  %v3037_v32 = vld [vmem:[%s3725_s12 + $0x44] sm:$0x1]  ;;  %1816 = vmatpush.bf16.msra.mxu1 %v3402_v13 }
  0xe5   : > { %v1597_v18 = vunpack.c.l.bf16 %v3094_v12  ;;  %v4507_v31 = vadd.f32 %v4348_v30, %v1328_v9  ;;  %v2095_v16 = vmul.f32 %v4325_v50, %v2079_v51  ;;  %v2096_v49 = vmul.f32 %v4325_v50, %v2080_v62  ;;  %3467 = vmatpush.bf16.msra.mxu2 %v3429_v11  ;;  %v3401_v54 = vld [vmem:[%s4871_s4 + $0x140] sm:$0xff] }
  0xe6   : > { %v1886_v25 = vadd.f32 %v4348_v30, %v1878_v37  ;;  %v2193_v34 = vmul.f32 %v2176_v21, %v2129_v57  ;;  %v1880_v41 = vmul.f32 %v4325_v50, %v1872_v59  ;;  %v1607_v7 = vmul.f32 %v4325_v50, %v1599_v6  ;;  %v3036_v57 = vld [vmem:[%s3725_s12 + $0x40] sm:$0xf]  ;;  %v3428_v59 = vld [vmem:[%s4871_s4 + $0x218] sm:$0xff] }
  0xe7   : > { %v1457_v61 = vsel %vm592_vm0, %v1455_v4, %v1456_v29  ;;  %v2194_v9 = vmul.f32 %v2176_v21, %v2130_v22  ;;  %v1359_v8 = vmax.f32 %v4503_v38, 0.0  ;;  %v2378_v40 = vunpack.c.l.bf16 %v3295_v3  ;;  %2594 = vmatpush.bf16.msra.mxu0 %v3428_v59  ;;  %v3427_v4 = vld [vmem:[%s4871_s4 + $0x210] sm:$0xff] }
  0xe8   : > { %v1606_v11 = vmul.f32 %v4325_v50, %v1598_v14  ;;  %v1168_v0 = vmul.f32 %v1159_v33, %v1120_v19  ;;  %v1167_v36 = vmul.f32 %v1154_v20, %v1119_v63  ;;  %v1460_v5 = vsel %vm592_vm0, %v1458_v23, %v1459_v47  ;;  %v3160_v20 = vld [vmem:[%s3725_s12 + $0x20] sm:$0xf]  ;;  %v4543_v23 = vpop.permute.xlu2 %1639  ;;  %1817 = vmatpush.bf16.msra.mxu1 %v3401_v54  ;;  %v3426_v54 = vld [vmem:[%s4871_s4 + $0x208] sm:$0xff] }
  0xe9   : > { %v1605_v17 = vmul.f32 %v4325_v50, %v1597_v18  ;;  %v2146_v51 = vpop.permute.xlu1 %2145  ;;  %v2111_v62 = vadd.f32 %v4348_v30, %v2095_v16  ;;  %v4534_v37 = vadd.f32 %v4348_v30, %v2096_v49  ;;  %v1909_v12 = vpop.permute.xlu0 %1908  ;;  %v1894_v21 = vmax.f32 %v1886_v25, 0.0  ;;  %3468 = vmatpush.bf16.msra.mxu2 %v3428_v59 }
  0xea   : > { %v1477_v33 = vpack.c.bf16 %v1460_v5, %v1457_v61  ;;  %v2226_v29 = vrot.slane %v2193_v34, 1  ;;  %v4541_v6 = vadd.f32 %v4348_v30, %v1880_v41  ;;  %v4546_v38 = vadd.f32 %v4348_v30, %v1607_v7 }
  0xeb   : > { %v1313_v14 = vunpack.c.l.bf16 %v3036_v57  ;;  %v2227_v47 = vrot.slane %v2194_v9, 1  ;;  %v4890_v19 = vpack.c.bf16 %v3771_v45, %v3769_v44  ;;  %v2386_v63 = vmul.f32 %v4325_v50, %v2378_v40  ;;  %2595 = vmatpush.bf16.msra.mxu0 %v3427_v4  ;;  %v3228_v40 = vld [vmem:[%s3725_s12 + $0x28] sm:$0xf] }
  0xec   : > { %1562 = vmatmul.bf16.gmra.mxu0 %v1477_v33  ;;  %v1614_v3 = vadd.f32 %v4348_v30, %v1606_v11  ;;  %v1314_v18 = vunpack.c.l.bf16 %v3037_v32  ;;  %v1401_v16 = vrot.slane %v4433_v42, 7  ;;  %v1172_v49 = vpack.c.bf16 %v1168_v0, %v1167_v36  ;;  %v3227_v32 = vld [vmem:[%s3725_s12 + $0x24] sm:$0x1] }
  0xed   : > { %v1613_v25 = vadd.f32 %v4348_v30, %v1605_v17  ;;  %v1871_v34 = vunpack.c.l.bf16 %v3160_v20  ;;  %v2127_v41 = vmax.f32 %v2111_v62, 0.0  ;;  %v2128_v7 = vmax.f32 %v4534_v37, 0.0  ;;  %3469 = vmatpush.bf16.msra.mxu2 %v3427_v4  ;;  %v3226_v17 = vld [vmem:[%s3725_s12 + $0x20] sm:$0xf]  ;;  %v3236_v37 = vld [vmem:[%s3725_s12 + $0x48] sm:$0xf] }
  0xee   : > { %789 = vmatmul.bf16.gmra.mxu1 %v4890_v19  ;;  %v2175_v44 = vrot.slane %v2146_v51, 7  ;;  %v1942_v45 = vmul.f32 %v1909_v12, %v1894_v21  ;;  %v1941_v61 = vmul.f32 %v4330_v28, %v1893_v35  ;;  %v1360_v42 = vmax.f32 %v4507_v31, 0.0 }
  0xef   : > { %v1896_v13 = vmax.f32 %v4541_v6, 0.0  ;;  %1261 = vmatmul.bf16.gmra.mxu3 %v1172_v49  ;;  %v1329_v9 = vmul.f32 %v4325_v50, %v1313_v14  ;;  %v1623_v11 = vmax.f32 %v4546_v38, 0.0  ;;  %v1622_v57 = vmax.f32 %v1614_v3, 0.0  ;;  %2596 = vmatpush.bf16.msra.mxu0 %v3426_v54 }
  0xf0   : > { %v1330_v59 = vmul.f32 %v4325_v50, %v1314_v18  ;;  %v4566_v0 = vsel %vm592_vm0, %v2226_v29, %v2227_v47  ;;  %v4569_v36 = vmul.f32 %v1401_v16, %v1359_v8  ;;  %v4572_v28 = vadd.f32 %v4348_v30, %v2386_v63  ;;  %v3425_v47 = vld [vmem:[%s4871_s4 + $0x200] sm:$0xff] }
  0xf1   : > { %v1621_v35 = vmax.f32 %v1613_v25, 0.0  ;;  %v1879_v5 = vmul.f32 %v4325_v50, %v1871_v34  ;;  %v2191_v51 = vmul.f32 %v2175_v44, %v2127_v41  ;;  %v2192_v62 = vmul.f32 %v2175_v44, %v2128_v7  ;;  %v1636_v21 = vpop.permute.xlu1 %1635  ;;  %v1632_v8 = vpop.permute.xlu0 %1631  ;;  %3470 = vmatpush.bf16.msra.mxu2 %v3426_v54 }
  0xf2   : > { %v1949_v12 = vpack.c.bf16 %v1942_v45, %v1941_v61  ;;  %v2085_v33 = vunpack.c.l.bf16 %v3228_v40  ;;  %v4584_v20 = vmul.f32 %v1401_v16, %v1360_v42  ;;  %v1662_v4 = vrot.slane %v1636_v21, 6  ;;  %v4593_v16 = vpop.permute.xlu2 %2415 }
  0xf3   : > { %v1661_v29 = vrot.slane %v1632_v8, 6  ;;  %v1345_v14 = vadd.f32 %v4348_v30, %v1329_v9  ;;  %v4591_v19 = vadd.f32 %v4348_v30, %v1330_v59  ;;  %v2086_v63 = vunpack.c.l.bf16 %v3229_v55  ;;  %2597 = vmatpush.bf16.msra.mxu0 %v3425_v47 }
  0xf4   : > { %2026 = vmatmul.bf16.vlgmr.msrb.gmra.mxu2 %v1949_v12  ;;  %v2083_v3 = vunpack.c.l.bf16 %v3226_v17  ;;  %v2084_v18 = vunpack.c.l.bf16 %v3227_v32  ;;  %v1679_v49 = vmul.f32 %v1662_v4, %v1622_v57  ;;  %v1680_v25 = vmul.f32 %v1662_v4, %v1350_v27  ;;  %v3230_v57 = vld [vmem:[%s3725_s12 + $0x30] sm:$0xf] }
  0xf5   : > { %v1677_v34 = vmul.f32 %v1661_v29, %v1621_v35  ;;  %v1678_v41 = vmul.f32 %v1661_v29, %v1348_v10  ;;  %v2223_v44 = vrot.slane %v2191_v51, 1  ;;  %v2224_v45 = vrot.slane %v2192_v62, 1  ;;  %3471 = vmatpush.bf16.msra.mxu2 %v3425_v47  ;;  %v3294_v51 = vld [vmem:[%s3725_s12 + $0x10] sm:$0xe]  ;;  %v3097_v62 = vld [vmem:[%s3725_s12 + $0x20] sm:$0xe] }
  0xf6   : > { %v1887_v61 = vadd.f32 %v4348_v30, %v1879_v5  ;;  %v2101_v9 = vmul.f32 %v4325_v50, %v2085_v33  ;;  %v1712_v40 = vrot.slane %v1679_v49, 2  ;;  %v1713_v59 = vrot.slane %v1680_v25, 2 }
  0xf7   : > { %v1709_v55 = vrot.slane %v1677_v34, 2  ;;  %v1710_v17 = vrot.slane %v1678_v41, 2  ;;  %v2402_v1 = vmax.f32 %v4572_v28, 0.0  ;;  %v1361_v27 = vmax.f32 %v1345_v14, 0.0 }
  0xf8   : > { %v2102_v48 = vmul.f32 %v4325_v50, %v2086_v63  ;;  %v2099_v10 = vmul.f32 %v4325_v50, %v2083_v3  ;;  %v4606_v35 = vsel %vm928_vm1, %v1712_v40, %v1713_v59  ;;  %v1362_v32 = vmax.f32 %v4591_v19, 0.0  ;;  %v3231_v63 = vld [vmem:[%s3725_s12 + $0x34] sm:$0x1] }
  0xf9   : > { %v4609_v5 = vsel %vm928_vm1, %v1709_v55, %v1710_v17  ;;  %v2100_v54 = vmul.f32 %v4325_v50, %v2084_v18  ;;  %v2087_v12 = vunpack.c.l.bf16 %v3230_v57  ;;  %v1914_v21 = vpop.permute.xlu1 %1913  ;;  %v1895_v8 = vmax.f32 %v1887_v61, 0.0  ;;  %v1394_v33 = vpop.permute.xlu0 %1393 }
  0xfa   : > { %v2225_v4 = vsel %vm592_vm0, %v2223_v44, %v2224_v45  ;;  %v1741_v29 = vpack.c.bf16 %v4606_v35, %v4609_v5  ;;  %v1461_v14 = vrot.slane %v4569_v36, 1  ;;  %v1462_v47 = vrot.slane %v4584_v20, 1  ;;  %v4640_v55 = vpop.permute.xlu2 %2161 }
  0xfb   : > { %v1402_v3 = vrot.slane %v1394_v33, 7  ;;  %v2117_v49 = vadd.f32 %v4348_v30, %v2101_v9  ;;  %v4891_v18 = vpack.c.bf16 %v3947_v26, %v3949_v53  ;;  %v4626_v25 = vadd.f32 %v4348_v30, %v2102_v48  ;;  %v3162_v48 = vld [vmem:[%s3725_s12 + $0x30] sm:$0xf] }
  0xfc   : > { %v2115_v34 = vadd.f32 %v4348_v30, %v2099_v10  ;;  %v2377_v41 = vunpack.c.l.bf16 %v3294_v51  ;;  %v1600_v44 = vunpack.c.l.bf16 %v3097_v62  ;;  %v2255_v45 = vpack.c.bf16 %v4566_v0, %v2225_v4  ;;  %v3099_v62 = vld [vmem:[%s3725_s12 + $0x30] sm:$0xe] }
  0xfd   : > { %v1425_v36 = vmul.f32 %v1402_v3, %v1361_v27  ;;  %v1426_v20 = vmul.f32 %v1402_v3, %v1362_v32  ;;  %v4633_v61 = vadd.f32 %v4348_v30, %v2100_v54  ;;  %v1663_v26 = vrot.slane %v4543_v23, 6  ;;  %v3163_v27 = vld [vmem:[%s3725_s12 + $0x38] sm:$0xf] }
  0xfe   : > { %794 = vmatmul.bf16.gmra.mxu1 %v4891_v18  ;;  %v2088_v53 = vunpack.c.l.bf16 %v3231_v63  ;;  %v2103_v9 = vmul.f32 %v4325_v50, %v2087_v12  ;;  %v1943_v40 = vmul.f32 %v1914_v21, %v1895_v8  ;;  %v1944_v59 = vmul.f32 %v4492_v58, %v1896_v13 }
  0xff   : > { %v1464_v17 = vrot.slane %v1425_v36, 1  ;;  %v1465_v57 = vrot.slane %v1426_v20, 1  ;;  %2332 = vmatmul.bf16.vlgmr.msrb.gmra.mxu3 %v2255_v45  ;;  %v1463_v0 = vsel %vm592_vm0, %v1461_v14, %v1462_v47  ;;  %v2133_v10 = vmax.f32 %v2117_v49, 0.0 }
 0x100   : > { %v2134_v23 = vmax.f32 %v4626_v25, 0.0  ;;  %v2385_v54 = vmul.f32 %v4325_v50, %v2377_v41  ;;  %v1608_v51 = vmul.f32 %v4325_v50, %v1600_v44  ;;  %v2442_v6 = vrot.slane %v4593_v16, 6 }
 0x101   : > { %v2131_v58 = vmax.f32 %v2115_v34, 0.0  ;;  %v2132_v13 = vmax.f32 %v4633_v61, 0.0  ;;  %v1466_v12 = vsel %vm592_vm0, %v1464_v17, %v1465_v57  ;;  %v2158_v21 = vpop.permute.xlu1 %2157  ;;  %v2154_v8 = vpop.permute.xlu0 %2153  ;;  %v1950_v4 = vpack.c.bf16 %v1944_v59, %v1943_v40  ;;  %v3505_v61 = vld [vmem:[%s4868_s1] ss:$0 sm:$0xff] }
 0x102   : > { %v1478_v33 = vpack.c.bf16 %v1466_v12, %v1463_v0  ;;  %v1874_v14 = vunpack.c.l.bf16 %v3163_v27  ;;  %v1873_v47 = vunpack.c.l.bf16 %v3162_v48  ;;  %v4654_v63 = vmul.f32 %v1663_v26, %v1623_v11  ;;  %v4679_v2 = vpop.permute.xlu2 %1651 }
 0x103   : > { %v2104_v3 = vmul.f32 %v4325_v50, %v2088_v53  ;;  %v2178_v49 = vrot.slane %v2158_v21, 7  ;;  %v2177_v16 = vrot.slane %v2154_v8, 7  ;;  %v4659_v18 = vmul.f32 %v1663_v26, %v1352_v15 }
 0x104   : > { %v1602_v34 = vunpack.c.l.bf16 %v3099_v62  ;;  %1567 = vmatmul.bf16.gmra.mxu0 %v1478_v33  ;;  %2031 = vmatmul.bf16.gmra.mxu2 %v1950_v4  ;;  %v2393_v41 = vadd.f32 %v4348_v30, %v2385_v54  ;;  %v1616_v44 = vadd.f32 %v4348_v30, %v1608_v51  ;;  %v2459_v43 = vmul.f32 %v2442_v6, %v2402_v1  ;;  %v3232_v54 = vld [vmem:[%s3725_s12 + $0x38] sm:$0xf]  ;;  %v3233_v51 = vld [vmem:[%s3725_s12 + $0x3c] sm:$0x1] }
 0x105   : > { %v2197_v36 = vmul.f32 %v2178_v49, %v2133_v10  ;;  %v2198_v38 = vmul.f32 %v2178_v49, %v2134_v23  ;;  %v2195_v11 = vmul.f32 %v2177_v16, %v2131_v58  ;;  %v2196_v20 = vmul.f32 %v2177_v16, %v2132_v13  ;;  %v3098_v10 = vld [vmem:[%s3725_s12 + $0x28] sm:$0xe] }
 0x106   : > { %v2460_v15 = vmul.f32 %v2442_v6, %v2130_v22  ;;  %v1882_v45 = vmul.f32 %v4325_v50, %v1874_v14  ;;  %v1881_v26 = vmul.f32 %v4325_v50, %v1873_v47  ;;  %v4674_v57 = vadd.f32 %v4348_v30, %v2103_v9 }
 0x107   : > { %v2232_v53 = vrot.slane %v2197_v36, 1  ;;  %v2233_v40 = vrot.slane %v2198_v38, 1  ;;  %v2229_v59 = vrot.slane %v2195_v11, 1  ;;  %v2230_v17 = vrot.slane %v2196_v20, 1 }
 0x108   : > { %v2401_v0 = vmax.f32 %v2393_v41, 0.0  ;;  %v1624_v28 = vmax.f32 %v1616_v44, 0.0  ;;  %v4677_v1 = vadd.f32 %v4348_v30, %v2104_v3  ;;  %v1610_v22 = vmul.f32 %v4325_v50, %v1602_v34 }
 0x109   : > { %v2231_v27 = vsel %vm592_vm0, %v2229_v59, %v2230_v17  ;;  %v2234_v48 = vsel %vm592_vm0, %v2232_v53, %v2233_v40  ;;  %v1715_v6 = vrot.slane %v4654_v63, 2  ;;  %v1716_v9 = vrot.slane %v4659_v18, 2  ;;  %v2412_v62 = vpop.permute.xlu1 %2411  ;;  %v1644_v58 = vpop.permute.xlu0 %1643  ;;  %v3297_v17 = vld [vmem:[%s3725_s12 + $0x28] sm:$0xe] }
 0x10a   : > { %v1890_v12 = vadd.f32 %v4348_v30, %v1882_v45  ;;  %v1889_v21 = vadd.f32 %v4348_v30, %v1881_v26  ;;  %v2492_v8 = vrot.slane %v2459_v43, 2  ;;  %v2493_v33 = vrot.slane %v2460_v15, 2  ;;  %v3237_v26 = vld [vmem:[%s3725_s12 + $0x4c] sm:$0x1] }
 0x10b   : > { %v2441_v4 = vrot.slane %v2412_v62, 6  ;;  %v1664_v14 = vrot.slane %v1644_v58, 6  ;;  %v2256_v47 = vpack.c.bf16 %v2234_v48, %v2231_v27  ;;  %v1601_v3 = vunpack.c.l.bf16 %v3098_v10 }
 0x10c   : > { %v2089_v63 = vunpack.c.l.bf16 %v3232_v54  ;;  %v2090_v49 = vunpack.c.l.bf16 %v3233_v51  ;;  %v2135_v44 = vmax.f32 %v4674_v57, 0.0  ;;  %v1618_v35 = vadd.f32 %v4348_v30, %v1610_v22  ;;  %v3296_v57 = vld [vmem:[%s3725_s12 + $0x20] sm:$0xe] }
 0x10d   : > { %v2457_v16 = vmul.f32 %v2441_v4, %v2401_v0  ;;  %v2458_v18 = vmul.f32 %v2441_v4, %v2128_v7  ;;  %v1683_v34 = vmul.f32 %v1664_v14, %v1624_v28  ;;  %v1684_v41 = vmul.f32 %v1664_v14, %v1354_v46  ;;  %v3164_v46 = vld [vmem:[%s3725_s12 + $0x40] sm:$0xf] }
 0x10e   : > { %1818 = vmatmul.bf16.vlgmr.msra.gmra.mxu1 %v1741_v29  ;;  %v1898_v5 = vmax.f32 %v1890_v12, 0.0  ;;  %v1897_v29 = vmax.f32 %v1889_v21, 0.0  ;;  %v2494_v7 = vsel %vm928_vm1, %v2492_v8, %v2493_v33  ;;  %v2136_v39 = vmax.f32 %v4677_v1, 0.0 }
 0x10f   : > { %v2489_v36 = vrot.slane %v2457_v16, 2  ;;  %v2490_v38 = vrot.slane %v2458_v18, 2  ;;  %v1718_v11 = vrot.slane %v1683_v34, 2  ;;  %v1719_v20 = vrot.slane %v1684_v41, 2  ;;  %2337 = vmatmul.bf16.gmra.mxu3 %v2256_v47  ;;  %v3235_v34 = vld [vmem:[%s3725_s12 + $0x44] sm:$0x1] }
 0x110   : > { %v1609_v43 = vmul.f32 %v4325_v50, %v1601_v3  ;;  %v1717_v15 = vsel %vm928_vm1, %v1715_v6, %v1716_v9  ;;  %v2105_v53 = vmul.f32 %v4325_v50, %v2089_v63  ;;  %v2106_v40 = vmul.f32 %v4325_v50, %v2090_v49  ;;  %v4715_v6 = vpop.permute.xlu2 %1933  ;;  %v3165_v49 = vld [vmem:[%s3725_s12 + $0x48] sm:$0xf] }
 0x111   : > { %v2491_v45 = vsel %vm928_vm1, %v2489_v36, %v2490_v38  ;;  %v1720_v59 = vsel %vm928_vm1, %v1718_v11, %v1719_v20  ;;  %v2179_v0 = vrot.slane %v4640_v55, 7  ;;  %v2093_v28 = vunpack.c.l.bf16 %v3236_v37  ;;  %v1929_v22 = vpop.permute.xlu1 %1928  ;;  %v1924_v27 = vpop.permute.xlu0 %1923  ;;  %v3234_v38 = vld [vmem:[%s3725_s12 + $0x40] sm:$0xf] }
 0x112   : > { %v2521_v48 = vpack.c.bf16 %v2494_v7, %v2491_v45  ;;  %v1742_v10 = vpack.c.bf16 %v1720_v59, %v1717_v15  ;;  %v1626_v54 = vmax.f32 %v1618_v35, 0.0  ;;  %v1666_v51 = vrot.slane %v4679_v2, 6 }
 0x113   : > { %v1946_v9 = vmul.f32 %v1929_v22, %v1898_v5  ;;  %v1945_v62 = vmul.f32 %v1924_v27, %v1897_v29  ;;  %v1875_v58 = vunpack.c.l.bf16 %v3164_v46  ;;  %v2094_v12 = vunpack.c.l.bf16 %v3237_v26 }
 0x114   : > { %2598 = vmatmul.bf16.vlgmr.msra.gmra.mxu0 %v2521_v48  ;;  %v2380_v21 = vunpack.c.l.bf16 %v3297_v17  ;;  %v2379_v8 = vunpack.c.l.bf16 %v3296_v57  ;;  %v1617_v33 = vadd.f32 %v4348_v30, %v1609_v43  ;;  %v2121_v4 = vadd.f32 %v4348_v30, %v2105_v53 }
 0x115   : > { %v1951_v55 = vpack.c.bf16 %v1946_v9, %v1945_v62  ;;  %v4720_v14 = vadd.f32 %v4348_v30, %v2106_v40  ;;  %v2199_v2 = vmul.f32 %v2179_v0, %v2135_v44  ;;  %v2200_v47 = vmul.f32 %v2179_v0, %v2136_v39 }
 0x116   : > { %v2109_v3 = vmul.f32 %v4325_v50, %v2093_v28  ;;  %v1687_v63 = vmul.f32 %v1666_v51, %v1626_v54  ;;  %v1688_v16 = vmul.f32 %v1666_v51, %v1358_v24  ;;  %v1883_v18 = vmul.f32 %v4325_v50, %v1875_v58 }
 0x117   : > { %2036 = vmatmul.bf16.gmra.mxu2 %v1951_v55  ;;  %v2388_v41 = vmul.f32 %v4325_v50, %v2380_v21  ;;  %v2387_v35 = vmul.f32 %v4325_v50, %v2379_v8  ;;  %v2110_v44 = vmul.f32 %v4325_v50, %v2094_v12  ;;  %v1625_v5 = vmax.f32 %v1617_v33, 0.0 }
 0x118   : > { %v2137_v29 = vmax.f32 %v2121_v4, 0.0  ;;  %v2138_v36 = vmax.f32 %v4720_v14, 0.0  ;;  %v2235_v11 = vrot.slane %v2199_v2, 1  ;;  %v2236_v20 = vrot.slane %v2200_v47, 1  ;;  %v2174_v17 = vpop.permute.xlu2 %2173  ;;  %v3101_v47 = vld [vmem:[%s3725_s12 + $0x40] sm:$0xe] }
 0x119   : > { %v2125_v37 = vadd.f32 %v4348_v30, %v2109_v3  ;;  %v1648_v60 = vpop.permute.xlu1 %1647  ;;  %v2166_v24 = vpop.permute.xlu0 %2165  ;;  %v1876_v7 = vunpack.c.l.bf16 %v3165_v49  ;;  %v1724_v46 = vrot.slane %v1687_v63, 2  ;;  %v2092_v43 = vunpack.c.l.bf16 %v3235_v34  ;;  %v3100_v3 = vld [vmem:[%s3725_s12 + $0x38] sm:$0xe] }
 0x11a   : > { %v1665_v15 = vrot.slane %v1648_v60, 6  ;;  %v2180_v45 = vrot.slane %v2166_v24, 7  ;;  %v1725_v26 = vrot.slane %v1688_v16, 2  ;;  %v2396_v53 = vadd.f32 %v4348_v30, %v2388_v41 }
 0x11b   : > { %v2395_v40 = vadd.f32 %v4348_v30, %v2387_v35  ;;  %v2091_v59 = vunpack.c.l.bf16 %v3234_v38  ;;  %v1891_v27 = vadd.f32 %v4348_v30, %v1883_v18  ;;  %v4744_v48 = vadd.f32 %v4348_v30, %v2110_v44 }
 0x11c   : > { %v1685_v57 = vmul.f32 %v1665_v15, %v1625_v5  ;;  %v1686_v0 = vmul.f32 %v1665_v15, %v1356_v52  ;;  %v2201_v28 = vmul.f32 %v2180_v45, %v2137_v29  ;;  %v2202_v22 = vmul.f32 %v2180_v45, %v2138_v36  ;;  %v3300_v52 = vld [vmem:[%s3725_s12 + $0x40] sm:$0xe]  ;;  %v3299_v5 = vld [vmem:[%s3725_s12 + $0x38] sm:$0xe] }
 0x11d   : > { %v1884_v54 = vmul.f32 %v4325_v50, %v1876_v7  ;;  %v2108_v56 = vmul.f32 %v4325_v50, %v2092_v43  ;;  %v2237_v12 = vsel %vm592_vm0, %v2235_v11, %v2236_v20  ;;  %v2107_v21 = vmul.f32 %v4325_v50, %v2091_v59 }
 0x11e   : > { %1823 = vmatmul.bf16.gmra.mxu1 %v1742_v10  ;;  %v2141_v10 = vmax.f32 %v2125_v37, 0.0  ;;  %v1721_v51 = vrot.slane %v1685_v57, 2  ;;  %v1722_v9 = vrot.slane %v1686_v0, 2  ;;  %v2238_v62 = vrot.slane %v2201_v28, 1 }
 0x11f   : > { %v2239_v58 = vrot.slane %v2202_v22, 1  ;;  %v1726_v8 = vsel %vm928_vm1, %v1724_v46, %v1725_v26  ;;  %v2404_v55 = vmax.f32 %v2396_v53, 0.0  ;;  %v2403_v33 = vmax.f32 %v2395_v40, 0.0 }
 0x120   : > { %v1723_v2 = vsel %vm928_vm1, %v1721_v51, %v1722_v9  ;;  %v2182_v63 = vrot.slane %v2174_v17, 7  ;;  %v1892_v34 = vadd.f32 %v4348_v30, %v1884_v54  ;;  %v1899_v35 = vmax.f32 %v1891_v27, 0.0  ;;  %v4758_v44 = vpop.f32.mrf.mxu0  ;;  %v4769_v40 = vpop.permute.xlu2 %2435  ;;  %v3301_v54 = vld [vmem:[%s3725_s12 + $0x48] sm:$0xe] }
 0x121   : > { %v2240_v4 = vsel %vm592_vm0, %v2238_v62, %v2239_v58  ;;  %v2424_v49 = vpop.permute.xlu1 %2423  ;;  %v2420_v16 = vpop.permute.xlu0 %2419  ;;  %v1743_v41 = vpack.c.bf16 %v1726_v8, %v1723_v2  ;;  %v2142_v50 = vmax.f32 %v4744_v48, 0.0  ;;  %v2383_v11 = vunpack.c.l.bf16 %v3300_v52 }
 0x122   : > { %v2257_v18 = vpack.c.bf16 %v2240_v4, %v2237_v12  ;;  %v2444_v29 = vrot.slane %v2424_v49, 6  ;;  %v2443_v38 = vrot.slane %v2420_v16, 6  ;;  %v2123_v20 = vadd.f32 %v4348_v30, %v2107_v21  ;;  %v3506_v4 = vld [vmem:[%s4869_s2] ss:$0 sm:$0xff] }
 0x123   : > { %v1604_v37 = vunpack.c.l.bf16 %v3101_v47  ;;  %v1603_v60 = vunpack.c.l.bf16 %v3100_v3  ;;  %v2205_v15 = vmul.f32 %v2182_v63, %v2141_v10  ;;  %v4767_v45 = vadd.f32 %v4348_v30, %v2108_v56  ;;  %v3298_v10 = vld [vmem:[%s3725_s12 + $0x30] sm:$0xe]  ;;  %s3360_s12 = sshll.u32 %s4897_s21, 5 }
 0x124   : > { %2342 = vmatmul.bf16.gmra.mxu3 %v2257_v18  ;;  %v2463_v24 = vmul.f32 %v2444_v29, %v2404_v55  ;;  %v2464_v7 = vmul.f32 %v2444_v29, %v2134_v23  ;;  %v2461_v46 = vmul.f32 %v2443_v38, %v2403_v33  ;;  %v2462_v43 = vmul.f32 %v2443_v38, %v2132_v13  ;;  %s4840_s16 = scalar_lea.vmem %s4872_s5, %s3360_s12 }
 0x125   : > { %v2382_v26 = vunpack.c.l.bf16 %v3299_v5  ;;  %v1900_v53 = vmax.f32 %v1892_v34, 0.0  ;;  %v2206_v25 = vmul.f32 %v2182_v63, %v2142_v50  ;;  %v1612_v23 = vmul.f32 %v3505_v61, %v1604_v37 }
 0x126   : > { %v2498_v59 = vrot.slane %v2463_v24, 2  ;;  %v2499_v17 = vrot.slane %v2464_v7, 2  ;;  %v2495_v57 = vrot.slane %v2461_v46, 2  ;;  %v2496_v0 = vrot.slane %v2462_v43, 2 }
 0x127   : > { %v2139_v13 = vmax.f32 %v2123_v20, 0.0  ;;  %v1611_v27 = vmul.f32 %v3505_v61, %v1603_v60  ;;  %v1947_v51 = vmul.f32 %v4715_v6, %v1899_v35  ;;  %v2140_v9 = vmax.f32 %v4767_v45, 0.0 }
 0x128   : > { %v4776_v30 = vpop.f32.mrf.mxu1  ;;  %v2497_v28 = vsel %vm928_vm1, %v2495_v57, %v2496_v0  ;;  %v2500_v22 = vsel %vm928_vm1, %v2498_v59, %v2499_v17  ;;  %v2391_v62 = vmul.f32 %v3505_v61, %v2383_v11  ;;  %v2244_v12 = vrot.slane %v2205_v15, 1  ;;  %v4787_v3 = vpop.f32.mrf.mxu0 }
 0x129   : > { %v2170_v58 = vpop.permute.xlu1 %2169  ;;  %v1939_v56 = vpop.permute.xlu0 %1938  ;;  %v2522_v52 = vpack.c.bf16 %v2500_v22, %v2497_v28  ;;  %v2390_v21 = vmul.f32 %v3505_v61, %v2382_v26  ;;  %v2245_v33 = vrot.slane %v2206_v25, 1  ;;  %v1620_v2 = vadd.f32 %v3506_v4, %v1612_v23 }
 0x12a   : > { %v2181_v8 = vrot.slane %v2170_v58, 7  ;;  %v1948_v55 = vmul.f32 %v1939_v56, %v1900_v53  ;;  %v2381_v47 = vunpack.c.l.bf16 %v3298_v10  ;;  %v2384_v6 = vunpack.c.l.bf16 %v3301_v54  ;;  %v2432_v11 = vpop.permute.xlu2 %2431 }
 0x12b   : > { %2603 = vmatmul.bf16.gmra.mxu0 %v2522_v52  ;;  %v1619_v18 = vadd.f32 %v3506_v4, %v1611_v27  ;;  %v2399_v34 = vadd.f32 %v3506_v4, %v2391_v62  ;;  %v2398_v35 = vadd.f32 %v3506_v4, %v2390_v21  ;;  %v1628_v37 = vmax.f32 %v1620_v2, 0.0 }
 0x12c   : > { %v2203_v63 = vmul.f32 %v2181_v8, %v2139_v13  ;;  %v2204_v49 = vmul.f32 %v2181_v8, %v2140_v9  ;;  %v1952_v16 = vpack.c.bf16 %v1948_v55, %v1947_v51  ;;  %v2392_v38 = vmul.f32 %v3505_v61, %v2384_v6 }
 0x12d   : > { %v1627_v60 = vmax.f32 %v1619_v18, 0.0  ;;  %v2246_v7 = vsel %vm592_vm0, %v2244_v12, %v2245_v33  ;;  %v2407_v45 = vmax.f32 %v2399_v34, 0.0  ;;  %v2406_v26 = vmax.f32 %v2398_v35, 0.0 }
 0x12e   : > { %1828 = vmatmul.bf16.gmra.mxu1 %v1743_v41  ;;  %v2241_v5 = vrot.slane %v2203_v63, 1  ;;  %v2242_v29 = vrot.slane %v2204_v49, 1  ;;  %2041 = vmatmul.bf16.gmra.mxu2 %v1952_v16  ;;  %v2389_v41 = vmul.f32 %v3505_v61, %v2381_v47  ;;  %v2447_v17 = vrot.slane %v4769_v40, 6 }
 0x12f   : > { %v2446_v57 = vrot.slane %v2432_v11, 6  ;;  %v2400_v25 = vadd.f32 %v3506_v4, %v2392_v38 }
 0x130   : > { %v4789_v20 = vpop.f32.mrf.mxu1  ;;  %v2243_v24 = vsel %vm592_vm0, %v2241_v5, %v2242_v29  ;;  %v2397_v0 = vadd.f32 %v3506_v4, %v2389_v41  ;;  %v708_v22 = vpop.f32.mrf.mxu0  ;;  %v2469_v58 = vmul.f32 %v2447_v17, %v2407_v45  ;;  %v2470_v40 = vmul.f32 %v2447_v17, %v2140_v9 }
 0x131   : > { %v1660_v46 = vpop.permute.xlu1 %1659  ;;  %v1656_v43 = vpop.permute.xlu0 %1655  ;;  %v2258_v15 = vpack.c.bf16 %v2246_v7, %v2243_v24  ;;  %v2467_v56 = vmul.f32 %v2446_v57, %v2406_v26  ;;  %v2468_v52 = vmul.f32 %v2446_v57, %v2138_v36 }
 0x132   : > { %v1668_v53 = vrot.slane %v1660_v46, 6  ;;  %v1667_v59 = vrot.slane %v1656_v43, 6  ;;  %v2405_v19 = vmax.f32 %v2397_v0, 0.0  ;;  %v2507_v2 = vrot.slane %v2469_v58, 2 }
 0x133   : > { %v2508_v47 = vrot.slane %v2470_v40, 2  ;;  %v2504_v9 = vrot.slane %v2467_v56, 2  ;;  %v2505_v6 = vrot.slane %v2468_v52, 2 }
 0x134   : > { %2347 = vmatmul.bf16.gmra.mxu3 %v2258_v15  ;;  %v1691_v61 = vmul.f32 %v1668_v53, %v1628_v37  ;;  %v1692_v23 = vmul.f32 %v1668_v53, %v1362_v32  ;;  %v1689_v13 = vmul.f32 %v1667_v59, %v1627_v60  ;;  %v1690_v28 = vmul.f32 %v1667_v59, %v1360_v42 }
 0x135   : > { %v2408_v32 = vmax.f32 %v2400_v25, 0.0  ;;  %v2509_v29 = vsel %vm928_vm1, %v2507_v2, %v2508_v47  ;;  %v2506_v1 = vsel %vm928_vm1, %v2504_v9, %v2505_v6 }
 0x136   : > { %v1730_v27 = vrot.slane %v1691_v61, 2  ;;  %v1731_v10 = vrot.slane %v1692_v23, 2  ;;  %v1727_v54 = vrot.slane %v1689_v13, 2  ;;  %v1728_v51 = vrot.slane %v1690_v28, 2 }
 0x137   : > { %v1039_v62 = vpop.f32.mrf.mxu2 }
 0x138   : > { %v4800_v12 = vpop.f32.mrf.mxu1  ;;  %v1729_v21 = vsel %vm928_vm1, %v1727_v54, %v1728_v51  ;;  %v1732_v31 = vsel %vm928_vm1, %v1730_v27, %v1731_v10  ;;  %v710_v41 = vpop.f32.mrf.mxu0 }
 0x139   : > { %v2428_v42 = vpop.permute.xlu1 %2427  ;;  %v2440_v8 = vpop.permute.xlu0 %2439  ;;  %v1744_v55 = vpack.c.bf16 %v1732_v31, %v1729_v21 }
 0x13a   : > { %v2445_v33 = vrot.slane %v2428_v42, 6  ;;  %v2448_v4 = vrot.slane %v2440_v8, 6 }
 0x13c   : > { %v2465_v14 = vmul.f32 %v2445_v33, %v2405_v19  ;;  %v2466_v36 = vmul.f32 %v2445_v33, %v2136_v39  ;;  %v2471_v63 = vmul.f32 %v2448_v4, %v2408_v32  ;;  %v2472_v49 = vmul.f32 %v2448_v4, %v2142_v50 }
 0x13e   : > { %1833 = vmatmul.bf16.gmra.mxu1 %v1744_v55  ;;  %v2501_v16 = vrot.slane %v2465_v14, 2  ;;  %v2502_v18 = vrot.slane %v2466_v36, 2  ;;  %v2510_v34 = vrot.slane %v2471_v63, 2  ;;  %v2511_v35 = vrot.slane %v2472_v49, 2 }
 0x13f   : > { %v4808_v5 = vpop.f32.mrf.mxu2 }
 0x140   : > { %v2512_v38 = vsel %vm928_vm1, %v2510_v34, %v2511_v35  ;;  %v720_v11 = vpop.f32.mrf.mxu1  ;;  %v2503_v37 = vsel %vm928_vm1, %v2501_v16, %v2502_v18 }
 0x141   : > { %v1247_v39 = vpop.f32.mrf.mxu3  ;;  %v2523_v60 = vpack.c.bf16 %v2506_v1, %v2503_v37  ;;  %v2524_v48 = vpack.c.bf16 %v2512_v38, %v2509_v29 }
 0x143   : > { %2608 = vmatmul.bf16.gmra.mxu0 %v2523_v60  ;;  %2613 = vmatmul.bf16.vlgmr.msra.gmra.mxu2 %v2524_v48 }
 0x147   : > { %v1044_v50 = vpop.f32.mrf.mxu2 }
 0x148   : > { %v780_v24 = vpop.f32.mrf.mxu1  ;;  %v1553_v7 = vpop.f32.mrf.mxu0 }
 0x149   : > { %v781_v46 = vadd.f32 %v780_v24, %v4758_v44  ;;  %v1249_v43 = vpop.f32.mrf.mxu3 }
 0x14b   : > { %v1059_v15 = vadd.f32 %v1039_v62, %v781_v46 }
 0x14d   : > { %v1267_v45 = vadd.f32 %v1247_v39, %v1059_v15 }
 0x14f   : > { %v1046_v26 = vpop.f32.mrf.mxu2  ;;  %v1573_v53 = vadd.f32 %v1553_v7, %v1267_v45 }
 0x150   : > { %v782_v59 = vpop.f32.mrf.mxu1  ;;  %v1555_v17 = vpop.f32.mrf.mxu0 }
 0x151   : > { %v1252_v57 = vpop.f32.mrf.mxu3 }
 0x157   : > { %v1049_v0 = vpop.f32.mrf.mxu2 }
 0x159   : > { %v1558_v61 = vpop.f32.mrf.mxu0  ;;  %v1254_v13 = vpop.f32.mrf.mxu3 }
 0x15b   : > { %v785_v25 = vpop.f32.mrf.mxu1 }
 0x15c   : > { %v786_v23 = vadd.f32 %v785_v25, %v708_v22 }
 0x15e   : > { %v1061_v28 = vadd.f32 %v1044_v50, %v786_v23 }
 0x15f   : > { %v1051_v10 = vpop.f32.mrf.mxu2 }
 0x160   : > { %v1269_v27 = vadd.f32 %v1252_v57, %v1061_v28 }
 0x161   : > { %v1560_v62 = vpop.f32.mrf.mxu0 }
 0x162   : > { %v4815_v54 = vadd.f32 %v1558_v61, %v1269_v27  ;;  %v1257_v58 = vpop.f32.mrf.mxu3 }
 0x163   : > { %v787_v51 = vpop.f32.mrf.mxu1 }
 0x164   : > { %v788_v44 = vadd.f32 %v787_v51, %v710_v41 }
 0x166   : > { %v1062_v40 = vadd.f32 %v1046_v26, %v788_v44 }
 0x167   : > { %v1054_v19 = vpop.f32.mrf.mxu2 }
 0x168   : > { %v1270_v56 = vadd.f32 %v1254_v13, %v1062_v40 }
 0x169   : > { %v1563_v42 = vpop.f32.mrf.mxu0 }
 0x16a   : > { %v4817_v52 = vadd.f32 %v1560_v62, %v1270_v56  ;;  %v1259_v31 = vpop.f32.mrf.mxu3 }
 0x16b   : > { %v790_v32 = vpop.f32.mrf.mxu1 }
 0x16c   : > { %v791_v21 = vadd.f32 %v790_v32, %v4776_v30 }
 0x16e   : > { %v1063_v22 = vadd.f32 %v1049_v0, %v791_v21 }
 0x16f   : > { %v1056_v4 = vpop.f32.mrf.mxu2 }
 0x170   : > { %v1271_v8 = vadd.f32 %v1257_v58, %v1063_v22 }
 0x171   : > { %v1565_v14 = vpop.f32.mrf.mxu0 }
 0x172   : > { %v4820_v55 = vadd.f32 %v1563_v42, %v1271_v8  ;;  %v1262_v9 = vpop.f32.mrf.mxu3 }
 0x173   : > { %v792_v33 = vpop.f32.mrf.mxu1 }
 0x174   : > { %v793_v2 = vadd.f32 %v792_v33, %v4789_v20  ;;  %v783_v20 = vadd.f32 %v782_v59, %v4787_v3 }
 0x176   : > { %v1064_v47 = vadd.f32 %v1051_v10, %v793_v2  ;;  %v1060_v39 = vadd.f32 %v4808_v5, %v783_v20 }
 0x177   : > { %v2027_v30 = vpop.f32.mrf.mxu2 }
 0x178   : > { %v1272_v6 = vadd.f32 %v1259_v31, %v1064_v47  ;;  %v1268_v50 = vadd.f32 %v1249_v43, %v1060_v39 }
 0x17a   : > { %v4823_v36 = vadd.f32 %v1565_v14, %v1272_v6  ;;  %v4826_v18 = vpop.f32.mrf.mxu3  ;;  %v1574_v7 = vadd.f32 %v1555_v17, %v1268_v50 }
 0x17b   : > { %v795_v63 = vpop.f32.mrf.mxu1 }
 0x17c   : > { %v796_v49 = vadd.f32 %v795_v63, %v4800_v12 }
 0x17e   : > { %v1065_v16 = vadd.f32 %v1054_v19, %v796_v49 }
 0x17f   : > { %v2029_v1 = vpop.f32.mrf.mxu2 }
 0x180   : > { %v1273_v34 = vadd.f32 %v1262_v9, %v1065_v16 }
 0x181   : > { %v1568_v29 = vpop.f32.mrf.mxu0 }
 0x182   : > { %v4828_v38 = vadd.f32 %v1568_v29, %v1273_v34  ;;  %v2333_v60 = vpop.f32.mrf.mxu3 }
 0x183   : > { %v797_v35 = vpop.f32.mrf.mxu1 }
 0x184   : > { %v798_v41 = vadd.f32 %v797_v35, %v720_v11 }
 0x186   : > { %v4831_v37 = vadd.f32 %v1056_v4, %v798_v41 }
 0x187   : > { %v2032_v46 = vpop.f32.mrf.mxu2 }
 0x189   : > { %v4834_v12 = vpop.f32.mrf.mxu0 }
 0x18a   : > { %v2335_v57 = vpop.f32.mrf.mxu3 }
 0x18b   : > { %v1819_v48 = vpop.f32.mrf.mxu1 }
 0x18c   : > { %v1839_v24 = vadd.f32 %v1819_v48, %v1573_v53 }
 0x18e   : > { %v2047_v45 = vadd.f32 %v2027_v30, %v1839_v24 }
 0x18f   : > { %v2034_v13 = vpop.f32.mrf.mxu2 }
 0x190   : > { %v2353_v59 = vadd.f32 %v2333_v60, %v2047_v45  ;;  %v1274_v60 = vadd.f32 %v4826_v18, %v4831_v37 }
 0x191   : > { %v2599_v11 = vpop.f32.mrf.mxu0 }
 0x192   : > { %v2619_v0 = vadd.f32 %v2599_v11, %v2353_v59  ;;  %v2338_v27 = vpop.f32.mrf.mxu3  ;;  %v1580_v24 = vadd.f32 %v4834_v12, %v1274_v60 }
 0x193   : > { %v1821_v15 = vpop.f32.mrf.mxu1 }
 0x194   : > { %v1840_v26 = vadd.f32 %v1821_v15, %v1574_v7  ;;  %v2657_v43 = vmul.f32 %v2619_v0, %v2619_v0 }
 0x196   : > { %v2048_v3 = vadd.f32 %v2029_v1, %v1840_v26 }
 0x198   : > { %v2354_v25 = vadd.f32 %v2335_v57, %v2048_v3 }
 0x199   : > { %v2601_v61 = vpop.f32.mrf.mxu0 }
 0x19a   : > { %v2620_v23 = vadd.f32 %v2601_v61, %v2354_v25  ;;  %v2037_v58 = vpop.f32.mrf.mxu2  ;;  %v2340_v40 = vpop.f32.mrf.mxu3 }
 0x19b   : > { %v1824_v5 = vpop.f32.mrf.mxu1 }
 0x19c   : > { %v3436_v53 = vpack.c.bf16 %v2620_v23, %v2619_v0  ;;  %v2643_v17 = vadd.f32 %v2620_v23, %v2619_v0  ;;  %v2658_v28 = vmul.f32 %v2620_v23, %v2620_v23  ;;  %v1841_v51 = vadd.f32 %v1824_v5, %v4815_v54 }
 0x19e   : > { %3437 = vst [vmem:[%s4840_s16] sm:$0xff] %v3436_v53   ;;  %v2665_v10 = vadd.f32 %v2658_v28, %v2657_v43  ;;  %v2049_v62 = vadd.f32 %v2032_v46, %v1841_v51 }
 0x1a0   : > { %v2355_v19 = vadd.f32 %v2338_v27, %v2049_v62 }
 0x1a2   : > { %v2039_v33 = vpop.f32.mrf.mxu2 }
 0x1a3   : > { %v1826_v44 = vpop.f32.mrf.mxu1 }
 0x1a4   : > { %v1842_v56 = vadd.f32 %v1826_v44, %v4817_v52 }
 0x1a6   : > { %v2050_v22 = vadd.f32 %v2034_v13, %v1842_v56 }
 0x1a7   : > { %v2343_v2 = vpop.f32.mrf.mxu3 }
 0x1a8   : > { %v2604_v21 = vpop.f32.mrf.mxu0  ;;  %v2356_v47 = vadd.f32 %v2340_v40, %v2050_v22 }
 0x1a9   : > { %v2621_v31 = vadd.f32 %v2604_v21, %v2355_v19 }
 0x1ab   : > { %v1829_v32 = vpop.f32.mrf.mxu1  ;;  %v2644_v42 = vadd.f32 %v2643_v17, %v2621_v31  ;;  %v2659_v8 = vmul.f32 %v2621_v31, %v2621_v31 }
 0x1ac   : > { %v1843_v16 = vadd.f32 %v1829_v32, %v4820_v55 }
 0x1ad   : > { %v2666_v4 = vadd.f32 %v2665_v10, %v2659_v8 }
 0x1ae   : > { %v2051_v29 = vadd.f32 %v2037_v58, %v1843_v16 }
 0x1af   : > { %v2345_v34 = vpop.f32.mrf.mxu3 }
 0x1b0   : > { %v2606_v54 = vpop.f32.mrf.mxu0  ;;  %v2357_v39 = vadd.f32 %v2343_v2, %v2051_v29 }
 0x1b1   : > { %v2622_v6 = vadd.f32 %v2606_v54, %v2356_v47  ;;  %v2042_v30 = vpop.f32.mrf.mxu2 }
 0x1b3   : > { %v1831_v9 = vpop.f32.mrf.mxu1  ;;  %v3441_v14 = vpack.c.bf16 %v2622_v6, %v2621_v31  ;;  %v2645_v63 = vadd.f32 %v2644_v42, %v2622_v6  ;;  %v2660_v49 = vmul.f32 %v2622_v6, %v2622_v6 }
 0x1b4   : > { %v1844_v20 = vadd.f32 %v1831_v9, %v4823_v36 }
 0x1b5   : > { %3453 = vst [vmem:[%s4840_s16 + $0x8] sm:$0xff] %v3441_v14   ;;  %v2667_v52 = vadd.f32 %v2666_v4, %v2660_v49 }
 0x1b6   : > { %v2052_v15 = vadd.f32 %v2039_v33, %v1844_v20 }
 0x1b7   : > { %v2348_v7 = vpop.f32.mrf.mxu3 }
 0x1b9   : > { %v2044_v41 = vpop.f32.mrf.mxu2 }
 0x1bb   : > { %v1834_v35 = vpop.f32.mrf.mxu1 }
 0x1bc   : > { %v1845_v1 = vadd.f32 %v1834_v35, %v4828_v38  ;;  %v2358_v38 = vadd.f32 %v2345_v34, %v2052_v15 }
 0x1be   : > { %v2053_v55 = vadd.f32 %v2042_v30, %v1845_v1 }
 0x1bf   : > { %v2350_v61 = vpop.f32.mrf.mxu3 }
 0x1c0   : > { %v2609_v48 = vpop.f32.mrf.mxu0  ;;  %v2359_v3 = vadd.f32 %v2348_v7, %v2053_v55 }
 0x1c1   : > { %v2623_v50 = vadd.f32 %v2609_v48, %v2357_v39 }
 0x1c3   : > { %v1836_v46 = vpop.f32.mrf.mxu1  ;;  %v2646_v11 = vadd.f32 %v2645_v63, %v2623_v50  ;;  %v2661_v45 = vmul.f32 %v2623_v50, %v2623_v50 }
 0x1c4   : > { %v1846_v26 = vadd.f32 %v1836_v46, %v1580_v24 }
 0x1c5   : > { %v2668_v57 = vadd.f32 %v2667_v52, %v2661_v45 }
 0x1c6   : > { %v2614_v36 = vpop.f32.mrf.mxu2  ;;  %v2054_v0 = vadd.f32 %v2044_v41, %v1846_v26 }
 0x1c7   : > { %v2625_v25 = vadd.f32 %v2614_v36, %v2359_v3 }
 0x1c8   : > { %v2611_v59 = vpop.f32.mrf.mxu0  ;;  %v2360_v43 = vadd.f32 %v2350_v61, %v2054_v0 }
 0x1c9   : > { %v2624_v18 = vadd.f32 %v2611_v59, %v2358_v38  ;;  %v2663_v23 = vmul.f32 %v2625_v25, %v2625_v25 }
 0x1cb   : > { %v3446_v37 = vpack.c.bf16 %v2624_v18, %v2623_v50  ;;  %v2647_v5 = vadd.f32 %v2646_v11, %v2624_v18  ;;  %v2662_v12 = vmul.f32 %v2624_v18, %v2624_v18 }
 0x1cd   : > { %3454 = vst [vmem:[%s4840_s16 + $0x10] sm:$0xff] %v3446_v37   ;;  %v2669_v13 = vadd.f32 %v2668_v57, %v2662_v12  ;;  %v2648_v53 = vadd.f32 %v2647_v5, %v2625_v25 }
 0x1ce   : > { %v2616_v17 = vpop.f32.mrf.mxu2 }
 0x1cf   : > { %v2626_v28 = vadd.f32 %v2616_v17, %v2360_v43  ;;  %v2670_v27 = vadd.f32 %v2669_v13, %v2663_v23 }
 0x1d1   : > { %v3451_v10 = vpack.c.bf16 %v2626_v28, %v2625_v25  ;;  %v2649_v51 = vadd.f32 %v2648_v53, %v2626_v28  ;;  %v2664_v44 = vmul.f32 %v2626_v28, %v2626_v28 }
 0x1d3   : > { %3455 = vst [vmem:[%s4840_s16 + $0x18] sm:$0xff] %v3451_v10   ;;  %v2650_v58 = vrot.slane %v2649_v51, 4  ;;  %v2671_v62 = vadd.f32 %v2670_v27, %v2664_v44 }
 0x1d5   : > { %v2651_v40 = vadd.f32 %v2650_v58, %v2649_v51  ;;  %v2672_v56 = vrot.slane %v2671_v62, 4 }
 0x1d7   : > { %v2652_v19 = vrot.slane %v2651_v40, 2  ;;  %v2673_v32 = vadd.f32 %v2672_v56, %v2671_v62 }
 0x1d9   : > { %v2653_v21 = vadd.f32 %v2652_v19, %v2651_v40  ;;  %v2674_v31 = vrot.slane %v2673_v32, 2 }
 0x1db   : > { %v2654_v22 = vrot.slane %v2653_v21, 1  ;;  %v2675_v42 = vadd.f32 %v2674_v31, %v2673_v32 }
 0x1dd   : > { %v2655_v8 = vadd.f32 %v2654_v22, %v2653_v21  ;;  %v2676_v33 = vrot.slane %v2675_v42, 1 }
 0x1df   : > { %2656 = vst [vmem:[%s293_s20] sm:$0x1] %v2655_v8  ;;  %v2677_v4 = vadd.f32 %v2676_v33, %v2675_v42 }
 0x1e1   : > { %2678 = vst [vmem:[%s293_s20 + $0x1] sm:$0x1] %v2677_v4 }
 0x1e2 PF: > { %s17_s23 = sadd.s32 1, %s3529_s23   ;;  %s4892_s21 = smov %s3525_s22 }
 0x1e3   : > { %p14_p5 = scmp.ge.s32.totalorder %s17_s23, 4   ;;  %s4893_s22 = smov %s4895_s24 }
 0x1e5   :  { %16 = sbr.rel (!%p14_p5) target bundleno = 2 (0x2), region = 96 }

</bundles_post_ra>
